<compile_context>
chip_gen: v6e
topology: v6e:2x2x1
jax: 0.10.0
libtpu: 0.0.40
codegen_flags: <defaults>
</compile_context>

<pallas_src>
import jax
import jax.numpy as jnp
from jax.experimental import pallas as pl
from jax.experimental.pallas import tpu as pltpu

_NEG = float(jnp.finfo(jnp.float32).min)   # max identity (finite; do NOT reuse for sums)
_H_PAD = 6    # -inf rows top+bottom: 3 chained pool5 passes x radius 2
_W_PAD = 8    # -inf cols on the right: must stay >= 2 * (#chained passes) = 6 so the
              # circular W rolls never let wrapped data corrupt real columns.  Do not
              # shrink this (or add a 4th chained pass) without re-deriving the bound.


def _pool5(a, wp):
    """One separable 5x5 max pass (prefix-doubling form) on a -inf halo'd array.

    Rows (leading axis): 'valid' 5-window, output shrinks by 4 rows; 3 maxes
    (pairs -> 4-window -> 5-window); leading-axis slices are free (no retiling).
    Cols (sublane axis): centered radius-2 window via pltpu.roll (XLU);
    3 rolls + 3 maxes.  Circular wrap is safe because the right side of `a`
    carries >= 6 columns of -inf and per-pass reach is +-2 over <= 3 chained
    passes (real data never reaches the columns that real outputs wrap-read).
    """
    ha = a.shape[0]
    # rows: max(a[i..i+4])
    b = jnp.maximum(a[0:ha - 1], a[1:ha])          # max(a[i], a[i+1])
    c = jnp.maximum(b[0:ha - 3], b[2:ha - 1])      # max(a[i..i+3])
    r = jnp.maximum(c[0:ha - 4], a[4:ha])          # max(a[i..i+4])
    # cols: max(r[j-2..j+2])
    u = jnp.maximum(r, pltpu.roll(r, wp - 1, axis=1))        # max(r[j], r[j+1])
    v = jnp.maximum(pltpu.roll(u, 2, axis=1),                # max(r[j-2], r[j-1])
                    pltpu.roll(u, wp - 1, axis=1))           # max(r[j+1], r[j+2])
    return jnp.maximum(v, r)


def sppf_kernel(x_ref, w_ref, bias_ref, o_ref, halo_ref):
    _, H, W, C = x_ref.shape
    Cp = w_ref.shape[2]
    Wp = halo_ref.shape[1]                         # W + 8

    # Conv padding=1: the zero-padded 1-pixel ring maps to relu(bias).  Fill the
    # whole (1, H+2, W+2, Cp) output block once; the interior is overwritten below.
    border = jnp.maximum(bias_ref[...], 0.0).astype(o_ref.dtype)          # (1, Cp)
    o_ref[...] = jnp.broadcast_to(border.reshape(1, 1, 1, Cp), o_ref.shape)

    # Build the -inf halo in the persistent VMEM scratch (input block is un-padded
    # bf16 in HBM; no full-size concat copies).  Pad regions are refilled every
    # step so grid steps on different cores stay correct.
    x = x_ref[0]                                                           # (H, W, C) bf16
    halo_ref[0:_H_PAD, :, :] = jnp.full((_H_PAD, Wp, C), _NEG, jnp.float32)
    halo_ref[_H_PAD + H:_H_PAD + H + _H_PAD, :, :] = jnp.full((_H_PAD, Wp, C), _NEG, jnp.float32)
    halo_ref[_H_PAD:_H_PAD + H, W:Wp, :] = jnp.full((H, Wp - W, C), _NEG, jnp.float32)
    halo_ref[_H_PAD:_H_PAD + H, 0:W, :] = x.astype(jnp.float32)
    xp = halo_ref[...]                                                     # (H+12, Wp, C) f32

    # 1x1 conv over the virtual concat([x, p5, p9, p13]) as 4 K-chunk partial
    # matmuls (bf16 LHS/RHS, f32 MXU accumulation), interleaved with the pooling
    # passes (SPPF trick: pool9 = pool5(pool5), pool13 = pool5(pool5(pool5))).
    # The (H, W, 4C) concat is never materialized and at most ~2 halo'd f32
    # intermediates are live at any point.
    acc = jnp.dot(x.reshape(H * W, C), w_ref[0], preferred_element_type=jnp.float32)

    p5 = _pool5(xp, Wp)                            # (H+8, Wp, C)
    acc += jnp.dot(p5[4:4 + H, 0:W].astype(jnp.bfloat16).reshape(H * W, C),
                   w_ref[1], preferred_element_type=jnp.float32)
    p9 = _pool5(p5, Wp)                            # (H+4, Wp, C)
    acc += jnp.dot(p9[2:2 + H, 0:W].astype(jnp.bfloat16).reshape(H * W, C),
                   w_ref[2], preferred_element_type=jnp.float32)
    p13 = _pool5(p9, Wp)                           # (H,   Wp, C)
    acc += jnp.dot(p13[0:H, 0:W].astype(jnp.bfloat16).reshape(H * W, C),
                   w_ref[3], preferred_element_type=jnp.float32)

    # BN scale already folded into the weights; epilogue = bias + ReLU, then store
    # the interior of the bordered output tile (bf16 writeback).
    z = jnp.maximum(acc + bias_ref[...], 0.0)                              # (H*W, Cp) f32
    o_ref[:, 1:1 + H, 1:1 + W, :] = z.reshape(1, H, W, Cp).astype(o_ref.dtype)


def sppf_forward(x_nchw, conv_w, gamma, beta, running_mean, running_var, eps=1e-5):
    N, C, H, W = x_nchw.shape
    Cout = conv_w.shape[0]
    assert conv_w.shape == (Cout, 4 * C, 1, 1)
    # Reshapes / aligned halo stores are only layout-free when W is a sublane multiple.
    assert W % 8 == 0, "W must be a multiple of 8 (pad spatial width for YOLO shapes)"

    # Lane-dense output channel dim (avoid masked partial stores for small Cout).
    Cp = ((Cout + 127) // 128) * 128

    # NHWC, bf16 activations in HBM (max pooling is exact; matmul accumulates in f32).
    x = jnp.transpose(x_nchw, (0, 2, 3, 1)).astype(jnp.bfloat16)           # (N, H, W, C)

    # Fold BN (eval mode) into the conv: w <- w * scale (per out channel), bias.
    scale = (gamma / jnp.sqrt(running_var + eps)).astype(jnp.float32)      # (Cout,)
    bias = (beta - running_mean * scale).astype(jnp.float32)               # (Cout,)
    wmat = conv_w.reshape(Cout, 4 * C).T.astype(jnp.float32) * scale[None, :]
    w4 = wmat.reshape(4, C, Cout)                   # K split in order [x, p5, p9, p13]
    w4 = jnp.pad(w4, ((0, 0), (0, 0), (0, Cp - Cout))).astype(jnp.bfloat16)
    bias_p = jnp.pad(bias, (0, Cp - Cout)).reshape(1, Cp)

    out = pl.pallas_call(
        sppf_kernel,
        out_shape=jax.ShapeDtypeStruct((N, H + 2, W + 2, Cp), jnp.bfloat16),
        grid=(N,),
        in_specs=[
            pl.BlockSpec((1, H, W, C), lambda n: (n, 0, 0, 0)),   # un-padded bf16 image
            pl.BlockSpec((4, C, Cp), lambda n: (0, 0, 0)),        # scale-folded weights
            pl.BlockSpec((1, Cp), lambda n: (0, 0)),              # folded BN bias
        ],
        out_specs=pl.BlockSpec((1, H + 2, W + 2, Cp), lambda n: (n, 0, 0, 0)),
        scratch_shapes=[pltpu.VMEM((H + 2 * _H_PAD, W + _W_PAD, C), jnp.float32)],
        compiler_params=pltpu.CompilerParams(
            dimension_semantics=("parallel",),
            vmem_limit_bytes=32 * 1024 * 1024),
    )(x, w4, bias_p)

    out = out[..., :Cout]                          # drop lane padding
    return jnp.transpose(out, (0, 3, 1, 2))        # back to NCHW (bf16 activations)


def sppf_reference(x_nchw, conv_w, gamma, beta, running_mean, running_var, eps=1e-5):
    neg = jnp.finfo(x_nchw.dtype).min

    def mp(x, k):
        p = (k - 1) // 2
        return jax.lax.reduce_window(
            x, neg, jax.lax.max,
            window_dimensions=(1, 1, k, k), window_strides=(1, 1, 1, 1),
            padding=((0, 0), (0, 0), (p, p), (p, p)))

    cat = jnp.concatenate(
        [x_nchw, mp(x_nchw, 5), mp(x_nchw, 9), mp(x_nchw, 13)], axis=1)
    catp = jnp.pad(cat, ((0, 0), (0, 0), (1, 1), (1, 1)))
    z = jnp.einsum('oc,nchw->nohw', conv_w.reshape(conv_w.shape[0], -1), catp)
    scale = gamma / jnp.sqrt(running_var + eps)
    bias = beta - running_mean * scale
    z = z * scale[None, :, None, None] + bias[None, :, None, None]
    return jnp.maximum(z, 0.0)


if __name__ == "__main__":
    key = jax.random.PRNGKey(0)
    k_x, k_w, k_g, k_b, k_m, k_v = jax.random.split(key, 6)

    N, C_in, H, W = 2, 4, 16, 16
    C_out = 8

    x = jax.random.normal(k_x, (N, C_in, H, W), dtype=jnp.float32)
    conv_w = 0.1 * jax.random.normal(k_w, (C_out, 4 * C_in, 1, 1), dtype=jnp.float32)
    gamma = 1.0 + 0.1 * jax.random.normal(k_g, (C_out,), dtype=jnp.float32)
    beta = 0.1 * jax.random.normal(k_b, (C_out,), dtype=jnp.float32)
    running_mean = 0.1 * jax.random.normal(k_m, (C_out,), dtype=jnp.float32)
    running_var = jax.random.uniform(k_v, (C_out,), jnp.float32, 0.5, 1.5)

    out = sppf_forward(x, conv_w, gamma, beta, running_mean, running_var)
    out = jax.block_until_ready(out)

    ref = sppf_reference(x, conv_w, gamma, beta, running_mean, running_var)
    assert out.shape == (N, C_out, H + 2, W + 2), out.shape
    out32 = out.astype(jnp.float32)
    # bf16 activation/weight/output path -> relaxed tolerance vs the f32 reference
    # (the max pooling itself is exact; only the conv inputs/outputs are bf16-rounded).
    err = float(jnp.max(jnp.abs(out32 - ref)))
    assert jnp.allclose(out32, ref, atol=5e-2, rtol=5e-2), err

    print("KERNEL_OK")
</pallas_src>

<mosaic_0001>
module attributes {stable_mosaic.version = 11 : i64} {
  func.func @sppf_kernel(%arg0: i32, %arg1: memref<1x16x16x4xbf16, #tpu.memory_space<vmem>>, %arg2: memref<4x4x128xbf16, #tpu.memory_space<vmem>>, %arg3: memref<1x128xf32, #tpu.memory_space<vmem>>, %arg4: memref<1x18x18x128xbf16, #tpu.memory_space<vmem>>, %arg5: memref<28x24x4xf32, #tpu.memory_space<vmem>>) attributes {dimension_semantics = [#tpu.dimension_semantics<parallel>], iteration_bounds = array<i64: 2>, scalar_prefetch = 0 : i64, scratch_operands = 1 : i64, tpu.core_type = #tpu.core_type<tc>, window_params = [{transform_indices = @transform_0, window_bounds = array<i64: 1, 16, 16, 4>}, {pipeline_mode = #tpu.pipeline_mode<synchronous>, transform_indices = @transform_1, window_bounds = array<i64: 4, 4, 128>}, {pipeline_mode = #tpu.pipeline_mode<synchronous>, transform_indices = @transform_2, window_bounds = array<i64: 1, 128>}, {transform_indices = @transform_3, window_bounds = array<i64: 1, 18, 18, 128>}]} {
    %c0 = arith.constant 0 : index
    %c0_0 = arith.constant 0 : index
    %0 = vector.load %arg3[%c0, %c0_0] : memref<1x128xf32, #tpu.memory_space<vmem>>, vector<1x128xf32>
    %cst = arith.constant 0.000000e+00 : f32
    %1 = vector.broadcast %cst : f32 to vector<1x128xf32>
    %2 = arith.maximumf %0, %1 : vector<1x128xf32>
    %3 = arith.truncf %2 : vector<1x128xf32> to vector<1x128xbf16>
    %4 = vector.shape_cast %3 : vector<1x128xbf16> to vector<1x1x1x128xbf16>
    %5 = vector.shape_cast %4 : vector<1x1x1x128xbf16> to vector<1x1x1x128xbf16>
    %6 = vector.broadcast %5 : vector<1x1x1x128xbf16> to vector<1x18x18x128xbf16>
    %c0_1 = arith.constant 0 : index
    %c0_2 = arith.constant 0 : index
    %c0_3 = arith.constant 0 : index
    %c0_4 = arith.constant 0 : index
    %7 = vector.load %arg4[%c0_1, %c0_2, %c0_3, %c0_4] : memref<1x18x18x128xbf16, #tpu.memory_space<vmem>>, vector<1x18x18x128xbf16>
    tpu.vector_store %arg4[%c0_1, %c0_2, %c0_3, %c0_4], %6 {strides = array<i32>} : memref<1x18x18x128xbf16, #tpu.memory_space<vmem>>, vector<1x18x18x128xbf16>,
    %c0_5 = arith.constant 0 : index
    %c0_6 = arith.constant 0 : index
    %c0_7 = arith.constant 0 : index
    %c0_8 = arith.constant 0 : index
    %8 = vector.load %arg1[%c0_5, %c0_6, %c0_7, %c0_8] : memref<1x16x16x4xbf16, #tpu.memory_space<vmem>>, vector<1x16x16x4xbf16>
    %9 = vector.shape_cast %8 : vector<1x16x16x4xbf16> to vector<16x16x4xbf16>
    %cst_9 = arith.constant -3.40282347E+38 : f32
    %10 = vector.broadcast %cst_9 : f32 to vector<6x24x4xf32>
    %c0_10 = arith.constant 0 : index
    %c0_11 = arith.constant 0 : index
    %c0_12 = arith.constant 0 : index
    %11 = vector.load %arg5[%c0_10, %c0_11, %c0_12] : memref<28x24x4xf32, #tpu.memory_space<vmem>>, vector<6x24x4xf32>
    tpu.vector_store %arg5[%c0_10, %c0_11, %c0_12], %10 {strides = array<i32>} : memref<28x24x4xf32, #tpu.memory_space<vmem>>, vector<6x24x4xf32>,
    %cst_13 = arith.constant -3.40282347E+38 : f32
    %12 = vector.broadcast %cst_13 : f32 to vector<6x24x4xf32>
    %c22 = arith.constant 22 : index
    %c0_14 = arith.constant 0 : index
    %c0_15 = arith.constant 0 : index
    %13 = vector.load %arg5[%c22, %c0_14, %c0_15] : memref<28x24x4xf32, #tpu.memory_space<vmem>>, vector<6x24x4xf32>
    tpu.vector_store %arg5[%c22, %c0_14, %c0_15], %12 {strides = array<i32>} : memref<28x24x4xf32, #tpu.memory_space<vmem>>, vector<6x24x4xf32>,
    %cst_16 = arith.constant -3.40282347E+38 : f32
    %14 = vector.broadcast %cst_16 : f32 to vector<16x8x4xf32>
    %c6 = arith.constant 6 : index
    %c16 = arith.constant 16 : index
    %c0_17 = arith.constant 0 : index
    %15 = vector.load %arg5[%c6, %c16, %c0_17] : memref<28x24x4xf32, #tpu.memory_space<vmem>>, vector<16x8x4xf32>
    tpu.vector_store %arg5[%c6, %c16, %c0_17], %14 {strides = array<i32>} : memref<28x24x4xf32, #tpu.memory_space<vmem>>, vector<16x8x4xf32>,
    %16 = arith.extf %9 : vector<16x16x4xbf16> to vector<16x16x4xf32>
    %c6_18 = arith.constant 6 : index
    %c0_19 = arith.constant 0 : index
    %c0_20 = arith.constant 0 : index
    %17 = vector.load %arg5[%c6_18, %c0_19, %c0_20] : memref<28x24x4xf32, #tpu.memory_space<vmem>>, vector<16x16x4xf32>
    tpu.vector_store %arg5[%c6_18, %c0_19, %c0_20], %16 {strides = array<i32>} : memref<28x24x4xf32, #tpu.memory_space<vmem>>, vector<16x16x4xf32>,
    %c0_21 = arith.constant 0 : index
    %c0_22 = arith.constant 0 : index
    %c0_23 = arith.constant 0 : index
    %18 = vector.load %arg5[%c0_21, %c0_22, %c0_23] : memref<28x24x4xf32, #tpu.memory_space<vmem>>, vector<28x24x4xf32>
    %19 = vector.shape_cast %9 : vector<16x16x4xbf16> to vector<256x4xbf16>
    %c0_24 = arith.constant 0 : index
    %c0_25 = arith.constant 0 : index
    %c0_26 = arith.constant 0 : index
    %20 = vector.load %arg2[%c0_24, %c0_25, %c0_26] : memref<4x4x128xbf16, #tpu.memory_space<vmem>>, vector<1x4x128xbf16>
    %21 = vector.shape_cast %20 : vector<1x4x128xbf16> to vector<4x128xbf16>
    %cst_27 = arith.constant dense<0.000000e+00> : vector<256x128xf32>
    %22 = tpu.matmul %19, %21, %cst_27 {dimension_numbers = #tpu.dot_dimension_numbers<[1], [0], [0], [1], [0, 0, 1, 1], [], []>} : vector<256x4xbf16>, vector<4x128xbf16>, vector<256x128xf32> -> vector<256x128xf32>
    %23 = vector.extract_strided_slice %18 {offsets = [0, 0, 0], sizes = [27, 24, 4], strides = [1, 1, 1]} : vector<28x24x4xf32> to vector<27x24x4xf32>
    %24 = vector.extract_strided_slice %18 {offsets = [1, 0, 0], sizes = [27, 24, 4], strides = [1, 1, 1]} : vector<28x24x4xf32> to vector<27x24x4xf32>
    %25 = arith.maximumf %23, %24 : vector<27x24x4xf32>
    %26 = vector.extract_strided_slice %25 {offsets = [0, 0, 0], sizes = [25, 24, 4], strides = [1, 1, 1]} : vector<27x24x4xf32> to vector<25x24x4xf32>
    %27 = vector.extract_strided_slice %25 {offsets = [2, 0, 0], sizes = [25, 24, 4], strides = [1, 1, 1]} : vector<27x24x4xf32> to vector<25x24x4xf32>
    %28 = arith.maximumf %26, %27 : vector<25x24x4xf32>
    %29 = vector.extract_strided_slice %28 {offsets = [0, 0, 0], sizes = [24, 24, 4], strides = [1, 1, 1]} : vector<25x24x4xf32> to vector<24x24x4xf32>
    %30 = vector.extract_strided_slice %18 {offsets = [4, 0, 0], sizes = [24, 24, 4], strides = [1, 1, 1]} : vector<28x24x4xf32> to vector<24x24x4xf32>
    %31 = arith.maximumf %29, %30 : vector<24x24x4xf32>
    %c23_i32 = arith.constant 23 : i32
    %32 = tpu.dynamic_rotate %31 by %c23_i32 dim 1 : vector<24x24x4xf32>, i32 -> vector<24x24x4xf32>
    %33 = arith.maximumf %31, %32 : vector<24x24x4xf32>
    %c2_i32 = arith.constant 2 : i32
    %34 = tpu.dynamic_rotate %33 by %c2_i32 dim 1 : vector<24x24x4xf32>, i32 -> vector<24x24x4xf32>
    %c23_i32_28 = arith.constant 23 : i32
    %35 = tpu.dynamic_rotate %33 by %c23_i32_28 dim 1 : vector<24x24x4xf32>, i32 -> vector<24x24x4xf32>
    %36 = arith.maximumf %34, %35 : vector<24x24x4xf32>
    %37 = arith.maximumf %36, %31 : vector<24x24x4xf32>
    %38 = vector.extract_strided_slice %37 {offsets = [4, 0, 0], sizes = [16, 16, 4], strides = [1, 1, 1]} : vector<24x24x4xf32> to vector<16x16x4xf32>
    %39 = arith.truncf %38 : vector<16x16x4xf32> to vector<16x16x4xbf16>
    %40 = vector.shape_cast %39 : vector<16x16x4xbf16> to vector<256x4xbf16>
    %c1 = arith.constant 1 : index
    %c0_29 = arith.constant 0 : index
    %c0_30 = arith.constant 0 : index
    %41 = vector.load %arg2[%c1, %c0_29, %c0_30] : memref<4x4x128xbf16, #tpu.memory_space<vmem>>, vector<1x4x128xbf16>
    %42 = vector.shape_cast %41 : vector<1x4x128xbf16> to vector<4x128xbf16>
    %cst_31 = arith.constant dense<0.000000e+00> : vector<256x128xf32>
    %43 = tpu.matmul %40, %42, %cst_31 {dimension_numbers = #tpu.dot_dimension_numbers<[1], [0], [0], [1], [0, 0, 1, 1], [], []>} : vector<256x4xbf16>, vector<4x128xbf16>, vector<256x128xf32> -> vector<256x128xf32>
    %44 = arith.addf %22, %43 : vector<256x128xf32>
    %45 = vector.extract_strided_slice %37 {offsets = [0, 0, 0], sizes = [23, 24, 4], strides = [1, 1, 1]} : vector<24x24x4xf32> to vector<23x24x4xf32>
    %46 = vector.extract_strided_slice %37 {offsets = [1, 0, 0], sizes = [23, 24, 4], strides = [1, 1, 1]} : vector<24x24x4xf32> to vector<23x24x4xf32>
    %47 = arith.maximumf %45, %46 : vector<23x24x4xf32>
    %48 = vector.extract_strided_slice %47 {offsets = [0, 0, 0], sizes = [21, 24, 4], strides = [1, 1, 1]} : vector<23x24x4xf32> to vector<21x24x4xf32>
    %49 = vector.extract_strided_slice %47 {offsets = [2, 0, 0], sizes = [21, 24, 4], strides = [1, 1, 1]} : vector<23x24x4xf32> to vector<21x24x4xf32>
    %50 = arith.maximumf %48, %49 : vector<21x24x4xf32>
    %51 = vector.extract_strided_slice %50 {offsets = [0, 0, 0], sizes = [20, 24, 4], strides = [1, 1, 1]} : vector<21x24x4xf32> to vector<20x24x4xf32>
    %52 = vector.extract_strided_slice %37 {offsets = [4, 0, 0], sizes = [20, 24, 4], strides = [1, 1, 1]} : vector<24x24x4xf32> to vector<20x24x4xf32>
    %53 = arith.maximumf %51, %52 : vector<20x24x4xf32>
    %c23_i32_32 = arith.constant 23 : i32
    %54 = tpu.dynamic_rotate %53 by %c23_i32_32 dim 1 : vector<20x24x4xf32>, i32 -> vector<20x24x4xf32>
    %55 = arith.maximumf %53, %54 : vector<20x24x4xf32>
    %c2_i32_33 = arith.constant 2 : i32
    %56 = tpu.dynamic_rotate %55 by %c2_i32_33 dim 1 : vector<20x24x4xf32>, i32 -> vector<20x24x4xf32>
    %c23_i32_34 = arith.constant 23 : i32
    %57 = tpu.dynamic_rotate %55 by %c23_i32_34 dim 1 : vector<20x24x4xf32>, i32 -> vector<20x24x4xf32>
    %58 = arith.maximumf %56, %57 : vector<20x24x4xf32>
    %59 = arith.maximumf %58, %53 : vector<20x24x4xf32>
    %60 = vector.extract_strided_slice %59 {offsets = [2, 0, 0], sizes = [16, 16, 4], strides = [1, 1, 1]} : vector<20x24x4xf32> to vector<16x16x4xf32>
    %61 = arith.truncf %60 : vector<16x16x4xf32> to vector<16x16x4xbf16>
    %62 = vector.shape_cast %61 : vector<16x16x4xbf16> to vector<256x4xbf16>
    %c2 = arith.constant 2 : index
    %c0_35 = arith.constant 0 : index
    %c0_36 = arith.constant 0 : index
    %63 = vector.load %arg2[%c2, %c0_35, %c0_36] : memref<4x4x128xbf16, #tpu.memory_space<vmem>>, vector<1x4x128xbf16>
    %64 = vector.shape_cast %63 : vector<1x4x128xbf16> to vector<4x128xbf16>
    %cst_37 = arith.constant dense<0.000000e+00> : vector<256x128xf32>
    %65 = tpu.matmul %62, %64, %cst_37 {dimension_numbers = #tpu.dot_dimension_numbers<[1], [0], [0], [1], [0, 0, 1, 1], [], []>} : vector<256x4xbf16>, vector<4x128xbf16>, vector<256x128xf32> -> vector<256x128xf32>
    %66 = arith.addf %44, %65 : vector<256x128xf32>
    %67 = vector.extract_strided_slice %59 {offsets = [0, 0, 0], sizes = [19, 24, 4], strides = [1, 1, 1]} : vector<20x24x4xf32> to vector<19x24x4xf32>
    %68 = vector.extract_strided_slice %59 {offsets = [1, 0, 0], sizes = [19, 24, 4], strides = [1, 1, 1]} : vector<20x24x4xf32> to vector<19x24x4xf32>
    %69 = arith.maximumf %67, %68 : vector<19x24x4xf32>
    %70 = vector.extract_strided_slice %69 {offsets = [0, 0, 0], sizes = [17, 24, 4], strides = [1, 1, 1]} : vector<19x24x4xf32> to vector<17x24x4xf32>
    %71 = vector.extract_strided_slice %69 {offsets = [2, 0, 0], sizes = [17, 24, 4], strides = [1, 1, 1]} : vector<19x24x4xf32> to vector<17x24x4xf32>
    %72 = arith.maximumf %70, %71 : vector<17x24x4xf32>
    %73 = vector.extract_strided_slice %72 {offsets = [0, 0, 0], sizes = [16, 24, 4], strides = [1, 1, 1]} : vector<17x24x4xf32> to vector<16x24x4xf32>
    %74 = vector.extract_strided_slice %59 {offsets = [4, 0, 0], sizes = [16, 24, 4], strides = [1, 1, 1]} : vector<20x24x4xf32> to vector<16x24x4xf32>
    %75 = arith.maximumf %73, %74 : vector<16x24x4xf32>
    %c23_i32_38 = arith.constant 23 : i32
    %76 = tpu.dynamic_rotate %75 by %c23_i32_38 dim 1 : vector<16x24x4xf32>, i32 -> vector<16x24x4xf32>
    %77 = arith.maximumf %75, %76 : vector<16x24x4xf32>
    %c2_i32_39 = arith.constant 2 : i32
    %78 = tpu.dynamic_rotate %77 by %c2_i32_39 dim 1 : vector<16x24x4xf32>, i32 -> vector<16x24x4xf32>
    %c23_i32_40 = arith.constant 23 : i32
    %79 = tpu.dynamic_rotate %77 by %c23_i32_40 dim 1 : vector<16x24x4xf32>, i32 -> vector<16x24x4xf32>
    %80 = arith.maximumf %78, %79 : vector<16x24x4xf32>
    %81 = arith.maximumf %80, %75 : vector<16x24x4xf32>
    %82 = vector.extract_strided_slice %81 {offsets = [0, 0, 0], sizes = [16, 16, 4], strides = [1, 1, 1]} : vector<16x24x4xf32> to vector<16x16x4xf32>
    %83 = arith.truncf %82 : vector<16x16x4xf32> to vector<16x16x4xbf16>
    %84 = vector.shape_cast %83 : vector<16x16x4xbf16> to vector<256x4xbf16>
    %c3 = arith.constant 3 : index
    %c0_41 = arith.constant 0 : index
    %c0_42 = arith.constant 0 : index
    %85 = vector.load %arg2[%c3, %c0_41, %c0_42] : memref<4x4x128xbf16, #tpu.memory_space<vmem>>, vector<1x4x128xbf16>
    %86 = vector.shape_cast %85 : vector<1x4x128xbf16> to vector<4x128xbf16>
    %cst_43 = arith.constant dense<0.000000e+00> : vector<256x128xf32>
    %87 = tpu.matmul %84, %86, %cst_43 {dimension_numbers = #tpu.dot_dimension_numbers<[1], [0], [0], [1], [0, 0, 1, 1], [], []>} : vector<256x4xbf16>, vector<4x128xbf16>, vector<256x128xf32> -> vector<256x128xf32>
    %88 = arith.addf %66, %87 : vector<256x128xf32>
    %c0_44 = arith.constant 0 : index
    %c0_45 = arith.constant 0 : index
    %89 = vector.load %arg3[%c0_44, %c0_45] : memref<1x128xf32, #tpu.memory_space<vmem>>, vector<1x128xf32>
    %90 = vector.broadcast %89 : vector<1x128xf32> to vector<256x128xf32>
    %91 = arith.addf %88, %90 : vector<256x128xf32>
    %cst_46 = arith.constant 0.000000e+00 : f32
    %92 = vector.broadcast %cst_46 : f32 to vector<256x128xf32>
    %93 = arith.maximumf %91, %92 : vector<256x128xf32>
    %94 = vector.shape_cast %93 : vector<256x128xf32> to vector<1x16x16x128xf32>
    %95 = arith.truncf %94 : vector<1x16x16x128xf32> to vector<1x16x16x128xbf16>
    %c0_47 = arith.constant 0 : index
    %c1_48 = arith.constant 1 : index
    %c1_49 = arith.constant 1 : index
    %c0_50 = arith.constant 0 : index
    %96 = vector.load %arg4[%c0_47, %c1_48, %c1_49, %c0_50] : memref<1x18x18x128xbf16, #tpu.memory_space<vmem>>, vector<1x16x16x128xbf16>
    tpu.vector_store %arg4[%c0_47, %c1_48, %c1_49, %c0_50], %95 {strides = array<i32>} : memref<1x18x18x128xbf16, #tpu.memory_space<vmem>>, vector<1x16x16x128xbf16>,
    return
  }
  func.func @transform_0(%arg0: i32) -> (i32, i32, i32, i32) {
    %c0_i32 = arith.constant 0 : i32
    %c0_i32_0 = arith.constant 0 : i32
    %c0_i32_1 = arith.constant 0 : i32
    %c0_i32_2 = arith.constant 0 : i32
    return %arg0, %c0_i32, %c0_i32_0, %c0_i32_1 : i32, i32, i32, i32
  }
  func.func @transform_1(%arg0: i32) -> (i32, i32, i32) {
    %c0_i32 = arith.constant 0 : i32
    %c0_i32_0 = arith.constant 0 : i32
    %c0_i32_1 = arith.constant 0 : i32
    %c0_i32_2 = arith.constant 0 : i32
    return %c0_i32, %c0_i32_0, %c0_i32_1 : i32, i32, i32
  }
  func.func @transform_2(%arg0: i32) -> (i32, i32) {
    %c0_i32 = arith.constant 0 : i32
    %c0_i32_0 = arith.constant 0 : i32
    %c0_i32_1 = arith.constant 0 : i32
    return %c0_i32, %c0_i32_0 : i32, i32
  }
  func.func @transform_3(%arg0: i32) -> (i32, i32, i32, i32) {
    %c0_i32 = arith.constant 0 : i32
    %c0_i32_0 = arith.constant 0 : i32
    %c0_i32_1 = arith.constant 0 : i32
    %c0_i32_2 = arith.constant 0 : i32
    return %arg0, %c0_i32, %c0_i32_0, %c0_i32_1 : i32, i32, i32, i32
  }
}

</mosaic_0001>

<bundles_post_ra>
// kernel: tpu_custom_call.1
= control target key start
LH: loop header
LB: loop body
LE: loop exit
PB: predicated region body
PF: predicated region fallthrough
CT: control target
= control target key end

     0   :  { %s4812_s12 = smov 0   ;;  %s9241_s0 = inlined_call_operand.vmem [shape: bf16[2,16,16,4], index: 0, kind: input, shape index: {}]   ;;  %s9242_s1 = inlined_call_operand.vmem [shape: bf16[4,4,128], index: 1, kind: input, shape index: {}]   ;;  %s9243_s2 = inlined_call_operand.vmem [shape: f32[1,128], index: 2, kind: input, shape index: {}]   ;;  %s9244_s3 = inlined_call_operand.vmem [shape: bf16[2,18,18,128], index: 3, kind: output, shape index: {}]  }
   0x1 LB: > { %s4304_s13 = sadd.s32 4294967295, %s4789_s12   ;;  %p4308_p0 = scmp.ge.s32.totalorder %s4789_s12, 1  ;;  %s4789_s12 = sphi %s4812_s12, %s13_s12  }
   0x2   : > { %p137_p1 = scmp.lt.s32.totalorder %s4789_s12, 3 }
   0x4   : > { %p138_p2 = pnand %p4308_p0, %p137_p1 }
   0x6   : > { %141 = sbr.rel (%p138_p2) target bundleno = 835 (0x343), region = 32 }
   0xb   : > { %v475_v0 = vld [vmem:[%s9242_s1] sm:$0x3]  ;;  %vm1416_vm0 = vcmask 1041408   ;;  %v4313_v1 = vld [vmem:[%s9242_s1 + $0x2] sm:$0x3]  ;;  %p161_p3 = scmp.lt.s32.totalorder %s4304_s13, 1  ;;  %v178_v4 = vlaneseq }
   0xc   : > { %4749 = vmatprep.subr.msk.bf16.mxu1 %vm1416_vm0, %v475_v0  ;;  %v1710_v2 = vsel %vm1416_vm0, %v475_v0, 0  ;;  %4748 = vmatprep.subr.msk.bf16.mxu0 %vm1416_vm0, %v4313_v1  ;;  %vm272_vm1 = vcmask 31744   ;;  %v1418_v3 = vsel %vm1416_vm0, %v4313_v1, 0  ;;  %v4791_v5 = vmov -3.4028235e+38  }
   0xd   : > { %4647 = vmatpush3.bf16.msra.mxu1 %v1710_v2  ;;  %s9843_s13 = smov (!%p161_p3, %s4304_s13), 1  ;;  %4613 = vmatpush3.bf16.msra.mxu0 %v1418_v3  ;;  %273 = vst.msk [vmem:[#allocation2] sm:$0xff] %vm272_vm1, %v4791_v5  ;;  %274 = vst.msk [vmem:[#allocation2 + $0x8] sm:$0xff] %vm272_vm1, %v4791_v5  ;;  %v4362_v6 = vld [vmem:[%s9242_s1 + $0x4] sm:$0x3]  ;;  %v4903_v11 = vshrl.u32 %v178_v4, 7 }
   0xe   : > { %275 = vst.msk [vmem:[#allocation2 + $0x10] sm:$0xff] %vm272_vm1, %v4791_v5  ;;  %276 = vst.msk [vmem:[#allocation2 + $0x18] sm:$0xff] %vm272_vm1, %v4791_v5  ;;  %v4379_v7 = vld [vmem:[%s9242_s1 + $0x6] sm:$0x3]  ;;  %4750 = vmatprep.subr.msk.bf16.mxu0 %vm1416_vm0, %v4362_v6  ;;  %v4892_v8 = vsel %vm1416_vm0, %v4362_v6, 0  ;;  %s4511_s22 = sshll.u32 %s9843_s13, 7 }
   0xf   : > { %277 = vst.msk [vmem:[#allocation2 + $0x20] sm:$0xff] %vm272_vm1, %v4791_v5  ;;  %278 = vst.msk [vmem:[#allocation2 + $0x28] sm:$0xff] %vm272_vm1, %v4791_v5  ;;  %4751 = vmatprep.subr.msk.bf16.mxu1 %vm1416_vm0, %v4379_v7  ;;  %s4899_s25 = scalar_lea.vmem %s9241_s0, %s4511_s22  ;;  %v3446_v13 = vsel %vm1416_vm0, %v4379_v7, 0  ;;  %vm772_vm2 = vcmp.lt.s32.totalorder %v4903_v11, 7  ;;  %vm989_vm3 = vcmp.lt.s32.totalorder %v4903_v11, 2  ;;  %s4752_s28 = smul.u32 216, %s9843_s13 }
  0x10   : > { %279 = vst.msk [vmem:[#allocation2 + $0x30] sm:$0xff] %vm272_vm1, %v4791_v5  ;;  %280 = vst.msk [vmem:[#allocation2 + $0x38] sm:$0xff] %vm272_vm1, %v4791_v5  ;;  %v240_v9 = vld [vmem:[%s4899_s25] sm:$0xff]   ;;  %v242_v10 = vld [vmem:[%s4899_s25 + $0x8] sm:$0xff]   ;;  %vm4132_vm4 = vcmask 1043456   ;;  %vm4139_vm8 = vcmask 1040384  }
  0x11   : > { %281 = vst.msk [vmem:[#allocation2 + $0x40] sm:$0xff] %vm272_vm1, %v4791_v5  ;;  %282 = vst.msk [vmem:[#allocation2 + $0x48] sm:$0xff] %vm272_vm1, %v4791_v5  ;;  %v244_v12 = vld [vmem:[%s4899_s25 + $0x10] sm:$0xff]   ;;  %v327_v14 = vunpack.c.l.bf16 %v240_v9  ;;  %v328_v15 = vunpack.c.h.bf16 %v240_v9  ;;  %v329_v16 = vunpack.c.l.bf16 %v242_v10  ;;  %v4908_v17 = vld [vmem:[%s4899_s25 + $0x18] sm:$0xff]   ;;  %v330_v20 = vunpack.c.h.bf16 %v242_v10  ;;  %4648 = vmatprep.mubr.msk.bf16.mxu1 %vm272_vm1, %v240_v9  ;;  %s8877_s6 = scalar_lea.vmem %s9244_s3, %s4752_s28 }
  0x12   : > { %283 = vst.msk [vmem:[#allocation2 + $0x50] sm:$0xff] %vm272_vm1, %v4791_v5  ;;  %284 = vst.msk [vmem:[#allocation2 + $0x58] sm:$0xff] %vm272_vm1, %v4791_v5  ;;  %v4911_v18 = vld [vmem:[%s4899_s25 + $0x20] sm:$0xff]   ;;  %v4914_v19 = vld [vmem:[%s4899_s25 + $0x28] sm:$0xff]   ;;  %v331_v21 = vunpack.c.l.bf16 %v244_v12  ;;  %v332_v22 = vunpack.c.h.bf16 %v244_v12  ;;  %v333_v24 = vunpack.c.l.bf16 %v4908_v17  ;;  %v334_v25 = vunpack.c.h.bf16 %v4908_v17  ;;  %4649 = vmatmul.mubr.msk.bf16.vlgmr.msra.gmra.mxu1 %vm272_vm1, %v242_v10 }
  0x13   : > { %285 = vst.msk [vmem:[#allocation2 + $0x60] sm:$0xff] %vm272_vm1, %v4791_v5  ;;  %286 = vst.msk [vmem:[#allocation2 + $0x68] sm:$0xff] %vm272_vm1, %v4791_v5  ;;  %v4917_v23 = vld [vmem:[%s4899_s25 + $0x30] sm:$0xff]   ;;  %v335_v26 = vunpack.c.l.bf16 %v4911_v18  ;;  %v336_v27 = vunpack.c.h.bf16 %v4911_v18  ;;  %v337_v31 = vunpack.c.l.bf16 %v4914_v19  ;;  %v338_v32 = vunpack.c.h.bf16 %v4914_v19  ;;  %4715 = vmatpush3.bf16.msra.mxu1 %v3446_v13  ;;  %4652 = vmatprep.mubr.msk.bf16.mxu1 %vm272_vm1, %v244_v12 }
  0x14   : > { %287 = vst.msk [vmem:[#allocation2 + $0x70] sm:$0xff] %vm272_vm1, %v4791_v5  ;;  %288 = vst.msk [vmem:[#allocation2 + $0x78] sm:$0xff] %vm272_vm1, %v4791_v5  ;;  %v391_v28 = vld [vmem:[#allocation2] sm:$0xff]  ;;  %v392_v29 = vld [vmem:[#allocation2 + $0x8] sm:$0xff]  ;;  %v339_v54 = vunpack.c.l.bf16 %v4917_v23  ;;  %v340_v61 = vunpack.c.h.bf16 %v4917_v23  ;;  %vm4133_vm5 = vsmask.f32 7938 }
  0x15   : > { %289 = vst.msk [vmem:[#allocation2 + $0x80] sm:$0xff] %vm272_vm1, %v4791_v5  ;;  %290 = vst.msk [vmem:[#allocation2 + $0x88] sm:$0xff] %vm272_vm1, %v4791_v5  ;;  %v4927_v30 = vld [vmem:[#allocation2 + $0x10] sm:$0xff]  ;;  %v4935_v33 = vld [vmem:[#allocation2 + $0x18] sm:$0xff]  ;;  %vm3808_vm6 = vsmask.f32 256 }
  0x16   : > { %311 = vst.msk [vmem:[#allocation2 + $0xa0] sm:$0xff] %vm272_vm1, %v4791_v5  ;;  %312 = vst.msk [vmem:[#allocation2 + $0xb8] sm:$0xff] %vm272_vm1, %v4791_v5  ;;  %v4937_v34 = vld [vmem:[#allocation2 + $0x20] sm:$0xff]  ;;  %v4939_v35 = vld [vmem:[#allocation2 + $0x28] sm:$0xff]  ;;  %v476_v39 = vmax.f32 %v391_v28, %v4935_v33  ;;  %vm3809_vm7 = vsmask.f32 4368 }
  0x17   : > { %313 = vst.msk [vmem:[#allocation2 + $0xd0] sm:$0xff] %vm272_vm1, %v4791_v5  ;;  %314 = vst.msk [vmem:[#allocation2 + $0xe8] sm:$0xff] %vm272_vm1, %v4791_v5  ;;  %v397_v36 = vld [vmem:[#allocation2 + $0x30] sm:$0xff]  ;;  %v4945_v37 = vld [vmem:[#allocation2 + $0x38] sm:$0xff]  ;;  %v477_v40 = vmax.f32 %v392_v29, %v4937_v34  ;;  %v478_v41 = vmax.f32 %v4927_v30, %v4939_v35 }
  0x18   : > { %315 = vst.msk [vmem:[#allocation2 + $0x100] sm:$0xff] %vm272_vm1, %v4791_v5  ;;  %316 = vst.msk [vmem:[#allocation2 + $0x118] sm:$0xff] %vm272_vm1, %v4791_v5  ;;  %v4947_v38 = vld [vmem:[#allocation2 + $0x40] sm:$0xff]  ;;  %v400_v42 = vld [vmem:[#allocation2 + $0x48] sm:$0xff]  ;;  %v479_v45 = vmax.f32 %v4935_v33, %v397_v36  ;;  %v480_v46 = vmax.f32 %v4937_v34, %v4945_v37 }
  0x19   : > { %292 = vst.msk [vmem:[#allocation2 + $0x210] sm:$0xff] %vm272_vm1, %v4791_v5  ;;  %293 = vst.msk [vmem:[#allocation2 + $0x218] sm:$0xff] %vm272_vm1, %v4791_v5  ;;  %v401_v43 = vld [vmem:[#allocation2 + $0x50] sm:$0xff]  ;;  %v402_v44 = vld [vmem:[#allocation2 + $0x58] sm:$0xff]  ;;  %v481_v47 = vmax.f32 %v4939_v35, %v4947_v38  ;;  %v4967_v51 = vmax.f32 %v397_v36, %v400_v42 }
  0x1a   : > { %294 = vst.msk [vmem:[#allocation2 + $0x220] sm:$0xff] %vm272_vm1, %v4791_v5  ;;  %295 = vst.msk [vmem:[#allocation2 + $0x228] sm:$0xff] %vm272_vm1, %v4791_v5  ;;  %v4961_v48 = vld [vmem:[#allocation2 + $0x60] sm:$0xff]  ;;  %v4963_v49 = vld [vmem:[#allocation2 + $0x68] sm:$0xff]  ;;  %v4970_v52 = vmax.f32 %v4945_v37, %v401_v43  ;;  %v4973_v53 = vmax.f32 %v4947_v38, %v402_v44  ;;  %4653 = vmatmul.mubr.msk.bf16.gmra.mxu1 %vm272_vm1, %v4908_v17 }
  0x1b   : > { %296 = vst.msk [vmem:[#allocation2 + $0x230] sm:$0xff] %vm272_vm1, %v4791_v5  ;;  %297 = vst.msk [vmem:[#allocation2 + $0x238] sm:$0xff] %vm272_vm1, %v4791_v5  ;;  %v4965_v50 = vld [vmem:[#allocation2 + $0x70] sm:$0xff]  ;;  %v4976_v55 = vld [vmem:[#allocation2 + $0x78] sm:$0xff]  ;;  %v4983_v58 = vmax.f32 %v400_v42, %v4961_v48  ;;  %v4986_v59 = vmax.f32 %v401_v43, %v4963_v49  ;;  %v5011_v4 = vmax.f32 %v476_v39, %v4967_v51  ;;  %4656 = vmatprep.mubr.msk.bf16.mxu1 %vm272_vm1, %v4911_v18 }
  0x1c   : > { %298 = vst.msk [vmem:[#allocation2 + $0x240] sm:$0xff] %vm272_vm1, %v4791_v5  ;;  %299 = vst.msk [vmem:[#allocation2 + $0x248] sm:$0xff] %vm272_vm1, %v4791_v5  ;;  %v4978_v56 = vld [vmem:[#allocation2 + $0x80] sm:$0xff]  ;;  %v4980_v57 = vld [vmem:[#allocation2 + $0x88] sm:$0xff]  ;;  %v4989_v60 = vmax.f32 %v402_v44, %v4965_v50  ;;  %v5000_v1 = vmax.f32 %v4961_v48, %v4976_v55  ;;  %v555_v13 = vmax.f32 %v477_v40, %v4970_v52 }
  0x1d   : > { %300 = vst.msk [vmem:[#allocation2 + $0x250] sm:$0xff] %vm272_vm1, %v4791_v5  ;;  %301 = vst.msk [vmem:[#allocation2 + $0x258] sm:$0xff] %vm272_vm1, %v4791_v5  ;;  %v4992_v62 = vld [vmem:[#allocation2 + $0xa0] sm:$0xff]  ;;  %v4994_v63 = vld [vmem:[#allocation2 + $0xb8] sm:$0xff]  ;;  %v5004_v2 = vmax.f32 %v4963_v49, %v4978_v56  ;;  %v5008_v3 = vmax.f32 %v4965_v50, %v4980_v57  ;;  %v558_v17 = vmax.f32 %v480_v46, %v4986_v59 }
  0x1e   : > { %302 = vst.msk [vmem:[#allocation2 + $0x260] sm:$0xff] %vm272_vm1, %v4791_v5  ;;  %303 = vst.msk [vmem:[#allocation2 + $0x268] sm:$0xff] %vm272_vm1, %v4791_v5  ;;  %v4996_v0 = vld [vmem:[#allocation2 + $0xd0] sm:$0xff]  ;;  %v5022_v9 = vmax.f32 %v4980_v57, %v4992_v62  ;;  %v5026_v10 = vmax.f32 %v4992_v62, %v4994_v63  ;;  %v559_v18 = vmax.f32 %v481_v47, %v4989_v60 }
  0x1f   : > { %304 = vst.msk [vmem:[#allocation2 + $0x270] sm:$0xff] %vm272_vm1, %v4791_v5  ;;  %305 = vst.msk [vmem:[#allocation2 + $0x278] sm:$0xff] %vm272_vm1, %v4791_v5  ;;  %v5030_v12 = vmax.f32 %v4994_v63, %v4996_v0  ;;  %v5078_v34 = vld [vmem:[#allocation2 + $0x100] sm:$0xff]  ;;  %v5099_v40 = vld [vmem:[#allocation2 + $0x118] sm:$0xff]  ;;  %v562_v47 = vmax.f32 %v4973_v53, %v5008_v3 }
  0x20   : > { %306 = vst.msk [vmem:[#allocation2 + $0x280] sm:$0xff] %vm272_vm1, %v4791_v5  ;;  %307 = vst.msk [vmem:[#allocation2 + $0x288] sm:$0xff] %vm272_vm1, %v4791_v5  ;;  %v5124_v46 = vmax.f32 %v5078_v34, %v5099_v40 }
  0x21   : > { %308 = vst.msk [vmem:[#allocation2 + $0x290] sm:$0xff] %vm272_vm1, %v4791_v5  ;;  %309 = vst.msk [vmem:[#allocation2 + $0x298] sm:$0xff] %vm272_vm1, %v4791_v5 }
  0x22   : > { %317 = vst.msk [vmem:[#allocation2 + $0x130] sm:$0xff] %vm272_vm1, %v4791_v5  ;;  %318 = vst.msk [vmem:[#allocation2 + $0x148] sm:$0xff] %vm272_vm1, %v4791_v5  ;;  %4657 = vmatmul.mubr.msk.bf16.gmra.mxu1 %vm272_vm1, %v4914_v19 }
  0x23   : > { %319 = vst.msk [vmem:[#allocation2 + $0x160] sm:$0xff] %vm272_vm1, %v4791_v5  ;;  %320 = vst.msk [vmem:[#allocation2 + $0x178] sm:$0xff] %vm272_vm1, %v4791_v5 }
  0x24   : > { %321 = vst.msk [vmem:[#allocation2 + $0x190] sm:$0xff] %vm272_vm1, %v4791_v5  ;;  %322 = vst.msk [vmem:[#allocation2 + $0x1a8] sm:$0xff] %vm272_vm1, %v4791_v5 }
  0x25   : > { %323 = vst.msk [vmem:[#allocation2 + $0x1c0] sm:$0xff] %vm272_vm1, %v4791_v5  ;;  %324 = vst.msk [vmem:[#allocation2 + $0x1d8] sm:$0xff] %vm272_vm1, %v4791_v5 }
  0x26   : > { %325 = vst.msk [vmem:[#allocation2 + $0x1f0] sm:$0xff] %vm272_vm1, %v4791_v5  ;;  %326 = vst.msk [vmem:[#allocation2 + $0x208] sm:$0xff] %vm272_vm1, %v4791_v5 }
  0x27   : > { %9436 = vst [vmem:[#allocation3_spill] sm:$0xff] %v4892_v8  ;;  %9437 = vst [vmem:[#allocation4_spill] sm:$0xff] %v4917_v23 }
  0x28   : > { %359 = vst.msk [vmem:[#allocation2 + $0x90] sm:$0xff] %vm272_vm1, %v327_v14  ;;  %360 = vst.msk [vmem:[#allocation2 + $0x98] sm:$0xff] %vm272_vm1, %v328_v15 }
  0x29   : > { %361 = vst.msk [vmem:[#allocation2 + $0xa8] sm:$0xff] %vm272_vm1, %v329_v16  ;;  %362 = vst.msk [vmem:[#allocation2 + $0xb0] sm:$0xff] %vm272_vm1, %v330_v20 }
  0x2a   : > { %363 = vst.msk [vmem:[#allocation2 + $0xc0] sm:$0xff] %vm272_vm1, %v331_v21  ;;  %364 = vst.msk [vmem:[#allocation2 + $0xc8] sm:$0xff] %vm272_vm1, %v332_v22 }
  0x2b   : > { %365 = vst.msk [vmem:[#allocation2 + $0xd8] sm:$0xff] %vm272_vm1, %v333_v24  ;;  %366 = vst.msk [vmem:[#allocation2 + $0xe0] sm:$0xff] %vm272_vm1, %v334_v25  ;;  %v556_v24 = vmax.f32 %v478_v41, %v4973_v53  ;;  %v5173_v53 = vmax.f32 %v5011_v4, %v4961_v48 }
  0x2c   : > { %367 = vst.msk [vmem:[#allocation2 + $0xf0] sm:$0xff] %vm272_vm1, %v335_v26  ;;  %368 = vst.msk [vmem:[#allocation2 + $0xf8] sm:$0xff] %vm272_vm1, %v336_v27  ;;  %v5057_v27 = vld [vmem:[#allocation2 + $0xe8] sm:$0xff] }
  0x2d   : > { %369 = vst.msk [vmem:[#allocation2 + $0x108] sm:$0xff] %vm272_vm1, %v337_v31  ;;  %370 = vst.msk [vmem:[#allocation2 + $0x110] sm:$0xff] %vm272_vm1, %v338_v32  ;;  %v557_v31 = vmax.f32 %v479_v45, %v4983_v58  ;;  %v5090_v37 = vmax.f32 %v4996_v0, %v5057_v27  ;;  %v5111_v43 = vmax.f32 %v5057_v27, %v5078_v34 }
  0x2e   : > { %371 = vst.msk [vmem:[#allocation2 + $0x120] sm:$0xff] %vm272_vm1, %v339_v54  ;;  %9438 = vst [vmem:[#allocation5_spill] sm:$0xff] %v5022_v9  ;;  %v560_v54 = vmax.f32 %v4967_v51, %v5000_v1 }
  0x2f   : > { %v5014_v5 = vld [vmem:[#allocation2 + $0x90] sm:$0xff]  ;;  %v5016_v6 = vld [vmem:[#allocation2 + $0x98] sm:$0xff]  ;;  %9439 = vst [vmem:[#allocation6_spill] sm:$0xff] %v5026_v10  ;;  %9440 = vst [vmem:[#allocation7_spill] sm:$0xff] %v5030_v12 }
  0x30   : > { %v5018_v7 = vld [vmem:[#allocation2 + $0xa8] sm:$0xff]  ;;  %372 = vst.msk [vmem:[#allocation2 + $0x128] sm:$0xff] %vm272_vm1, %v340_v61  ;;  %v5034_v14 = vld [vmem:[#allocation2 + $0xb0] sm:$0xff]  ;;  %v5042_v20 = vmax.f32 %v4976_v55, %v5014_v5  ;;  %v5046_v21 = vmax.f32 %v4978_v56, %v5016_v6  ;;  %9444 = vst [vmem:[#allocation11_spill] sm:$0xff] %v5057_v27  ;;  %v561_v61 = vmax.f32 %v4970_v52, %v5004_v2 }
  0x31   : > { %v5036_v15 = vld [vmem:[#allocation2 + $0xc0] sm:$0xff]  ;;  %v5038_v16 = vld [vmem:[#allocation2 + $0xc8] sm:$0xff]  ;;  %v5050_v22 = vmax.f32 %v5014_v5, %v5018_v7  ;;  %v5061_v28 = vmax.f32 %v5016_v6, %v5034_v14  ;;  %9450 = vst [vmem:[#allocation17_spill] sm:$0xff] %v5078_v34  ;;  %9453 = vst [vmem:[#allocation20_spill] sm:$0xff] %v5090_v37  ;;  %v568_v52 = vmax.f32 %v5008_v3, %v5026_v10 }
  0x32   : > { %9441 = vst [vmem:[#allocation8_spill] sm:$0xff] %v5046_v21  ;;  %v5053_v25 = vld [vmem:[#allocation2 + $0xd8] sm:$0xff]  ;;  %v5055_v26 = vld [vmem:[#allocation2 + $0xe0] sm:$0xff]  ;;  %v5065_v29 = vmax.f32 %v5018_v7, %v5036_v15  ;;  %v5069_v30 = vmax.f32 %v5034_v14, %v5038_v16  ;;  %9456 = vst [vmem:[#allocation23_spill] sm:$0xff] %v5099_v40  ;;  %v563_v23 = vmax.f32 %v4983_v58, %v5042_v20 }
  0x33   : > { %9442 = vst [vmem:[#allocation9_spill] sm:$0xff] %v5050_v22  ;;  %9443 = vst [vmem:[#allocation10_spill] sm:$0xff] %v5055_v26  ;;  %v5074_v32 = vld [vmem:[#allocation2 + $0xf0] sm:$0xff]  ;;  %v5076_v33 = vld [vmem:[#allocation2 + $0xf8] sm:$0xff]  ;;  %v5082_v35 = vmax.f32 %v5036_v15, %v5053_v25  ;;  %v5086_v36 = vmax.f32 %v5038_v16, %v5055_v26  ;;  %v564_v8 = vmax.f32 %v4986_v59, %v5046_v21 }
  0x34   : > { %9445 = vst [vmem:[#allocation12_spill] sm:$0xff] %v5061_v28  ;;  %9446 = vst [vmem:[#allocation13_spill] sm:$0xff] %v5065_v29  ;;  %v5095_v38 = vld [vmem:[#allocation2 + $0x108] sm:$0xff]  ;;  %v5097_v39 = vld [vmem:[#allocation2 + $0x110] sm:$0xff]  ;;  %v5103_v41 = vmax.f32 %v5053_v25, %v5074_v32  ;;  %v5107_v42 = vmax.f32 %v5055_v26, %v5076_v33  ;;  %v566_v40 = vmax.f32 %v5000_v1, %v5050_v22 }
  0x35   : > { %9447 = vst [vmem:[#allocation14_spill] sm:$0xff] %v5069_v30  ;;  %9448 = vst [vmem:[#allocation15_spill] sm:$0xff] %v5074_v32  ;;  %v5116_v44 = vmax.f32 %v5074_v32, %v5095_v38  ;;  %v5120_v45 = vmax.f32 %v5076_v33, %v5097_v39  ;;  %v567_v51 = vmax.f32 %v5004_v2, %v5061_v28 }
  0x36   : > { %9449 = vst [vmem:[#allocation16_spill] sm:$0xff] %v5076_v33  ;;  %9451 = vst [vmem:[#allocation18_spill] sm:$0xff] %v5082_v35  ;;  %v5176_v3 = vmax.f32 %v555_v13, %v4963_v49  ;;  %v5179_v59 = vmax.f32 %v556_v24, %v4965_v50  ;;  %v5185_v1 = vmax.f32 %v558_v17, %v4978_v56 }
  0x37   : > { %9452 = vst [vmem:[#allocation19_spill] sm:$0xff] %v5086_v36  ;;  %9454 = vst [vmem:[#allocation21_spill] sm:$0xff] %v5095_v38  ;;  %v5188_v2 = vmax.f32 %v559_v18, %v4980_v57  ;;  %v5191_v19 = vmax.f32 %v560_v54, %v5014_v5  ;;  %v5194_v48 = vmax.f32 %v561_v61, %v5016_v6 }
  0x38   : > { %9455 = vst [vmem:[#allocation22_spill] sm:$0xff] %v5097_v39  ;;  %9457 = vst [vmem:[#allocation24_spill] sm:$0xff] %v5103_v41  ;;  %v565_v39 = vmax.f32 %v4989_v60, %v5022_v9  ;;  %v5182_v60 = vmax.f32 %v557_v31, %v4976_v55  ;;  %v5197_v49 = vmax.f32 %v562_v47, %v4992_v62  ;;  %v698_v62 = vrot.slane %v5173_v53, 1 }
  0x39   : > { %9458 = vst [vmem:[#allocation25_spill] sm:$0xff] %v5107_v42  ;;  %9459 = vst [vmem:[#allocation26_spill] sm:$0xff] %v5111_v43  ;;  %v5200_v50 = vmax.f32 %v563_v23, %v5018_v7  ;;  %v5203_v55 = vmax.f32 %v564_v8, %v5034_v14  ;;  %v5209_v57 = vmax.f32 %v566_v40, %v5036_v15  ;;  %v700_v6 = vrot.slane %v5191_v19, 1 }
  0x3a   : > { %9460 = vst [vmem:[#allocation27_spill] sm:$0xff] %v5116_v44  ;;  %9461 = vst [vmem:[#allocation28_spill] sm:$0xff] %v5120_v45  ;;  %v5206_v56 = vmax.f32 %v565_v39, %v4994_v63  ;;  %v5212_v4 = vmax.f32 %v567_v51, %v5038_v16  ;;  %v5215_v5 = vmax.f32 %v568_v52, %v4996_v0  ;;  %v699_v23 = vrot.slane %v5182_v60, 1 }
  0x3b   : > { %9462 = vst [vmem:[#allocation29_spill] sm:$0xff] %v5124_v46  ;;  %v701_v8 = vrot.slane %v5200_v50, 1  ;;  %v722_v63 = vrot.slane %v5176_v3, 1  ;;  %v702_v7 = vrot.slane %v5209_v57, 1  ;;  %v723_v13 = vrot.slane %v5185_v1, 1  ;;  %vm8978_vm9 = vmand %vm4132_vm4, %vm4133_vm5 }
  0x3c   : > { %v724_v14 = vrot.slane %v5194_v48, 1  ;;  %v725_v15 = vrot.slane %v5203_v55, 1  ;;  %v726_v0 = vrot.slane %v5212_v4, 1  ;;  %v746_v16 = vrot.slane %v5179_v59, 1  ;;  %vm8986_vm10 = vmor %vm3808_vm6, %vm3809_vm7 }
  0x3d   : > { %v747_v24 = vrot.slane %v5188_v2, 1  ;;  %v748_v31 = vrot.slane %v5197_v49, 1  ;;  %v749_v17 = vrot.slane %v5206_v56, 1  ;;  %v750_v39 = vrot.slane %v5215_v5, 1  ;;  %vm8994_vm11 = vmand %vm4139_vm8, %vm3808_vm6 }
  0x3e   : > { %v797_v40 = vsel %vm772_vm2, %v698_v62, %v722_v63  ;;  %v798_v18 = vsel %vm772_vm2, %v699_v23, %v723_v13  ;;  %v773_v54 = vsel %vm772_vm2, %v722_v63, %v746_v16  ;;  %v799_v51 = vsel %vm772_vm2, %v700_v6, %v724_v14 }
  0x3f   : > { %v774_v61 = vsel %vm772_vm2, %v723_v13, %v747_v24  ;;  %v775_v47 = vsel %vm772_vm2, %v724_v14, %v748_v31  ;;  %v776_v52 = vsel %vm772_vm2, %v725_v15, %v749_v17  ;;  %v777_v58 = vsel %vm772_vm2, %v726_v0, %v750_v39 }
  0x40   : > { %v800_v46 = vsel %vm772_vm2, %v701_v8, %v725_v15  ;;  %v801_v63 = vsel %vm772_vm2, %v702_v7, %v726_v0  ;;  %v821_v13 = vsel %vm772_vm2, %v746_v16, %v698_v62  ;;  %v822_v14 = vsel %vm772_vm2, %v747_v24, %v699_v23 }
  0x41   : > { %v823_v45 = vsel %vm772_vm2, %v748_v31, %v700_v6  ;;  %v824_v44 = vsel %vm772_vm2, %v749_v17, %v701_v8  ;;  %v825_v15 = vsel %vm772_vm2, %v750_v39, %v702_v7  ;;  %v5264_v43 = vmax.f32 %v5173_v53, %v797_v40 }
  0x42   : > { %v5267_v0 = vmax.f32 %v5176_v3, %v773_v54  ;;  %v5270_v62 = vmax.f32 %v5179_v59, %v821_v13  ;;  %v5273_v23 = vmax.f32 %v5182_v60, %v798_v18  ;;  %v849_v6 = vmax.f32 %v5185_v1, %v774_v61 }
  0x43   : > { %v5277_v16 = vmax.f32 %v5188_v2, %v822_v14  ;;  %v5280_v8 = vmax.f32 %v5191_v19, %v799_v51  ;;  %v852_v7 = vmax.f32 %v5194_v48, %v775_v47  ;;  %v5284_v24 = vmax.f32 %v5197_v49, %v823_v45 }
  0x44   : > { %v5287_v31 = vmax.f32 %v5200_v50, %v800_v46  ;;  %v855_v17 = vmax.f32 %v5203_v55, %v776_v52  ;;  %v5291_v39 = vmax.f32 %v5206_v56, %v824_v44  ;;  %v5294_v40 = vmax.f32 %v5209_v57, %v801_v63 }
  0x45   : > { %v858_v18 = vmax.f32 %v5212_v4, %v777_v58  ;;  %v859_v54 = vmax.f32 %v5215_v5, %v825_v15  ;;  %v917_v61 = vrot.slane %v5264_v43, 6  ;;  %v918_v45 = vrot.slane %v5273_v23, 6 }
  0x46   : > { %v919_v47 = vrot.slane %v5280_v8, 6  ;;  %v920_v46 = vrot.slane %v5287_v31, 6  ;;  %v921_v51 = vrot.slane %v5294_v40, 6  ;;  %v941_v44 = vrot.slane %v5267_v0, 6 }
  0x47   : > { %v942_v52 = vrot.slane %v849_v6, 6  ;;  %v943_v13 = vrot.slane %v852_v7, 6  ;;  %v944_v63 = vrot.slane %v855_v17, 6  ;;  %v945_v14 = vrot.slane %v858_v18, 6 }
  0x48   : > { %v965_v58 = vrot.slane %v5270_v62, 6  ;;  %v966_v15 = vrot.slane %v5277_v16, 6  ;;  %v967_v42 = vrot.slane %v5284_v24, 6  ;;  %v968_v41 = vrot.slane %v5291_v39, 6 }
  0x49   : > { %v969_v38 = vrot.slane %v859_v54, 6  ;;  %v1014_v37 = vsel %vm989_vm3, %v917_v61, %v941_v44  ;;  %v1015_v36 = vsel %vm989_vm3, %v918_v45, %v942_v52  ;;  %v5320_v28 = vsel %vm989_vm3, %v919_v47, %v943_v13 }
  0x4a   : > { %v990_v10 = vsel %vm989_vm3, %v941_v44, %v965_v58  ;;  %v5314_v34 = vsel %vm989_vm3, %v942_v52, %v966_v15  ;;  %v5324_v33 = vsel %vm989_vm3, %v943_v13, %v967_v42  ;;  %v5328_v35 = vsel %vm989_vm3, %v944_v63, %v968_v41 }
  0x4b   : > { %v5332_v44 = vsel %vm989_vm3, %v945_v14, %v969_v38  ;;  %v5336_v22 = vsel %vm989_vm3, %v920_v46, %v944_v63  ;;  %v5340_v52 = vsel %vm989_vm3, %v921_v51, %v945_v14  ;;  %v1038_v13 = vsel %vm989_vm3, %v965_v58, %v917_v61 }
  0x4c   : > { %v1039_v32 = vsel %vm989_vm3, %v966_v15, %v918_v45  ;;  %v1040_v12 = vsel %vm989_vm3, %v967_v42, %v919_v47  ;;  %v1041_v9 = vsel %vm989_vm3, %v968_v41, %v920_v46  ;;  %v1042_v63 = vsel %vm989_vm3, %v969_v38, %v921_v51 }
  0x4d   : > { %v1062_v27 = vrot.slane %v5264_v43, 1  ;;  %v1063_v14 = vrot.slane %v5273_v23, 1  ;;  %v1064_v30 = vrot.slane %v5280_v8, 1  ;;  %v1065_v61 = vrot.slane %v5287_v31, 1 }
  0x4e   : > { %v1066_v58 = vrot.slane %v5294_v40, 1  ;;  %v1086_v45 = vrot.slane %v5267_v0, 1  ;;  %v1087_v15 = vrot.slane %v849_v6, 1  ;;  %v1088_v42 = vrot.slane %v852_v7, 1 }
  0x4f   : > { %v1089_v47 = vrot.slane %v855_v17, 1  ;;  %v1090_v21 = vrot.slane %v858_v18, 1  ;;  %v1110_v41 = vrot.slane %v5270_v62, 1  ;;  %v1111_v38 = vrot.slane %v5277_v16, 1 }
  0x50   : > { %v1112_v43 = vrot.slane %v5284_v24, 1  ;;  %v1113_v23 = vrot.slane %v5291_v39, 1  ;;  %v1114_v46 = vrot.slane %v859_v54, 1  ;;  %v1158_v8 = vsel %vm772_vm2, %v1062_v27, %v1086_v45 }
  0x51   : > { %v1159_v31 = vsel %vm772_vm2, %v1063_v14, %v1087_v15  ;;  %v1160_v0 = vsel %vm772_vm2, %v1064_v30, %v1088_v42  ;;  %v1134_v6 = vsel %vm772_vm2, %v1086_v45, %v1110_v41  ;;  %v1135_v62 = vsel %vm772_vm2, %v1087_v15, %v1111_v38 }
  0x52   : > { %v1136_v16 = vsel %vm772_vm2, %v1088_v42, %v1112_v43  ;;  %v1137_v7 = vsel %vm772_vm2, %v1089_v47, %v1113_v23  ;;  %v1138_v24 = vsel %vm772_vm2, %v1090_v21, %v1114_v46  ;;  %v1161_v17 = vsel %vm772_vm2, %v1065_v61, %v1089_v47 }
  0x53   : > { %v1162_v39 = vsel %vm772_vm2, %v1066_v58, %v1090_v21  ;;  %v1182_v40 = vsel %vm772_vm2, %v1110_v41, %v1062_v27  ;;  %v1183_v18 = vsel %vm772_vm2, %v1111_v38, %v1063_v14  ;;  %v1184_v54 = vsel %vm772_vm2, %v1112_v43, %v1064_v30 }
  0x54   : > { %v1185_v51 = vsel %vm772_vm2, %v1113_v23, %v1065_v61  ;;  %v1186_v45 = vsel %vm772_vm2, %v1114_v46, %v1066_v58  ;;  %v1206_v15 = vmax.f32 %v1038_v13, %v1158_v8  ;;  %v1207_v42 = vmax.f32 %v1014_v37, %v1134_v6  ;;  %v9467_v6 = vld [vmem:[#allocation14_spill] sm:$0xff] }
  0x55   : > { %v1208_v47 = vmax.f32 %v990_v10, %v1182_v40  ;;  %v1209_v26 = vmax.f32 %v1039_v32, %v1159_v31  ;;  %v1210_v21 = vmax.f32 %v1015_v36, %v1135_v62  ;;  %v1211_v29 = vmax.f32 %v5314_v34, %v1183_v18  ;;  %v9465_v31 = vld [vmem:[#allocation10_spill] sm:$0xff] }
  0x56   : > { %v1212_v27 = vmax.f32 %v1040_v12, %v1160_v0  ;;  %v1213_v41 = vmax.f32 %v5320_v28, %v1136_v16  ;;  %v1214_v14 = vmax.f32 %v5324_v33, %v1184_v54  ;;  %v1215_v38 = vmax.f32 %v1041_v9, %v1161_v17  ;;  %v9466_v0 = vld [vmem:[#allocation8_spill] sm:$0xff]  ;;  %v9470_v17 = vld [vmem:[#allocation5_spill] sm:$0xff] }
  0x57   : > { %v1216_v30 = vmax.f32 %v5336_v22, %v1137_v7  ;;  %v1217_v61 = vmax.f32 %v5328_v35, %v1185_v51  ;;  %v1218_v43 = vmax.f32 %v1042_v63, %v1162_v39  ;;  %v1219_v58 = vmax.f32 %v5340_v52, %v1138_v24  ;;  %v9463_v52 = vld [vmem:[#allocation13_spill] sm:$0xff]  ;;  %v9469_v24 = vld [vmem:[#allocation11_spill] sm:$0xff] }
  0x58   : > { %v1220_v37 = vmax.f32 %v5332_v44, %v1186_v45  ;;  %v1278_v10 = vmax.f32 %v1206_v15, %v5173_v53  ;;  %v1279_v32 = vmax.f32 %v1207_v42, %v5176_v3  ;;  %v1280_v12 = vmax.f32 %v1208_v47, %v5179_v59  ;;  %v9471_v39 = vld [vmem:[#allocation7_spill] sm:$0xff] }
  0x59   : > { %v1281_v28 = vmax.f32 %v1209_v26, %v5182_v60  ;;  %v1282_v33 = vmax.f32 %v1210_v21, %v5185_v1  ;;  %v1283_v9 = vmax.f32 %v1211_v29, %v5188_v2  ;;  %v1284_v22 = vmax.f32 %v1212_v27, %v5191_v19  ;;  %v9476_v21 = vld [vmem:[#allocation15_spill] sm:$0xff]  ;;  %v9477_v27 = vld [vmem:[#allocation9_spill] sm:$0xff] }
  0x5a   : > { %v1285_v34 = vmax.f32 %v1213_v41, %v5194_v48  ;;  %v1286_v35 = vmax.f32 %v1214_v14, %v5197_v49  ;;  %v1287_v36 = vmax.f32 %v1215_v38, %v5200_v50  ;;  %v1288_v53 = vmax.f32 %v1216_v30, %v5203_v55  ;;  %v9478_v41 = vld [vmem:[#allocation18_spill] sm:$0xff]  ;;  %v9480_v30 = vld [vmem:[#allocation16_spill] sm:$0xff] }
  0x5b   : > { %v1289_v3 = vmax.f32 %v1217_v61, %v5206_v56  ;;  %v5412_v59 = vmax.f32 %v1218_v43, %v5209_v57  ;;  %v5415_v26 = vmax.f32 %v1219_v58, %v5212_v4  ;;  %v5418_v29 = vmax.f32 %v1220_v37, %v5215_v5  ;;  %v9481_v61 = vld [vmem:[#allocation12_spill] sm:$0xff]  ;;  %v9482_v43 = vld [vmem:[#allocation19_spill] sm:$0xff] }
  0x5c   : > { %v1873_v60 = vmax.f32 %v1278_v10, %v1281_v28  ;;  %v1874_v1 = vmax.f32 %v1279_v32, %v1282_v33  ;;  %v1875_v2 = vmax.f32 %v1280_v12, %v1283_v9  ;;  %v1876_v19 = vmax.f32 %v1281_v28, %v1284_v22  ;;  %v9484_v28 = vld [vmem:[#allocation17_spill] sm:$0xff] }
  0x5d   : > { %v1877_v48 = vmax.f32 %v1282_v33, %v1285_v34  ;;  %v1878_v49 = vmax.f32 %v1283_v9, %v1286_v35  ;;  %v1350_v50 = vpack.c.bf16 %v5415_v26, %v5412_v59  ;;  %v5422_v55 = vmax.f32 %v1284_v22, %v1287_v36  ;;  %v9485_v33 = vld [vmem:[#allocation6_spill] sm:$0xff]  ;;  %v9486_v9 = vld [vmem:[#allocation20_spill] sm:$0xff] }
  0x5e   : > { %v5424_v56 = vmax.f32 %v1285_v34, %v1288_v53  ;;  %v5426_v57 = vmax.f32 %v1286_v35, %v1289_v3  ;;  %v5429_v4 = vmax.f32 %v1287_v36, %v5412_v59  ;;  %v5432_v5 = vmax.f32 %v1288_v53, %v5415_v26 }
  0x5f   : > { %v5435_v44 = vmax.f32 %v1289_v3, %v5418_v29  ;;  %v9464_v13 = vmax.f32 %v5042_v20, %v9463_v52  ;;  %4614 = vmatprep.mubr.msk.bf16.mxu0 %vm272_vm1, %v1350_v50  ;;  %v1939_v23 = vmax.f32 %v1873_v60, %v5422_v55  ;;  %v9468_v62 = vmax.f32 %v9466_v0, %v9467_v6 }
  0x60   : > { %v1940_v46 = vmax.f32 %v1874_v1, %v5424_v56  ;;  %v1941_v8 = vmax.f32 %v1875_v2, %v5426_v57  ;;  %v5452_v7 = vmax.f32 %v1876_v19, %v5429_v4  ;;  %v5455_v20 = vmax.f32 %v1877_v48, %v5432_v5 }
  0x61   : > { %v5441_v63 = vmax.f32 %v9464_v13, %v5053_v25  ;;  %v642_v16 = vmax.f32 %v9468_v62, %v9465_v31  ;;  %v5458_v25 = vmax.f32 %v1878_v49, %v5435_v44  ;;  %v9472_v40 = vmax.f32 %v9470_v17, %v9471_v39  ;;  %v5702_v62 = vld [vmem:[%s4899_s25 + $0x38] sm:$0xff]  }
  0x62   : > { %v5465_v54 = vmax.f32 %v1939_v23, %v5412_v59  ;;  %v5468_v51 = vmax.f32 %v1940_v46, %v5415_v26  ;;  %v5471_v45 = vmax.f32 %v1941_v8, %v5418_v29  ;;  %v9479_v14 = vmax.f32 %v9477_v27, %v9478_v41 }
  0x63   : > { %v643_v18 = vmax.f32 %v9472_v40, %v9469_v24  ;;  %v703_v15 = vrot.slane %v5441_v63, 1  ;;  %v727_v42 = vrot.slane %v642_v16, 1  ;;  %v9483_v58 = vmax.f32 %v9481_v61, %v9482_v43 }
  0x64   : > { %9473 = vst [vmem:[#allocation13_spill] sm:$0xff] %v5465_v54  ;;  %9474 = vst [vmem:[#allocation10_spill] sm:$0xff] %v5468_v51  ;;  %v5478_v38 = vmax.f32 %v9479_v14, %v9476_v21  ;;  %v2059_v10 = vrot.slane %v5465_v54, 1  ;;  %v2079_v32 = vrot.slane %v5468_v51, 1  ;;  %v2099_v12 = vrot.slane %v5471_v45, 1  ;;  %v9491_v14 = vld [vmem:[#allocation21_spill] sm:$0xff] }
  0x65   : > { %9475 = vst [vmem:[#allocation8_spill] sm:$0xff] %v5471_v45  ;;  %v751_v47 = vrot.slane %v643_v18, 1  ;;  %v5484_v37 = vmax.f32 %v9483_v58, %v9480_v30  ;;  %v9487_v22 = vmax.f32 %v9485_v33, %v9486_v9  ;;  %v802_v36 = vsel %vm772_vm2, %v703_v15, %v727_v42  ;;  %v9492_v30 = vld [vmem:[#allocation24_spill] sm:$0xff] }
  0x66   : > { %v704_v3 = vrot.slane %v5478_v38, 1  ;;  %v2119_v60 = vsel %vm772_vm2, %v2079_v32, %v2099_v12  ;;  %v2139_v1 = vsel %vm772_vm2, %v2059_v10, %v2079_v32  ;;  %v2159_v2 = vsel %vm772_vm2, %v2099_v12, %v2059_v10  ;;  %v9494_v10 = vld [vmem:[#allocation22_spill] sm:$0xff]  ;;  %v9495_v32 = vld [vmem:[#allocation25_spill] sm:$0xff] }
  0x67   : > { %v5493_v34 = vmax.f32 %v9487_v22, %v9484_v28  ;;  %v778_v35 = vsel %vm772_vm2, %v727_v42, %v751_v47  ;;  %v826_v53 = vsel %vm772_vm2, %v751_v47, %v703_v15  ;;  %v860_v19 = vmax.f32 %v5441_v63, %v802_v36 }
  0x68   : > { %v5510_v48 = vmax.f32 %v5465_v54, %v2139_v1  ;;  %v5513_v49 = vmax.f32 %v5468_v51, %v2119_v60  ;;  %v5516_v50 = vmax.f32 %v5471_v45, %v2159_v2  ;;  %v861_v13 = vmax.f32 %v642_v16, %v778_v35 }
  0x69   : > { %v862_v23 = vmax.f32 %v643_v18, %v826_v53  ;;  %v922_v46 = vrot.slane %v860_v19, 6  ;;  %v1067_v8 = vrot.slane %v860_v19, 1  ;;  %v728_v31 = vrot.slane %v5484_v37, 1 }
  0x6a   : > { %9488 = vst [vmem:[#allocation14_spill] sm:$0xff] %v5510_v48  ;;  %9489 = vst [vmem:[#allocation11_spill] sm:$0xff] %v5513_v49  ;;  %v946_v40 = vrot.slane %v861_v13, 6  ;;  %v1091_v42 = vrot.slane %v861_v13, 1  ;;  %v752_v21 = vrot.slane %v5493_v34, 1  ;;  %v9493_v61 = vmax.f32 %v9463_v52, %v9492_v30  ;;  %v5948_v49 = vld [vmem:[#allocation2 + $0x160] sm:$0xff] }
  0x6b   : > { %9490 = vst [vmem:[#allocation5_spill] sm:$0xff] %v5516_v50  ;;  %v970_v15 = vrot.slane %v862_v23, 6  ;;  %v1115_v47 = vrot.slane %v862_v23, 1  ;;  %v803_v27 = vsel %vm772_vm2, %v704_v3, %v728_v31  ;;  %v9496_v12 = vmax.f32 %v9467_v6, %v9495_v32 }
  0x6c   : > { %v5530_v58 = vmax.f32 %v9493_v61, %v9491_v14  ;;  %v1019_v22 = vsel %vm989_vm3, %v922_v46, %v946_v40  ;;  %v1163_v36 = vsel %vm772_vm2, %v1067_v8, %v1091_v42  ;;  %v779_v60 = vsel %vm772_vm2, %v728_v31, %v752_v21 }
  0x6d   : > { %v5536_v28 = vmax.f32 %v9496_v12, %v9494_v10  ;;  %v995_v33 = vsel %vm989_vm3, %v946_v40, %v970_v15  ;;  %v1043_v35 = vsel %vm989_vm3, %v970_v15, %v922_v46  ;;  %v1139_v52 = vsel %vm772_vm2, %v1091_v42, %v1115_v47  ;;  %v9497_v15 = vld [vmem:[#allocation23_spill] sm:$0xff]  ;;  %v9498_v42 = vld [vmem:[#allocation26_spill] sm:$0xff] }
  0x6e   : > { %v1187_v6 = vsel %vm772_vm2, %v1115_v47, %v1067_v8  ;;  %v1222_v53 = vmax.f32 %v1019_v22, %v1139_v52  ;;  %v1221_v1 = vmax.f32 %v1043_v35, %v1163_v36  ;;  %v827_v19 = vsel %vm772_vm2, %v752_v21, %v704_v3  ;;  %v9501_v36 = vld [vmem:[#allocation3_spill] sm:$0xff] }
  0x6f   : > { %v1223_v2 = vmax.f32 %v995_v33, %v1187_v6  ;;  %v863_v13 = vmax.f32 %v5478_v38, %v803_v27  ;;  %v864_v46 = vmax.f32 %v5484_v37, %v779_v60  ;;  %v865_v40 = vmax.f32 %v5493_v34, %v827_v19 }
  0x70   : > { %v1294_v23 = vmax.f32 %v1222_v53, %v642_v16  ;;  %v9499_v8 = vmax.f32 %v9471_v39, %v9498_v42  ;;  %v1293_v31 = vmax.f32 %v1221_v1, %v5441_v63  ;;  %v729_v1 = vrot.slane %v5536_v28, 1 }
  0x71   : > { %v1295_v61 = vmax.f32 %v1223_v2, %v643_v18  ;;  %v923_v12 = vrot.slane %v863_v13, 6  ;;  %v1068_v33 = vrot.slane %v863_v13, 1  ;;  %v947_v21 = vrot.slane %v864_v46, 6 }
  0x72   : > { %v5561_v47 = vmax.f32 %v9499_v8, %v9497_v15  ;;  %v5565_v3 = vmax.f32 %v5415_v26, %v1294_v23  ;;  %v5568_v16 = vmax.f32 %v5455_v20, %v1294_v23  ;;  %v971_v27 = vrot.slane %v865_v40, 6 }
  0x73   : > { %v1351_v22 = vpack.c.bf16 %v1294_v23, %v1293_v31  ;;  %v5571_v35 = vmax.f32 %v5412_v59, %v1293_v31  ;;  %v5574_v39 = vmax.f32 %v5418_v29, %v1295_v61  ;;  %v5577_v63 = vmax.f32 %v5452_v7, %v1293_v31 }
  0x74   : > { %9500 = vst [vmem:[#allocation7_spill] sm:$0xff] %v5568_v16  ;;  %v1946_v18 = vmax.f32 %v5424_v56, %v5565_v3  ;;  %v5582_v26 = vmax.f32 %v5458_v25, %v1295_v61  ;;  %v2080_v20 = vrot.slane %v5568_v16, 1  ;;  %v996_v52 = vsel %vm989_vm3, %v947_v21, %v971_v27 }
  0x75   : > { %4615 = vmatmul.mubr.msk.bf16.vlgmr.msra.gmra.mxu0 %vm272_vm1, %v1351_v22  ;;  %v1945_v59 = vmax.f32 %v5422_v55, %v5571_v35  ;;  %v1947_v29 = vmax.f32 %v5426_v57, %v5574_v39  ;;  %v9287_v7 = vrot.slane %v5577_v63, 1  ;;  %v1020_v56 = vsel %vm989_vm3, %v923_v12, %v947_v21 }
  0x76   : > { %v9286_v25 = vrot.slane %v5582_v26, 1  ;;  %4681 = vmatpush3.bf16.msra.mxu0 %v9501_v36  ;;  %v1044_v6 = vsel %vm989_vm3, %v971_v27, %v923_v12  ;;  %v1092_v53 = vrot.slane %v864_v46, 1  ;;  %v1116_v60 = vrot.slane %v865_v40, 1 }
  0x77   : > { %v2140_v55 = vsel %vm772_vm2, %v9287_v7, %v2080_v20  ;;  %v705_v57 = vrot.slane %v5530_v58, 1  ;;  %v753_v2 = vrot.slane %v5561_v47, 1 }
  0x78   : > { %v2120_v19 = vsel %vm772_vm2, %v2080_v20, %v9286_v25  ;;  %v5611_v13 = vmax.f32 %v5577_v63, %v2140_v55  ;;  %v1140_v46 = vsel %vm772_vm2, %v1092_v53, %v1116_v60  ;;  %v1164_v40 = vsel %vm772_vm2, %v1068_v33, %v1092_v53 }
  0x79   : > { %v5618_v8 = vmax.f32 %v5568_v16, %v2120_v19  ;;  %v1188_v12 = vsel %vm772_vm2, %v1116_v60, %v1068_v33  ;;  %v1224_v21 = vmax.f32 %v1044_v6, %v1164_v40  ;;  %v1225_v27 = vmax.f32 %v1020_v56, %v1140_v46  ;;  %v5634_v56 = vld [vmem:[#allocation2 + $0x120] sm:$0xff] }
  0x7a   : > { %9502 = vst [vmem:[#allocation15_spill] sm:$0xff] %v5611_v13  ;;  %v1226_v22 = vmax.f32 %v996_v52, %v1188_v12  ;;  %v780_v20 = vsel %vm772_vm2, %v729_v1, %v753_v2  ;;  %v804_v36 = vsel %vm772_vm2, %v705_v57, %v729_v1  ;;  %v828_v55 = vsel %vm772_vm2, %v753_v2, %v705_v57  ;;  %v5636_v52 = vld [vmem:[#allocation2 + $0x128] sm:$0xff]  ;;  %v9504_v57 = vld [vmem:[#allocation27_spill] sm:$0xff] }
  0x7b   : > { %9503 = vst [vmem:[#allocation9_spill] sm:$0xff] %v5618_v8  ;;  %v5629_v53 = vmax.f32 %v1224_v21, %v5478_v38  ;;  %v1297_v19 = vmax.f32 %v1225_v27, %v5484_v37  ;;  %v866_v24 = vmax.f32 %v5530_v58, %v804_v36  ;;  %v867_v33 = vmax.f32 %v5536_v28, %v780_v20  ;;  %v9506_v37 = vld [vmem:[#allocation28_spill] sm:$0xff] }
  0x7c   : > { %v1298_v6 = vmax.f32 %v1226_v22, %v5493_v34  ;;  %v868_v60 = vmax.f32 %v5561_v47, %v828_v55  ;;  %v9505_v1 = vmax.f32 %v9478_v41, %v9504_v57  ;;  %v9507_v2 = vmax.f32 %v9482_v43, %v9506_v37 }
  0x7d   : > { %v1352_v40 = vpack.c.bf16 %v1297_v19, %v5629_v53  ;;  %v5654_v12 = vmax.f32 %v1293_v31, %v5629_v53  ;;  %v5656_v34 = vmax.f32 %v1294_v23, %v1297_v19  ;;  %v5659_v21 = vmax.f32 %v1945_v59, %v5629_v53 }
  0x7e   : > { %v5644_v38 = vmax.f32 %v9505_v1, %v5634_v56  ;;  %v5650_v46 = vmax.f32 %v9507_v2, %v5636_v52  ;;  %v5661_v27 = vmax.f32 %v1295_v61, %v1298_v6  ;;  %v5663_v41 = vmax.f32 %v1946_v18, %v1297_v19 }
  0x7f   : > { %9508 = vst [vmem:[#allocation18_spill] sm:$0xff] %v5659_v21  ;;  %v5665_v22 = vmax.f32 %v1947_v29, %v1298_v6  ;;  %v924_v20 = vrot.slane %v866_v24, 6  ;;  %4618 = vmatprep.mubr.msk.bf16.mxu0 %vm272_vm1, %v1352_v40  ;;  %v1948_v43 = vmax.f32 %v5429_v4, %v5654_v12  ;;  %v1949_v31 = vmax.f32 %v5432_v5, %v5656_v34 }
  0x80   : > { %9509 = vst [vmem:[#allocation16_spill] sm:$0xff] %v5663_v41  ;;  %v2061_v23 = vrot.slane %v5659_v21, 1  ;;  %v948_v36 = vrot.slane %v867_v33, 6  ;;  %v1950_v61 = vmax.f32 %v5435_v44, %v5661_v27  ;;  %v2081_v18 = vrot.slane %v5663_v41, 1 }
  0x81   : > { %v2101_v59 = vrot.slane %v5665_v22, 1  ;;  %v972_v29 = vrot.slane %v868_v60, 6  ;;  %v1069_v1 = vrot.slane %v866_v24, 1  ;;  %v1093_v4 = vrot.slane %v867_v33, 1 }
  0x82   : > { %v1021_v55 = vsel %vm989_vm3, %v924_v20, %v948_v36  ;;  %v1117_v2 = vrot.slane %v868_v60, 1  ;;  %v2141_v40 = vsel %vm772_vm2, %v2061_v23, %v2081_v18  ;;  %v706_v7 = vrot.slane %v5644_v38, 1 }
  0x83   : > { %v2121_v5 = vsel %vm772_vm2, %v2081_v18, %v2101_v59  ;;  %v5685_v44 = vsel %vm772_vm2, %v2101_v59, %v2061_v23  ;;  %v997_v17 = vsel %vm989_vm3, %v948_v36, %v972_v29  ;;  %v5690_v0 = vmax.f32 %v5659_v21, %v2141_v40  ;;  %v5699_v18 = vld [vmem:[#allocation2 + $0x130] sm:$0xff] }
  0x84   : > { %v5693_v24 = vmax.f32 %v5663_v41, %v2121_v5  ;;  %v1045_v33 = vsel %vm989_vm3, %v972_v29, %v924_v20  ;;  %v1141_v60 = vsel %vm772_vm2, %v1093_v4, %v1117_v2  ;;  %v1165_v23 = vsel %vm772_vm2, %v1069_v1, %v1093_v4  ;;  %v9512_v5 = vld [vmem:[#allocation29_spill] sm:$0xff] }
  0x85   : > { %9510 = vst [vmem:[#allocation12_spill] sm:$0xff] %v5690_v0  ;;  %v1189_v36 = vsel %vm772_vm2, %v1117_v2, %v1069_v1  ;;  %v1228_v59 = vmax.f32 %v1021_v55, %v1141_v60  ;;  %v9513_v40 = vmax.f32 %v9486_v9, %v9512_v5  ;;  %v1227_v20 = vmax.f32 %v1045_v33, %v1165_v23 }
  0x86   : > { %9511 = vst [vmem:[#allocation19_spill] sm:$0xff] %v5693_v24  ;;  %v1229_v29 = vmax.f32 %v997_v17, %v1189_v36  ;;  %v730_v41 = vrot.slane %v5650_v46, 1  ;;  %v341_v1 = vunpack.c.l.bf16 %v5702_v62  ;;  %v342_v55 = vunpack.c.h.bf16 %v5702_v62 }
  0x87   : > { %v5712_v25 = vmax.f32 %v9513_v40, %v5699_v18  ;;  %v5717_v21 = vmax.f32 %v1228_v59, %v5536_v28  ;;  %v5723_v2 = vmax.f32 %v1227_v20, %v5530_v58  ;;  %v5732_v33 = vmax.f32 %v9491_v14, %v5634_v56 }
  0x88   : > { %v5726_v9 = vmax.f32 %v1229_v29, %v5561_v47  ;;  %v805_v17 = vsel %vm772_vm2, %v706_v7, %v730_v41  ;;  %373 = vst.msk [vmem:[#allocation2 + $0x138] sm:$0xff] %vm272_vm1, %v341_v1  ;;  %374 = vst.msk [vmem:[#allocation2 + $0x140] sm:$0xff] %vm272_vm1, %v342_v55 }
  0x89   : > { %v754_v4 = vrot.slane %v5712_v25, 1  ;;  %v5735_v28 = vmax.f32 %v1297_v19, %v5717_v21  ;;  %v5738_v60 = vmax.f32 %v1949_v31, %v5717_v21  ;;  %v1353_v14 = vpack.c.bf16 %v5717_v21, %v5723_v2 }
  0x8a   : > { %v5750_v19 = vmax.f32 %v5629_v53, %v5723_v2  ;;  %v5753_v31 = vmax.f32 %v1298_v6, %v5726_v9  ;;  %v5756_v23 = vmax.f32 %v1948_v43, %v5723_v2  ;;  %v869_v59 = vmax.f32 %v5644_v38, %v805_v17 }
  0x8b   : > { %9514 = vst [vmem:[#allocation17_spill] sm:$0xff] %v5738_v60  ;;  %v781_v58 = vsel %vm772_vm2, %v730_v41, %v754_v4  ;;  %v829_v47 = vsel %vm772_vm2, %v754_v4, %v706_v7  ;;  %v1952_v7 = vmax.f32 %v5565_v3, %v5735_v28  ;;  %v5761_v41 = vmax.f32 %v1950_v61, %v5726_v9 }
  0x8c   : > { %9515 = vst [vmem:[#allocation6_spill] sm:$0xff] %v5756_v23  ;;  %v2082_v36 = vrot.slane %v5738_v60, 1  ;;  %4619 = vmatmul.mubr.msk.bf16.gmra.mxu0 %vm272_vm1, %v1353_v14  ;;  %v1951_v53 = vmax.f32 %v5571_v35, %v5750_v19  ;;  %v2062_v6 = vrot.slane %v5756_v23, 1  ;;  %v870_v43 = vmax.f32 %v5650_v46, %v781_v58 }
  0x8d   : > { %9516 = vst [vmem:[#allocation20_spill] sm:$0xff] %v5761_v41  ;;  %v871_v40 = vmax.f32 %v5712_v25, %v829_v47  ;;  %v2102_v3 = vrot.slane %v5761_v41, 1  ;;  %v925_v20 = vrot.slane %v869_v59, 6  ;;  %v1070_v61 = vrot.slane %v869_v59, 1 }
  0x8e   : > { %v1953_v29 = vmax.f32 %v5574_v39, %v5753_v31  ;;  %v2142_v4 = vsel %vm772_vm2, %v2062_v6, %v2082_v36  ;;  %v949_v1 = vrot.slane %v870_v43, 6  ;;  %v1094_v17 = vrot.slane %v870_v43, 1 }
  0x8f   : > { %v973_v55 = vrot.slane %v871_v40, 6  ;;  %v2122_v35 = vsel %vm772_vm2, %v2082_v36, %v2102_v3  ;;  %v5780_v58 = vsel %vm772_vm2, %v2102_v3, %v2062_v6  ;;  %v5783_v47 = vmax.f32 %v5756_v23, %v2142_v4  ;;  %v5806_v16 = vld [vmem:[#allocation2 + $0x140] sm:$0xff] }
  0x90   : > { %v1118_v14 = vrot.slane %v871_v40, 1  ;;  %v5786_v39 = vmax.f32 %v5738_v60, %v2122_v35  ;;  %v1022_v43 = vsel %vm989_vm3, %v925_v20, %v949_v1  ;;  %v1166_v3 = vsel %vm772_vm2, %v1070_v61, %v1094_v17 }
  0x91   : > { %9517 = vst [vmem:[#allocation21_spill] sm:$0xff] %v5783_v47  ;;  %v998_v59 = vsel %vm989_vm3, %v949_v1, %v973_v55  ;;  %v1046_v36 = vsel %vm989_vm3, %v973_v55, %v925_v20  ;;  %v5802_v4 = vmax.f32 %v9494_v10, %v5636_v52  ;;  %v5804_v1 = vld [vmem:[#allocation2 + $0x138] sm:$0xff]  ;;  %v5810_v20 = vmax.f32 %v9497_v15, %v5699_v18  ;;  %v5813_v55 = vld [vmem:[%s4899_s25 + $0x40] sm:$0xff]  }
  0x92   : > { %9518 = vst [vmem:[#allocation24_spill] sm:$0xff] %v5786_v39  ;;  %v1142_v6 = vsel %vm772_vm2, %v1094_v17, %v1118_v14  ;;  %v1190_v40 = vsel %vm772_vm2, %v1118_v14, %v1070_v61  ;;  %v1230_v35 = vmax.f32 %v1046_v36, %v1166_v3  ;;  %v581_v61 = vmax.f32 %v9492_v30, %v5732_v33 }
  0x93   : > { %v1231_v60 = vmax.f32 %v1022_v43, %v1142_v6  ;;  %v1232_v23 = vmax.f32 %v998_v59, %v1190_v40  ;;  %v582_v10 = vmax.f32 %v9495_v32, %v5802_v4  ;;  %v5828_v43 = vld [vmem:[#allocation2 + $0x148] sm:$0xff]  ;;  %v583_v15 = vmax.f32 %v9498_v42, %v5810_v20 }
  0x94   : > { %v5820_v17 = vmax.f32 %v1230_v35, %v5644_v38  ;;  %v5833_v36 = vmax.f32 %v581_v61, %v5804_v1  ;;  %v9519_v32 = vld [vmem:[#allocation4_spill] sm:$0xff]  ;;  %v343_v38 = vunpack.c.l.bf16 %v5813_v55 }
  0x95   : > { %v5823_v14 = vmax.f32 %v1231_v60, %v5650_v46  ;;  %v5826_v59 = vmax.f32 %v1232_v23, %v5712_v25  ;;  %v5836_v30 = vmax.f32 %v582_v10, %v5806_v16  ;;  %4660 = vmatprep.mubr.msk.bf16.mxu1 %vm272_vm1, %v9519_v32  ;;  %v344_v46 = vunpack.c.h.bf16 %v5813_v55 }
  0x96   : > { %v5846_v60 = vmax.f32 %v5723_v2, %v5820_v17  ;;  %4661 = vmatmul.mubr.msk.bf16.gmra.mxu1 %vm272_vm1, %v5702_v62  ;;  %v5859_v6 = vmax.f32 %v1951_v53, %v5820_v17  ;;  %v655_v40 = vmax.f32 %v583_v15, %v5828_v43  ;;  %375 = vst.msk [vmem:[#allocation2 + $0x150] sm:$0xff] %vm272_vm1, %v343_v38 }
  0x97   : > { %v1354_v25 = vpack.c.bf16 %v5823_v14, %v5820_v17  ;;  %v5850_v42 = vmax.f32 %v5717_v21, %v5823_v14  ;;  %v5854_v23 = vmax.f32 %v5726_v9, %v5826_v59  ;;  %v5862_v3 = vmax.f32 %v1952_v7, %v5823_v14  ;;  %376 = vst.msk [vmem:[#allocation2 + $0x158] sm:$0xff] %vm272_vm1, %v344_v46 }
  0x98   : > { %v5865_v2 = vmax.f32 %v1953_v29, %v5826_v59  ;;  %v707_v21 = vrot.slane %v5833_v36, 1  ;;  %v731_v62 = vrot.slane %v5836_v30, 1  ;;  %v9295_v53 = vrot.slane %v5859_v6, 1  ;;  %4664 = vmatprep.mubr.msk.bf16.mxu1 %vm272_vm1, %v5813_v55 }
  0x99   : > { %9520 = vst [vmem:[#allocation22_spill] sm:$0xff] %v5862_v3  ;;  %4622 = vmatprep.mubr.msk.bf16.mxu0 %vm272_vm1, %v1354_v25  ;;  %v2083_v29 = vrot.slane %v5862_v3, 1  ;;  %v755_v61 = vrot.slane %v655_v40, 1  ;;  %v1956_v15 = vmax.f32 %v5661_v27, %v5854_v23  ;;  %v5886_v32 = vmax.f32 %v5634_v56, %v5804_v1 }
  0x9a   : > { %v9293_v35 = vrot.slane %v5865_v2, 1  ;;  %v806_v10 = vsel %vm772_vm2, %v707_v21, %v731_v62  ;;  %v5890_v38 = vmax.f32 %v5636_v52, %v5806_v16 }
  0x9b   : > { %v2143_v25 = vsel %vm772_vm2, %v9295_v53, %v2083_v29  ;;  %v782_v27 = vsel %vm772_vm2, %v731_v62, %v755_v61  ;;  %v830_v56 = vsel %vm772_vm2, %v755_v61, %v707_v21  ;;  %v872_v9 = vmax.f32 %v5833_v36, %v806_v10  ;;  %v5921_v61 = vld [vmem:[%s4899_s25 + $0x48] sm:$0xff]  }
  0x9c   : > { %v2123_v46 = vsel %vm772_vm2, %v2083_v29, %v9293_v35  ;;  %v5905_v7 = vmax.f32 %v5859_v6, %v2143_v25  ;;  %v873_v35 = vmax.f32 %v5836_v30, %v782_v27  ;;  %v874_v45 = vmax.f32 %v655_v40, %v830_v56 }
  0x9d   : > { %v5908_v52 = vmax.f32 %v5862_v3, %v2123_v46  ;;  %v5914_v29 = vmax.f32 %v5699_v18, %v5828_v43  ;;  %v584_v62 = vmax.f32 %v9504_v57, %v5886_v32  ;;  %v585_v21 = vmax.f32 %v9506_v37, %v5890_v38  ;;  %v5923_v10 = vld [vmem:[#allocation2 + $0x150] sm:$0xff] }
  0x9e   : > { %9521 = vst [vmem:[#allocation25_spill] sm:$0xff] %v5905_v7  ;;  %v926_v25 = vrot.slane %v872_v9, 6  ;;  %v950_v46 = vrot.slane %v873_v35, 6  ;;  %v1071_v53 = vrot.slane %v872_v9, 1  ;;  %v1095_v3 = vrot.slane %v873_v35, 1  ;;  %v5925_v51 = vld [vmem:[#allocation2 + $0x158] sm:$0xff]  ;;  %4665 = vmatmul.mubr.msk.bf16.gmra.mxu1 %vm272_vm1, %v5921_v61 }
  0x9f   : > { %9522 = vst [vmem:[#allocation23_spill] sm:$0xff] %v5908_v52  ;;  %v974_v27 = vrot.slane %v874_v45, 6  ;;  %v1119_v56 = vrot.slane %v874_v45, 1  ;;  %v586_v18 = vmax.f32 %v9512_v5, %v5914_v29  ;;  %v5930_v57 = vmax.f32 %v584_v62, %v5923_v10 }
  0xa0   : > { %v1023_v37 = vsel %vm989_vm3, %v926_v25, %v950_v46  ;;  %v1167_v54 = vsel %vm772_vm2, %v1071_v53, %v1095_v3  ;;  %v5937_v9 = vmax.f32 %v585_v21, %v5925_v51  ;;  %v345_v35 = vunpack.c.l.bf16 %v5921_v61 }
  0xa1   : > { %v999_v45 = vsel %vm989_vm3, %v950_v46, %v974_v27  ;;  %v1047_v5 = vsel %vm989_vm3, %v974_v27, %v926_v25  ;;  %v1143_v62 = vsel %vm772_vm2, %v1095_v3, %v1119_v56  ;;  %v1191_v48 = vsel %vm772_vm2, %v1119_v56, %v1071_v53 }
  0xa2   : > { %v1233_v50 = vmax.f32 %v1047_v5, %v1167_v54  ;;  %v1234_v52 = vmax.f32 %v1023_v37, %v1143_v62  ;;  %v1235_v21 = vmax.f32 %v999_v45, %v1191_v48  ;;  %v5951_v39 = vmax.f32 %v586_v18, %v5948_v49  ;;  %377 = vst.msk [vmem:[#allocation2 + $0x168] sm:$0xff] %vm272_vm1, %v345_v35 }
  0xa3   : > { %v708_v46 = vrot.slane %v5930_v57, 1  ;;  %v732_v25 = vrot.slane %v5937_v9, 1  ;;  %v346_v27 = vunpack.c.h.bf16 %v5921_v61  ;;  %v5959_v3 = vmax.f32 %v5804_v1, %v5923_v10 }
  0xa4   : > { %v5962_v53 = vmax.f32 %v1233_v50, %v5833_v36  ;;  %v5965_v54 = vmax.f32 %v1234_v52, %v5836_v30  ;;  %v5967_v48 = vmax.f32 %v1235_v21, %v655_v40  ;;  %v756_v56 = vrot.slane %v5951_v39, 1 }
  0xa5   : > { %v807_v18 = vsel %vm772_vm2, %v708_v46, %v732_v25  ;;  %378 = vst.msk [vmem:[#allocation2 + $0x170] sm:$0xff] %vm272_vm1, %v346_v27  ;;  %v5975_v37 = vmax.f32 %v5806_v16, %v5925_v51  ;;  %v5979_v50 = vmax.f32 %v5828_v43, %v5948_v49  ;;  %v9523_v43 = vmax.f32 %v5654_v12, %v5846_v60 }
  0xa6   : > { %v1355_v36 = vpack.c.bf16 %v5965_v54, %v5962_v53  ;;  %v5987_v30 = vmax.f32 %v5820_v17, %v5962_v53  ;;  %v5991_v40 = vmax.f32 %v5823_v14, %v5965_v54  ;;  %v5995_v16 = vmax.f32 %v5826_v59, %v5967_v48 }
  0xa7   : > { %v2014_v52 = vmax.f32 %v9523_v43, %v5962_v53  ;;  %v9524_v35 = vmax.f32 %v5656_v34, %v5850_v42  ;;  %v6006_v17 = vmax.f32 %v1956_v15, %v5967_v48  ;;  %v783_v14 = vsel %vm772_vm2, %v732_v25, %v756_v56 }
  0xa8   : > { %4623 = vmatmul.mubr.msk.bf16.gmra.mxu0 %vm272_vm1, %v1355_v36  ;;  %v831_v59 = vsel %vm772_vm2, %v756_v56, %v708_v46  ;;  %v875_v5 = vmax.f32 %v5930_v57, %v807_v18  ;;  %v876_v12 = vmax.f32 %v5937_v9, %v783_v14  ;;  %v1957_v62 = vmax.f32 %v5750_v19, %v5987_v30 }
  0xa9   : > { %v2015_v45 = vmax.f32 %v9524_v35, %v5965_v54  ;;  %9525 = vst [vmem:[#allocation26_spill] sm:$0xff] %v6006_v17  ;;  %v2064_v34 = vrot.slane %v2014_v52, 1  ;;  %v2104_v15 = vrot.slane %v6006_v17, 1  ;;  %v877_v27 = vmax.f32 %v5951_v39, %v831_v59 }
  0xaa   : > { %v927_v43 = vrot.slane %v875_v5, 6  ;;  %v951_v25 = vrot.slane %v876_v12, 6  ;;  %v1072_v35 = vrot.slane %v875_v5, 1  ;;  %v1096_v36 = vrot.slane %v876_v12, 1 }
  0xab   : > { %v2084_v21 = vrot.slane %v2015_v45, 1  ;;  %v2164_v18 = vsel %vm772_vm2, %v2104_v15, %v2064_v34  ;;  %v975_v19 = vrot.slane %v877_v27, 6  ;;  %v1120_v8 = vrot.slane %v877_v27, 1 }
  0xac   : > { %v2196_v24 = vmax.f32 %v6006_v17, %v2164_v18  ;;  %v1024_v59 = vsel %vm989_vm3, %v927_v43, %v951_v25 }
  0xad   : > { %v2124_v46 = vsel %vm772_vm2, %v2084_v21, %v2104_v15  ;;  %v2144_v56 = vsel %vm772_vm2, %v2064_v34, %v2084_v21  ;;  %v1000_v5 = vsel %vm989_vm3, %v951_v25, %v975_v19  ;;  %v1048_v12 = vsel %vm989_vm3, %v975_v19, %v927_v43 }
  0xae   : > { %v2194_v14 = vmax.f32 %v2014_v52, %v2144_v56  ;;  %v2195_v1 = vmax.f32 %v2015_v45, %v2124_v46  ;;  %v1168_v21 = vsel %vm772_vm2, %v1072_v35, %v1096_v36  ;;  %v2284_v15 = vrot.slane %v2196_v24, 6 }
  0xaf   : > { %v2404_v47 = vrot.slane %v2196_v24, 1  ;;  %v1144_v18 = vsel %vm772_vm2, %v1096_v36, %v1120_v8  ;;  %v1192_v17 = vsel %vm772_vm2, %v1120_v8, %v1072_v35  ;;  %v1236_v19 = vmax.f32 %v1048_v12, %v1168_v21 }
  0xb0   : > { %v2244_v7 = vrot.slane %v2194_v14, 6  ;;  %v2264_v34 = vrot.slane %v2195_v1, 6  ;;  %v2364_v56 = vrot.slane %v2194_v14, 1  ;;  %v2384_v46 = vrot.slane %v2195_v1, 1 }
  0xb1   : > { %v1237_v35 = vmax.f32 %v1024_v59, %v1144_v18  ;;  %v1238_v0 = vmax.f32 %v1000_v5, %v1192_v17  ;;  %v1958_v21 = vmax.f32 %v5735_v28, %v5991_v40  ;;  %v6073_v17 = vld [vmem:[#allocation2 + $0x168] sm:$0xff]  ;;  %v9533_v5 = vmax.f32 %v5732_v33, %v5959_v3 }
  0xb2   : > { %v6040_v25 = vsel %vm989_vm3, %v2264_v34, %v2284_v15  ;;  %v2324_v27 = vsel %vm989_vm3, %v2244_v7, %v2264_v34  ;;  %v2344_v43 = vsel %vm989_vm3, %v2284_v15, %v2244_v7  ;;  %v2424_v24 = vsel %vm772_vm2, %v2384_v46, %v2404_v47 }
  0xb3   : > { %9526 = vst [vmem:[#allocation3_spill] sm:$0xff] %v6040_v25  ;;  %v2444_v1 = vsel %vm772_vm2, %v2364_v56, %v2384_v46  ;;  %v6052_v8 = vsel %vm772_vm2, %v2404_v47, %v2364_v56  ;;  %v2495_v14 = vmax.f32 %v2324_v27, %v2424_v24  ;;  %v6057_v7 = vmax.f32 %v1236_v19, %v5930_v57  ;;  %v6075_v57 = vld [vmem:[#allocation2 + $0x170] sm:$0xff]  ;;  %v6180_v19 = vld [vmem:[%s4899_s25 + $0x60] sm:$0xff]  }
  0xb4   : > { %9527 = vst [vmem:[#allocation27_spill] sm:$0xff] %v6052_v8  ;;  %v2494_v36 = vmax.f32 %v2344_v43, %v2444_v1  ;;  %v6060_v12 = vmax.f32 %v1237_v35, %v5937_v9  ;;  %v1959_v47 = vmax.f32 %v5753_v31, %v5995_v16  ;;  %v6071_v56 = vmax.f32 %v1238_v0, %v5951_v39  ;;  %v6092_v39 = vld [vmem:[#allocation2 + $0x178] sm:$0xff]  ;;  %v260_v24 = vld [vmem:[%s4899_s25 + $0x50] sm:$0xff]  }
  0xb5   : > { %v6068_v59 = vmax.f32 %v2495_v14, %v2015_v45  ;;  %v588_v9 = vmax.f32 %v5802_v4, %v5975_v37  ;;  %v6083_v31 = vmax.f32 %v5962_v53, %v6057_v7  ;;  %v6090_v0 = vmax.f32 %v1957_v62, %v6057_v7  ;;  %4668 = vmatprep.mubr.msk.bf16.mxu1 %vm272_vm1, %v260_v24 }
  0xb6   : > { %v6066_v15 = vmax.f32 %v2494_v36, %v2014_v52  ;;  %v1356_v28 = vpack.c.bf16 %v6060_v12, %v6057_v7  ;;  %v6087_v52 = vmax.f32 %v5965_v54, %v6060_v12  ;;  %v6096_v4 = vmax.f32 %v5967_v48, %v6071_v56 }
  0xb7   : > { %9529 = vst [vmem:[#allocation29_spill] sm:$0xff] %v6068_v59  ;;  %9530 = vst [vmem:[#allocation4_spill] sm:$0xff] %v6090_v0  ;;  %v6099_v45 = vmax.f32 %v1958_v21, %v6060_v12  ;;  %v6102_v53 = vmax.f32 %v1959_v47, %v6071_v56  ;;  %v589_v54 = vmax.f32 %v5810_v20, %v5979_v50  ;;  %v9313_v62 = vrot.slane %v6090_v0, 1 }
  0xb8   : > { %9528 = vst [vmem:[#allocation28_spill] sm:$0xff] %v6066_v15  ;;  %4626 = vmatprep.mubr.msk.bf16.mxu0 %vm272_vm1, %v1356_v28  ;;  %v659_v46 = vmax.f32 %v9533_v5, %v6073_v17  ;;  %v660_v48 = vmax.f32 %v588_v9, %v6075_v57  ;;  %v262_v5 = vld [vmem:[%s4899_s25 + $0x58] sm:$0xff]   ;;  %v6151_v55 = vmax.f32 %v5923_v10, %v6073_v17  ;;  %v6162_v10 = vld [vmem:[#allocation2 + $0x190] sm:$0xff] }
  0xb9   : > { %9531 = vst [vmem:[#allocation30_spill] sm:$0xff] %v6099_v45  ;;  %9532 = vst [vmem:[#allocation31_spill] sm:$0xff] %v6102_v53  ;;  %v2085_v27 = vrot.slane %v6099_v45, 1  ;;  %v9312_v43 = vrot.slane %v6102_v53, 1  ;;  %v661_v20 = vmax.f32 %v589_v54, %v6092_v39  ;;  %v347_v54 = vunpack.c.l.bf16 %v260_v24  ;;  %4669 = vmatmul.mubr.msk.bf16.gmra.mxu1 %vm272_vm1, %v262_v5 }
  0xba   : > { %v709_v1 = vrot.slane %v659_v46, 1  ;;  %v733_v35 = vrot.slane %v660_v48, 1  ;;  %v6155_v33 = vmax.f32 %v5925_v51, %v6075_v57  ;;  %v6160_v61 = vmax.f32 %v5948_v49, %v6092_v39  ;;  %4672 = vmatprep.mubr.msk.bf16.mxu1 %vm272_vm1, %v6180_v19 }
  0xbb   : > { %v2125_v36 = vsel %vm772_vm2, %v2085_v27, %v9312_v43  ;;  %v2145_v14 = vsel %vm772_vm2, %v9313_v62, %v2085_v27  ;;  %v757_v21 = vrot.slane %v661_v20, 1  ;;  %379 = vst.msk [vmem:[#allocation2 + $0x180] sm:$0xff] %vm272_vm1, %v347_v54  ;;  %v590_v51 = vmax.f32 %v5886_v32, %v6151_v55 }
  0xbc   : > { %v6132_v47 = vmax.f32 %v6090_v0, %v2145_v14  ;;  %v6135_v9 = vmax.f32 %v6099_v45, %v2125_v36  ;;  %v808_v28 = vsel %vm772_vm2, %v709_v1, %v733_v35  ;;  %v348_v36 = vunpack.c.h.bf16 %v260_v24 }
  0xbd   : > { %v784_v43 = vsel %vm772_vm2, %v733_v35, %v757_v21  ;;  %v832_v27 = vsel %vm772_vm2, %v757_v21, %v709_v1  ;;  %v878_v62 = vmax.f32 %v659_v46, %v808_v28 }
  0xbe   : > { %9534 = vst [vmem:[#allocation32_spill] sm:$0xff] %v6132_v47  ;;  %9535 = vst [vmem:[#allocation33_spill] sm:$0xff] %v6135_v9  ;;  %v879_v14 = vmax.f32 %v660_v48, %v784_v43  ;;  %v880_v34 = vmax.f32 %v661_v20, %v832_v27  ;;  %v349_v43 = vunpack.c.l.bf16 %v262_v5  ;;  %v592_v27 = vmax.f32 %v5914_v29, %v6160_v61 }
  0xbf   : > { %v928_v35 = vrot.slane %v878_v62, 6  ;;  %v1073_v18 = vrot.slane %v878_v62, 1  ;;  %380 = vst.msk [vmem:[#allocation2 + $0x188] sm:$0xff] %vm272_vm1, %v348_v36  ;;  %v591_v62 = vmax.f32 %v5890_v38, %v6155_v33  ;;  %v350_v36 = vunpack.c.h.bf16 %v262_v5 }
  0xc0   : > { %v952_v1 = vrot.slane %v879_v14, 6  ;;  %v976_v21 = vrot.slane %v880_v34, 6  ;;  %v1097_v28 = vrot.slane %v879_v14, 1  ;;  %v1121_v54 = vrot.slane %v880_v34, 1  ;;  %381 = vst.msk [vmem:[#allocation2 + $0x198] sm:$0xff] %vm272_vm1, %v349_v43 }
  0xc1   : > { %v6187_v45 = vmax.f32 %v592_v27, %v6162_v10  ;;  %382 = vst.msk [vmem:[#allocation2 + $0x1a0] sm:$0xff] %vm272_vm1, %v350_v36  ;;  %v9540_v5 = vmax.f32 %v5854_v23, %v6096_v4 }
  0xc2   : > { %v1001_v49 = vsel %vm989_vm3, %v952_v1, %v976_v21  ;;  %v1025_v34 = vsel %vm989_vm3, %v928_v35, %v952_v1  ;;  %v1049_v14 = vsel %vm989_vm3, %v976_v21, %v928_v35  ;;  %v1145_v32 = vsel %vm772_vm2, %v1097_v28, %v1121_v54  ;;  %v6196_v47 = vld [vmem:[#allocation2 + $0x180] sm:$0xff] }
  0xc3   : > { %v1169_v38 = vsel %vm772_vm2, %v1073_v18, %v1097_v28  ;;  %v1193_v29 = vsel %vm772_vm2, %v1121_v54, %v1073_v18  ;;  %v1240_v43 = vmax.f32 %v1025_v34, %v1145_v32  ;;  %v6192_v35 = vmax.f32 %v6092_v39, %v6162_v10 }
  0xc4   : > { %v1239_v1 = vmax.f32 %v1049_v14, %v1169_v38  ;;  %v1241_v9 = vmax.f32 %v1001_v49, %v1193_v29  ;;  %v758_v28 = vrot.slane %v6187_v45, 1  ;;  %v351_v18 = vunpack.c.l.bf16 %v6180_v19 }
  0xc5   : > { %v6194_v21 = vmax.f32 %v1240_v43, %v660_v48  ;;  %v662_v36 = vmax.f32 %v590_v51, %v6196_v47  ;;  %v6209_v39 = vmax.f32 %v6073_v17, %v6196_v47 }
  0xc6   : > { %v6200_v54 = vmax.f32 %v1239_v1, %v659_v46  ;;  %v6202_v27 = vmax.f32 %v1241_v9, %v661_v20  ;;  %v6204_v34 = vld [vmem:[#allocation2 + $0x188] sm:$0xff]  ;;  %v9536_v46 = vmax.f32 %v5850_v42, %v6087_v52  ;;  %383 = vst.msk [vmem:[#allocation2 + $0x1b0] sm:$0xff] %vm272_vm1, %v351_v18 }
  0xc7   : > { %v6214_v48 = vmax.f32 %v6060_v12, %v6194_v21  ;;  %v663_v9 = vmax.f32 %v591_v62, %v6204_v34  ;;  %v6225_v51 = vmax.f32 %v6075_v57, %v6204_v34  ;;  %v9538_v57 = vmax.f32 %v5846_v60, %v6083_v31 }
  0xc8   : > { %v6220_v20 = vmax.f32 %v9536_v46, %v6194_v21  ;;  %v1357_v12 = vpack.c.bf16 %v6194_v21, %v6200_v54  ;;  %v6233_v17 = vmax.f32 %v6057_v7, %v6200_v54  ;;  %v6237_v42 = vmax.f32 %v6071_v56, %v6202_v27 }
  0xc9   : > { %v6243_v24 = vmax.f32 %v9538_v57, %v6200_v54  ;;  %v6249_v62 = vmax.f32 %v9540_v5, %v6202_v27  ;;  %v710_v7 = vrot.slane %v662_v36, 1  ;;  %v734_v14 = vrot.slane %v663_v9, 1  ;;  %v6279_v57 = vld [vmem:[#allocation2 + $0x198] sm:$0xff] }
  0xca   : > { %9537 = vst [vmem:[#allocation34_spill] sm:$0xff] %v6220_v20  ;;  %v2086_v49 = vrot.slane %v6220_v20, 1  ;;  %4627 = vmatmul.mubr.msk.bf16.gmra.mxu0 %vm272_vm1, %v1357_v12  ;;  %v1963_v32 = vmax.f32 %v5987_v30, %v6233_v17  ;;  %v1964_v60 = vmax.f32 %v5991_v40, %v6214_v48  ;;  %v1965_v38 = vmax.f32 %v5995_v16, %v6237_v42 }
  0xcb   : > { %9539 = vst [vmem:[#allocation35_spill] sm:$0xff] %v6243_v24  ;;  %9541 = vst [vmem:[#allocation36_spill] sm:$0xff] %v6249_v62  ;;  %v9318_v56 = vrot.slane %v6243_v24, 1  ;;  %v9317_v23 = vrot.slane %v6249_v62, 1  ;;  %v785_v29 = vsel %vm772_vm2, %v734_v14, %v758_v28  ;;  %v809_v43 = vsel %vm772_vm2, %v710_v7, %v734_v14 }
  0xcc   : > { %v833_v1 = vsel %vm772_vm2, %v758_v28, %v710_v7  ;;  %v881_v40 = vmax.f32 %v662_v36, %v809_v43  ;;  %v882_v18 = vmax.f32 %v663_v9, %v785_v29  ;;  %v593_v28 = vmax.f32 %v5959_v3, %v6209_v39 }
  0xcd   : > { %v2146_v30 = vsel %vm772_vm2, %v9318_v56, %v2086_v49  ;;  %v883_v16 = vmax.f32 %v6187_v45, %v833_v1  ;;  %v2126_v46 = vsel %vm772_vm2, %v2086_v49, %v9317_v23  ;;  %v594_v5 = vmax.f32 %v5975_v37, %v6225_v51  ;;  %v6288_v1 = vld [vmem:[#allocation2 + $0x1a0] sm:$0xff]  ;;  %v6290_v56 = vld [vmem:[#allocation2 + $0x1a8] sm:$0xff] }
  0xce   : > { %v6277_v12 = vmax.f32 %v6243_v24, %v2146_v30  ;;  %v6286_v7 = vmax.f32 %v6220_v20, %v2126_v46  ;;  %v929_v14 = vrot.slane %v881_v40, 6  ;;  %v953_v29 = vrot.slane %v882_v18, 6 }
  0xcf   : > { %v977_v43 = vrot.slane %v883_v16, 6  ;;  %v1074_v49 = vrot.slane %v881_v40, 1  ;;  %v1098_v23 = vrot.slane %v882_v18, 1  ;;  %v1122_v30 = vrot.slane %v883_v16, 1 }
  0xd0   : > { %9542 = vst [vmem:[#allocation37_spill] sm:$0xff] %v6277_v12  ;;  %9543 = vst [vmem:[#allocation38_spill] sm:$0xff] %v6286_v7  ;;  %v595_v12 = vmax.f32 %v5979_v50, %v6192_v35  ;;  %v1026_v37 = vsel %vm989_vm3, %v929_v14, %v953_v29  ;;  %v6301_v20 = vmax.f32 %v593_v28, %v6279_v57 }
  0xd1   : > { %v1002_v3 = vsel %vm989_vm3, %v953_v29, %v977_v43  ;;  %v1050_v46 = vsel %vm989_vm3, %v977_v43, %v929_v14  ;;  %v1146_v40 = vsel %vm772_vm2, %v1098_v23, %v1122_v30  ;;  %v1170_v18 = vsel %vm772_vm2, %v1074_v49, %v1098_v23 }
  0xd2   : > { %v1194_v50 = vsel %vm772_vm2, %v1122_v30, %v1074_v49  ;;  %v666_v16 = vmax.f32 %v594_v5, %v6288_v1  ;;  %v1242_v7 = vmax.f32 %v1050_v46, %v1170_v18  ;;  %v1243_v62 = vmax.f32 %v1026_v37, %v1146_v40 }
  0xd3   : > { %v1244_v29 = vmax.f32 %v1002_v3, %v1194_v50  ;;  %v667_v24 = vmax.f32 %v595_v12, %v6290_v56  ;;  %v711_v14 = vrot.slane %v6301_v20, 1  ;;  %v352_v43 = vunpack.c.h.bf16 %v6180_v19 }
  0xd4   : > { %v735_v28 = vrot.slane %v666_v16, 1  ;;  %v6315_v59 = vmax.f32 %v6196_v47, %v6279_v57  ;;  %v6317_v23 = vmax.f32 %v1242_v7, %v662_v36  ;;  %v6319_v15 = vmax.f32 %v1243_v62, %v663_v9 }
  0xd5   : > { %v6322_v5 = vmax.f32 %v1244_v29, %v6187_v45  ;;  %v759_v49 = vrot.slane %v667_v24, 1  ;;  %384 = vst.msk [vmem:[#allocation2 + $0x1b8] sm:$0xff] %vm272_vm1, %v352_v43  ;;  %v6329_v30 = vmax.f32 %v6204_v34, %v6288_v1  ;;  %v6333_v47 = vmax.f32 %v6162_v10, %v6290_v56 }
  0xd6   : > { %v810_v12 = vsel %vm772_vm2, %v711_v14, %v735_v28  ;;  %v596_v36 = vmax.f32 %v6151_v55, %v6315_v59  ;;  %v1358_v45 = vpack.c.bf16 %v6319_v15, %v6317_v23  ;;  %v6341_v9 = vmax.f32 %v6200_v54, %v6317_v23 }
  0xd7   : > { %v6345_v62 = vmax.f32 %v6194_v21, %v6319_v15  ;;  %v6349_v34 = vmax.f32 %v6202_v27, %v6322_v5  ;;  %v6352_v10 = vmax.f32 %v1963_v32, %v6317_v23  ;;  %v6355_v55 = vmax.f32 %v1964_v60, %v6319_v15 }
  0xd8   : > { %v6358_v7 = vmax.f32 %v1965_v38, %v6322_v5  ;;  %v786_v54 = vsel %vm772_vm2, %v735_v28, %v759_v49  ;;  %4630 = vmatprep.mubr.msk.bf16.mxu0 %vm272_vm1, %v1358_v45  ;;  %v834_v21 = vsel %vm772_vm2, %v759_v49, %v711_v14  ;;  %v884_v27 = vmax.f32 %v6301_v20, %v810_v12 }
  0xd9   : > { %9544 = vst [vmem:[#allocation39_spill] sm:$0xff] %v6352_v10  ;;  %9545 = vst [vmem:[#allocation40_spill] sm:$0xff] %v6355_v55  ;;  %v885_v3 = vmax.f32 %v666_v16, %v786_v54  ;;  %v1966_v32 = vmax.f32 %v6083_v31, %v6341_v9  ;;  %v9329_v60 = vrot.slane %v6352_v10, 1  ;;  %v2087_v37 = vrot.slane %v6355_v55, 1 }
  0xda   : > { %9546 = vst [vmem:[#allocation41_spill] sm:$0xff] %v6358_v7  ;;  %v9328_v38 = vrot.slane %v6358_v7, 1  ;;  %v886_v46 = vmax.f32 %v667_v24, %v834_v21  ;;  %v930_v40 = vrot.slane %v884_v27, 6  ;;  %v1075_v50 = vrot.slane %v884_v27, 1 }
  0xdb   : > { %v954_v18 = vrot.slane %v885_v3, 6  ;;  %v1099_v29 = vrot.slane %v885_v3, 1  ;;  %v2147_v31 = vsel %vm772_vm2, %v9329_v60, %v2087_v37  ;;  %v1967_v60 = vmax.f32 %v6087_v52, %v6345_v62 }
  0xdc   : > { %v2127_v14 = vsel %vm772_vm2, %v2087_v37, %v9328_v38  ;;  %v978_v28 = vrot.slane %v886_v46, 6  ;;  %v1123_v43 = vrot.slane %v886_v46, 1  ;;  %v6380_v49 = vmax.f32 %v6352_v10, %v2147_v31  ;;  %v6398_v46 = vld [vmem:[%s4899_s25 + $0x68] sm:$0xff]  }
  0xdd   : > { %v6383_v12 = vmax.f32 %v6355_v55, %v2127_v14  ;;  %v1027_v45 = vsel %vm989_vm3, %v930_v40, %v954_v18  ;;  %v1171_v54 = vsel %vm772_vm2, %v1075_v50, %v1099_v29  ;;  %v6402_v55 = vld [vmem:[#allocation2 + $0x1b0] sm:$0xff]  ;;  %4673 = vmatmul.mubr.msk.bf16.gmra.mxu1 %vm272_vm1, %v6398_v46 }
  0xde   : > { %9547 = vst [vmem:[#allocation42_spill] sm:$0xff] %v6380_v49  ;;  %v1003_v21 = vsel %vm989_vm3, %v954_v18, %v978_v28  ;;  %v1051_v27 = vsel %vm989_vm3, %v978_v28, %v930_v40  ;;  %v1147_v3 = vsel %vm772_vm2, %v1099_v29, %v1123_v43  ;;  %v1195_v37 = vsel %vm772_vm2, %v1123_v43, %v1075_v50 }
  0xdf   : > { %9548 = vst [vmem:[#allocation43_spill] sm:$0xff] %v6383_v12  ;;  %v1245_v14 = vmax.f32 %v1051_v27, %v1171_v54  ;;  %v1246_v31 = vmax.f32 %v1027_v45, %v1147_v3  ;;  %v1247_v38 = vmax.f32 %v1003_v21, %v1195_v37  ;;  %v1968_v18 = vmax.f32 %v6096_v4, %v6349_v34  ;;  %v6420_v45 = vld [vmem:[#allocation2 + $0x1b8] sm:$0xff]  ;;  %v6422_v54 = vld [vmem:[#allocation2 + $0x1c0] sm:$0xff] }
  0xe0   : > { %v597_v40 = vmax.f32 %v6155_v33, %v6329_v30  ;;  %v598_v29 = vmax.f32 %v6160_v61, %v6333_v47  ;;  %v6411_v50 = vmax.f32 %v596_v36, %v6402_v55  ;;  %v353_v4 = vunpack.c.l.bf16 %v6398_v46 }
  0xe1   : > { %v6414_v28 = vmax.f32 %v1245_v14, %v6301_v20  ;;  %v6416_v43 = vmax.f32 %v1246_v31, %v666_v16  ;;  %v6418_v52 = vmax.f32 %v1247_v38, %v667_v24  ;;  %v354_v21 = vunpack.c.h.bf16 %v6398_v46 }
  0xe2   : > { %v669_v33 = vmax.f32 %v597_v40, %v6420_v45  ;;  %v670_v61 = vmax.f32 %v598_v29, %v6422_v54  ;;  %v712_v36 = vrot.slane %v6411_v50, 1  ;;  %385 = vst.msk [vmem:[#allocation2 + $0x1c8] sm:$0xff] %vm272_vm1, %v353_v4 }
  0xe3   : > { %v1359_v20 = vpack.c.bf16 %v6416_v43, %v6414_v28  ;;  %v6433_v24 = vmax.f32 %v6317_v23, %v6414_v28  ;;  %v6437_v16 = vmax.f32 %v6319_v15, %v6416_v43  ;;  %v6441_v38 = vmax.f32 %v6322_v5, %v6418_v52  ;;  %386 = vst.msk [vmem:[#allocation2 + $0x1d0] sm:$0xff] %vm272_vm1, %v354_v21 }
  0xe4   : > { %v6445_v27 = vmax.f32 %v1966_v32, %v6414_v28  ;;  %v6448_v3 = vmax.f32 %v1967_v60, %v6416_v43  ;;  %v6451_v37 = vmax.f32 %v1968_v18, %v6418_v52  ;;  %v736_v23 = vrot.slane %v669_v33, 1 }
  0xe5   : > { %4631 = vmatmul.mubr.msk.bf16.gmra.mxu0 %vm272_vm1, %v1359_v20  ;;  %v760_v15 = vrot.slane %v670_v61, 1  ;;  %v1969_v5 = vmax.f32 %v6233_v17, %v6433_v24  ;;  %v1970_v14 = vmax.f32 %v6214_v48, %v6437_v16  ;;  %v1971_v32 = vmax.f32 %v6237_v42, %v6441_v38 }
  0xe6   : > { %9549 = vst [vmem:[#allocation44_spill] sm:$0xff] %v6445_v27  ;;  %9550 = vst [vmem:[#allocation45_spill] sm:$0xff] %v6448_v3  ;;  %v9338_v60 = vrot.slane %v6445_v27, 1  ;;  %v2088_v31 = vrot.slane %v6448_v3, 1  ;;  %v9335_v18 = vrot.slane %v6451_v37, 1  ;;  %v811_v40 = vsel %vm772_vm2, %v712_v36, %v736_v23 }
  0xe7   : > { %9551 = vst [vmem:[#allocation46_spill] sm:$0xff] %v6451_v37  ;;  %v787_v29 = vsel %vm772_vm2, %v736_v23, %v760_v15  ;;  %v835_v17 = vsel %vm772_vm2, %v760_v15, %v712_v36  ;;  %v887_v48 = vmax.f32 %v6411_v50, %v811_v40  ;;  %v6473_v42 = vmax.f32 %v6279_v57, %v6402_v55 }
  0xe8   : > { %v2128_v4 = vsel %vm772_vm2, %v2088_v31, %v9335_v18  ;;  %v2148_v21 = vsel %vm772_vm2, %v9338_v60, %v2088_v31  ;;  %v888_v20 = vmax.f32 %v669_v33, %v787_v29  ;;  %v889_v23 = vmax.f32 %v670_v61, %v835_v17 }
  0xe9   : > { %v6484_v36 = vmax.f32 %v6445_v27, %v2148_v21  ;;  %v6487_v15 = vmax.f32 %v6448_v3, %v2128_v4  ;;  %v931_v57 = vrot.slane %v887_v48, 6  ;;  %v1076_v40 = vrot.slane %v887_v48, 1  ;;  %v6489_v7 = vld [vmem:[#allocation2 + $0x1c8] sm:$0xff]  ;;  %v6518_v3 = vld [vmem:[#allocation2 + $0x1d8] sm:$0xff] }
  0xea   : > { %v955_v37 = vrot.slane %v888_v20, 6  ;;  %v979_v12 = vrot.slane %v889_v23, 6  ;;  %v1100_v49 = vrot.slane %v888_v20, 1  ;;  %v1124_v18 = vrot.slane %v889_v23, 1  ;;  %v6509_v20 = vld [vmem:[#allocation2 + $0x1d0] sm:$0xff] }
  0xeb   : > { %9552 = vst [vmem:[#allocation47_spill] sm:$0xff] %v6484_v36  ;;  %9553 = vst [vmem:[#allocation48_spill] sm:$0xff] %v6487_v15  ;;  %v6493_v31 = vmax.f32 %v6288_v1, %v6420_v45  ;;  %v6497_v29 = vmax.f32 %v6290_v56, %v6422_v54  ;;  %v599_v17 = vmax.f32 %v6209_v39, %v6473_v42  ;;  %v6512_v23 = vld [vmem:[%s4899_s25 + $0x70] sm:$0xff]  }
  0xec   : > { %v1004_v48 = vsel %vm989_vm3, %v955_v37, %v979_v12  ;;  %v1028_v4 = vsel %vm989_vm3, %v931_v57, %v955_v37  ;;  %v1052_v21 = vsel %vm989_vm3, %v979_v12, %v931_v57  ;;  %v1148_v1 = vsel %vm772_vm2, %v1100_v49, %v1124_v18  ;;  %4676 = vmatprep.mubr.msk.bf16.mxu1 %vm272_vm1, %v6512_v23 }
  0xed   : > { %v1172_v56 = vsel %vm772_vm2, %v1076_v40, %v1100_v49  ;;  %v1196_v39 = vsel %vm772_vm2, %v1124_v18, %v1076_v40  ;;  %v1249_v60 = vmax.f32 %v1028_v4, %v1148_v1  ;;  %v600_v37 = vmax.f32 %v6225_v51, %v6493_v31 }
  0xee   : > { %v1248_v12 = vmax.f32 %v1052_v21, %v1172_v56  ;;  %v1250_v57 = vmax.f32 %v1004_v48, %v1196_v39  ;;  %v601_v15 = vmax.f32 %v6192_v35, %v6497_v29  ;;  %v6527_v36 = vmax.f32 %v599_v17, %v6489_v7 }
  0xef   : > { %v6529_v49 = vmax.f32 %v1249_v60, %v669_v33  ;;  %v6532_v18 = vmax.f32 %v600_v37, %v6509_v20  ;;  %v355_v40 = vunpack.c.l.bf16 %v6512_v23 }
  0xf0   : > { %v6536_v51 = vmax.f32 %v1248_v12, %v6411_v50  ;;  %v6538_v4 = vmax.f32 %v1250_v57, %v670_v61  ;;  %v6541_v19 = vmax.f32 %v601_v15, %v6518_v3  ;;  %v713_v35 = vrot.slane %v6527_v36, 1 }
  0xf1   : > { %v6546_v17 = vmax.f32 %v6416_v43, %v6529_v49  ;;  %v6549_v33 = vmax.f32 %v1970_v14, %v6529_v49  ;;  %v737_v60 = vrot.slane %v6532_v18, 1  ;;  %v356_v50 = vunpack.c.h.bf16 %v6512_v23  ;;  %387 = vst.msk [vmem:[#allocation2 + $0x1e0] sm:$0xff] %vm272_vm1, %v355_v40 }
  0xf2   : > { %v1360_v61 = vpack.c.bf16 %v6529_v49, %v6536_v51  ;;  %v6560_v15 = vmax.f32 %v6414_v28, %v6536_v51  ;;  %v6564_v43 = vmax.f32 %v6418_v52, %v6538_v4  ;;  %v6567_v14 = vmax.f32 %v1969_v5, %v6536_v51 }
  0xf3   : > { %9554 = vst [vmem:[#allocation49_spill] sm:$0xff] %v6549_v33  ;;  %v6570_v46 = vmax.f32 %v1971_v32, %v6538_v4  ;;  %v2089_v48 = vrot.slane %v6549_v33, 1  ;;  %v761_v21 = vrot.slane %v6541_v19, 1  ;;  %v812_v1 = vsel %vm772_vm2, %v713_v35, %v737_v60  ;;  %388 = vst.msk [vmem:[#allocation2 + $0x1e8] sm:$0xff] %vm272_vm1, %v356_v50 }
  0xf4   : > { %9555 = vst [vmem:[#allocation50_spill] sm:$0xff] %v6567_v14  ;;  %4634 = vmatprep.mubr.msk.bf16.mxu0 %vm272_vm1, %v1360_v61  ;;  %v9342_v28 = vrot.slane %v6567_v14, 1  ;;  %v890_v52 = vmax.f32 %v6527_v36, %v812_v1  ;;  %v1972_v5 = vmax.f32 %v6341_v9, %v6560_v15  ;;  %v1973_v32 = vmax.f32 %v6345_v62, %v6546_v17 }
  0xf5   : > { %9556 = vst [vmem:[#allocation51_spill] sm:$0xff] %v6570_v46  ;;  %v9343_v56 = vrot.slane %v6570_v46, 1  ;;  %v788_v39 = vsel %vm772_vm2, %v737_v60, %v761_v21  ;;  %v836_v37 = vsel %vm772_vm2, %v761_v21, %v713_v35  ;;  %v1974_v12 = vmax.f32 %v6349_v34, %v6564_v43 }
  0xf6   : > { %v2149_v57 = vsel %vm772_vm2, %v9342_v28, %v2089_v48  ;;  %v891_v9 = vmax.f32 %v6532_v18, %v788_v39  ;;  %v892_v62 = vmax.f32 %v6541_v19, %v836_v37  ;;  %v932_v40 = vrot.slane %v890_v52, 6 }
  0xf7   : > { %v2129_v60 = vsel %vm772_vm2, %v2089_v48, %v9343_v56  ;;  %v6602_v35 = vmax.f32 %v6567_v14, %v2149_v57  ;;  %v1077_v34 = vrot.slane %v890_v52, 1  ;;  %v6606_v50 = vmax.f32 %v6402_v55, %v6489_v7 }
  0xf8   : > { %v6609_v61 = vmax.f32 %v6549_v33, %v2129_v60  ;;  %v956_v21 = vrot.slane %v891_v9, 6  ;;  %v980_v1 = vrot.slane %v892_v62, 6  ;;  %v1101_v39 = vrot.slane %v891_v9, 1  ;;  %v6636_v56 = vld [vmem:[#allocation2 + $0x1e0] sm:$0xff] }
  0xf9   : > { %9557 = vst [vmem:[#allocation52_spill] sm:$0xff] %v6602_v35  ;;  %v1125_v37 = vrot.slane %v892_v62, 1  ;;  %v6613_v28 = vmax.f32 %v6420_v45, %v6509_v20  ;;  %v6617_v48 = vmax.f32 %v6422_v54, %v6518_v3  ;;  %v602_v52 = vmax.f32 %v6315_v59, %v6606_v50  ;;  %v6630_v62 = vld [vmem:[%s4899_s25 + $0x78] sm:$0xff]  }
  0xfa   : > { %9558 = vst [vmem:[#allocation53_spill] sm:$0xff] %v6609_v61  ;;  %v1005_v55 = vsel %vm989_vm3, %v956_v21, %v980_v1  ;;  %v1029_v57 = vsel %vm989_vm3, %v932_v40, %v956_v21  ;;  %v1053_v9 = vsel %vm989_vm3, %v980_v1, %v932_v40  ;;  %v1173_v45 = vsel %vm772_vm2, %v1077_v34, %v1101_v39  ;;  %v6640_v40 = vld [vmem:[#allocation2 + $0x1e8] sm:$0xff] }
  0xfb   : > { %v1149_v54 = vsel %vm772_vm2, %v1101_v39, %v1125_v37  ;;  %v1197_v59 = vsel %vm772_vm2, %v1125_v37, %v1077_v34  ;;  %v1251_v60 = vmax.f32 %v1053_v9, %v1173_v45  ;;  %v603_v21 = vmax.f32 %v6329_v30, %v6613_v28  ;;  %v6650_v34 = vld [vmem:[#allocation2 + $0x1f0] sm:$0xff]  ;;  %4677 = vmatmul.mubr.msk.bf16.gmra.mxu1 %vm272_vm1, %v6630_v62 }
  0xfc   : > { %v1252_v33 = vmax.f32 %v1029_v57, %v1149_v54  ;;  %v1253_v61 = vmax.f32 %v1005_v55, %v1197_v59  ;;  %v604_v1 = vmax.f32 %v6333_v47, %v6617_v48  ;;  %v6645_v35 = vmax.f32 %v602_v52, %v6636_v56 }
  0xfd   : > { %v6648_v39 = vmax.f32 %v1251_v60, %v6527_v36  ;;  %v6653_v37 = vmax.f32 %v603_v21, %v6640_v40  ;;  %v357_v30 = vunpack.c.l.bf16 %v6630_v62  ;;  %v358_v55 = vunpack.c.h.bf16 %v6630_v62 }
  0xfe   : > { %v6658_v57 = vmax.f32 %v1252_v33, %v6532_v18  ;;  %v6661_v47 = vmax.f32 %v1253_v61, %v6541_v19  ;;  %v676_v52 = vmax.f32 %v604_v1, %v6650_v34  ;;  %v714_v36 = vrot.slane %v6645_v35, 1 }
  0xff   : > { %v6667_v9 = vmax.f32 %v6536_v51, %v6648_v39  ;;  %v6670_v45 = vmax.f32 %v1972_v5, %v6648_v39  ;;  %v738_v54 = vrot.slane %v6653_v37, 1  ;;  %389 = vst.msk [vmem:[#allocation2 + $0x1f8] sm:$0xff] %vm272_vm1, %v357_v30  ;;  %390 = vst.msk [vmem:[#allocation2 + $0x200] sm:$0xff] %vm272_vm1, %v358_v55  ;;  %v6677_v18 = vmax.f32 %v6489_v7, %v6636_v56 }
 0x100   : > { %v1361_v19 = vpack.c.bf16 %v6658_v57, %v6648_v39  ;;  %v6683_v51 = vmax.f32 %v6529_v49, %v6658_v57  ;;  %v6687_v33 = vmax.f32 %v6538_v4, %v6661_v47  ;;  %v6690_v5 = vmax.f32 %v1973_v32, %v6658_v57 }
 0x101   : > { %9559 = vst [vmem:[#allocation54_spill] sm:$0xff] %v6670_v45  ;;  %v6693_v61 = vmax.f32 %v1974_v12, %v6661_v47  ;;  %v9349_v7 = vrot.slane %v6670_v45, 1  ;;  %v762_v59 = vrot.slane %v676_v52, 1  ;;  %v813_v60 = vsel %vm772_vm2, %v714_v36, %v738_v54 }
 0x102   : > { %9560 = vst [vmem:[#allocation55_spill] sm:$0xff] %v6690_v5  ;;  %4635 = vmatmul.mubr.msk.bf16.gmra.mxu0 %vm272_vm1, %v1361_v19  ;;  %v2090_v49 = vrot.slane %v6690_v5, 1  ;;  %v893_v21 = vmax.f32 %v6645_v35, %v813_v60  ;;  %v1975_v4 = vmax.f32 %v6433_v24, %v6667_v9  ;;  %v1976_v32 = vmax.f32 %v6437_v16, %v6683_v51 }
 0x103   : > { %9561 = vst [vmem:[#allocation56_spill] sm:$0xff] %v6693_v61  ;;  %v9356_v12 = vrot.slane %v6693_v61, 1  ;;  %v789_v1 = vsel %vm772_vm2, %v738_v54, %v762_v59  ;;  %v837_v30 = vsel %vm772_vm2, %v762_v59, %v714_v36  ;;  %v1977_v55 = vmax.f32 %v6441_v38, %v6687_v33 }
 0x104   : > { %v2150_v19 = vsel %vm772_vm2, %v9349_v7, %v2090_v49  ;;  %v894_v24 = vmax.f32 %v6653_v37, %v789_v1  ;;  %v895_v60 = vmax.f32 %v676_v52, %v837_v30  ;;  %v933_v16 = vrot.slane %v893_v21, 6 }
 0x105   : > { %v2130_v54 = vsel %vm772_vm2, %v2090_v49, %v9356_v12  ;;  %v6722_v46 = vmax.f32 %v6670_v45, %v2150_v19  ;;  %v1078_v36 = vrot.slane %v893_v21, 1  ;;  %v6726_v38 = vmax.f32 %v6509_v20, %v6640_v40 }
 0x106   : > { %v6729_v59 = vmax.f32 %v6690_v5, %v2130_v54  ;;  %v957_v7 = vrot.slane %v894_v24, 6  ;;  %v981_v1 = vrot.slane %v895_v60, 6  ;;  %v1102_v30 = vrot.slane %v894_v24, 1  ;;  %v6731_v27 = vld [vmem:[#allocation2 + $0x1f8] sm:$0xff]  ;;  %v6733_v61 = vld [vmem:[#allocation2 + $0x200] sm:$0xff] }
 0x107   : > { %9562 = vst [vmem:[#allocation57_spill] sm:$0xff] %v6722_v46  ;;  %v1126_v14 = vrot.slane %v895_v60, 1  ;;  %v6737_v49 = vmax.f32 %v6518_v3, %v6650_v34  ;;  %v605_v21 = vmax.f32 %v6473_v42, %v6677_v18  ;;  %v606_v20 = vmax.f32 %v6493_v31, %v6726_v38  ;;  %v6751_v3 = vld [vmem:[#allocation2 + $0x208] sm:$0xff] }
 0x108   : > { %9563 = vst [vmem:[#allocation58_spill] sm:$0xff] %v6729_v59  ;;  %v1006_v19 = vsel %vm989_vm3, %v957_v7, %v981_v1  ;;  %v1030_v24 = vsel %vm989_vm3, %v933_v16, %v957_v7  ;;  %v1054_v60 = vsel %vm989_vm3, %v981_v1, %v933_v16  ;;  %v1174_v54 = vsel %vm772_vm2, %v1078_v36, %v1102_v30 }
 0x109   : > { %v1150_v42 = vsel %vm772_vm2, %v1102_v30, %v1126_v14  ;;  %v1198_v31 = vsel %vm772_vm2, %v1126_v14, %v1078_v36  ;;  %v1254_v12 = vmax.f32 %v1054_v60, %v1174_v54  ;;  %v607_v5 = vmax.f32 %v6497_v29, %v6737_v49 }
 0x10a   : > { %v1255_v59 = vmax.f32 %v1030_v24, %v1150_v42  ;;  %v1256_v7 = vmax.f32 %v1006_v19, %v1198_v31  ;;  %v677_v46 = vmax.f32 %v605_v21, %v6731_v27  ;;  %v678_v16 = vmax.f32 %v606_v20, %v6733_v61 }
 0x10b   : > { %v6762_v1 = vmax.f32 %v1254_v12, %v6645_v35  ;;  %v679_v45 = vmax.f32 %v607_v5, %v6751_v3  ;;  %v6781_v35 = vmax.f32 %v6636_v56, %v6731_v27 }
 0x10c   : > { %v6766_v30 = vmax.f32 %v1255_v59, %v6653_v37  ;;  %v6768_v10 = vmax.f32 %v1256_v7, %v676_v52  ;;  %v715_v14 = vrot.slane %v677_v46, 1  ;;  %v739_v36 = vrot.slane %v678_v16, 1 }
 0x10d   : > { %v6772_v29 = vmax.f32 %v6648_v39, %v6762_v1  ;;  %v6775_v21 = vmax.f32 %v1975_v4, %v6762_v1  ;;  %v763_v20 = vrot.slane %v679_v45, 1 }
 0x10e   : > { %v1362_v37 = vpack.c.bf16 %v6766_v30, %v6762_v1  ;;  %v6787_v52 = vmax.f32 %v6658_v57, %v6766_v30  ;;  %v6791_v39 = vmax.f32 %v6661_v47, %v6768_v10  ;;  %v6794_v5 = vmax.f32 %v1976_v32, %v6766_v30 }
 0x10f   : > { %9564 = vst [vmem:[#allocation59_spill] sm:$0xff] %v6775_v21  ;;  %v6799_v23 = vmax.f32 %v1977_v55, %v6768_v10  ;;  %v9365_v56 = vrot.slane %v6775_v21, 1  ;;  %v790_v4 = vsel %vm772_vm2, %v739_v36, %v763_v20  ;;  %v814_v57 = vsel %vm772_vm2, %v715_v14, %v739_v36 }
 0x110   : > { %9565 = vst [vmem:[#allocation60_spill] sm:$0xff] %v6794_v5  ;;  %4638 = vmatprep.mubr.msk.bf16.mxu0 %vm272_vm1, %v1362_v37  ;;  %v2091_v47 = vrot.slane %v6794_v5, 1  ;;  %v838_v32 = vsel %vm772_vm2, %v763_v20, %v715_v14  ;;  %v896_v12 = vmax.f32 %v677_v46, %v814_v57  ;;  %v897_v62 = vmax.f32 %v678_v16, %v790_v4 }
 0x111   : > { %9566 = vst [vmem:[#allocation61_spill] sm:$0xff] %v6799_v23  ;;  %v9364_v55 = vrot.slane %v6799_v23, 1  ;;  %v898_v59 = vmax.f32 %v679_v45, %v838_v32  ;;  %v1978_v19 = vmax.f32 %v6560_v15, %v6772_v29  ;;  %v1979_v24 = vmax.f32 %v6546_v17, %v6787_v52 }
 0x112   : > { %v2151_v60 = vsel %vm772_vm2, %v9365_v56, %v2091_v47  ;;  %v934_v54 = vrot.slane %v896_v12, 6  ;;  %v958_v42 = vrot.slane %v897_v62, 6  ;;  %v1079_v31 = vrot.slane %v896_v12, 1  ;;  %v457_v12 = vld [vmem:[#allocation2 + $0x210] sm:$0xff] }
 0x113   : > { %v2131_v7 = vsel %vm772_vm2, %v2091_v47, %v9364_v55  ;;  %v6824_v14 = vmax.f32 %v6775_v21, %v2151_v60  ;;  %v982_v15 = vrot.slane %v898_v59, 6  ;;  %v1103_v36 = vrot.slane %v897_v62, 1  ;;  %v458_v62 = vld [vmem:[#allocation2 + $0x218] sm:$0xff]  ;;  %v459_v55 = vld [vmem:[#allocation2 + $0x220] sm:$0xff] }
 0x114   : > { %v6827_v17 = vmax.f32 %v6794_v5, %v2131_v7  ;;  %v1031_v20 = vsel %vm989_vm3, %v934_v54, %v958_v42  ;;  %v1127_v37 = vrot.slane %v898_v59, 1  ;;  %v1980_v4 = vmax.f32 %v6564_v43, %v6791_v39 }
 0x115   : > { %9567 = vst [vmem:[#allocation62_spill] sm:$0xff] %v6824_v14  ;;  %v1007_v57 = vsel %vm989_vm3, %v958_v42, %v982_v15  ;;  %v1055_v47 = vsel %vm989_vm3, %v982_v15, %v934_v54  ;;  %v1175_v32 = vsel %vm772_vm2, %v1079_v31, %v1103_v36  ;;  %v6841_v60 = vmax.f32 %v6640_v40, %v6733_v61  ;;  %v469_v14 = vld [vmem:[#allocation2 + $0x270] sm:$0xff] }
 0x116   : > { %9568 = vst [vmem:[#allocation63_spill] sm:$0xff] %v6827_v17  ;;  %v1151_v59 = vsel %vm772_vm2, %v1103_v36, %v1127_v37  ;;  %v1199_v43 = vsel %vm772_vm2, %v1127_v37, %v1079_v31  ;;  %v1257_v7 = vmax.f32 %v1055_v47, %v1175_v32  ;;  %v6849_v42 = vmax.f32 %v6650_v34, %v6751_v3  ;;  %v467_v17 = vld [vmem:[#allocation2 + $0x260] sm:$0xff] }
 0x117   : > { %v1258_v54 = vmax.f32 %v1031_v20, %v1151_v59  ;;  %v1259_v15 = vmax.f32 %v1007_v57, %v1199_v43  ;;  %v608_v56 = vmax.f32 %v6606_v50, %v6781_v35  ;;  %v609_v40 = vmax.f32 %v6613_v28, %v6841_v60 }
 0x118   : > { %v6855_v5 = vmax.f32 %v1257_v7, %v677_v46  ;;  %v610_v36 = vmax.f32 %v6617_v48, %v6849_v42  ;;  %v6860_v31 = vmax.f32 %v6731_v27, %v457_v12  ;;  %v6863_v34 = vmax.f32 %v6733_v61, %v458_v62 }
 0x119   : > { %v6865_v20 = vmax.f32 %v1258_v54, %v678_v16  ;;  %v6867_v37 = vmax.f32 %v1259_v15, %v679_v45  ;;  %v6869_v57 = vmax.f32 %v608_v56, %v457_v12  ;;  %v6871_v50 = vmax.f32 %v609_v40, %v458_v62 }
 0x11a   : > { %v6875_v46 = vmax.f32 %v6762_v1, %v6855_v5  ;;  %v6878_v28 = vmax.f32 %v1978_v19, %v6855_v5  ;;  %v6880_v27 = vmax.f32 %v610_v36, %v459_v55  ;;  %v6883_v48 = vmax.f32 %v6751_v3, %v459_v55 }
 0x11b   : > { %v1363_v45 = vpack.c.bf16 %v6865_v20, %v6855_v5  ;;  %v6889_v61 = vmax.f32 %v6766_v30, %v6865_v20  ;;  %v6893_v16 = vmax.f32 %v6768_v10, %v6867_v37  ;;  %v6896_v1 = vmax.f32 %v1979_v24, %v6865_v20 }
 0x11c   : > { %9569 = vst [vmem:[#allocation64_spill] sm:$0xff] %v6875_v46  ;;  %9570 = vst [vmem:[#allocation65_spill] sm:$0xff] %v6878_v28  ;;  %v6899_v56 = vmax.f32 %v1980_v4, %v6867_v37  ;;  %v9367_v3 = vrot.slane %v6878_v28, 1  ;;  %v716_v19 = vrot.slane %v6869_v57, 1  ;;  %v740_v47 = vrot.slane %v6871_v50, 1  ;;  %v6911_v4 = vld [vmem:[#allocation2 + $0x228] sm:$0xff] }
 0x11d   : > { %9571 = vst [vmem:[#allocation66_spill] sm:$0xff] %v6889_v61  ;;  %9572 = vst [vmem:[#allocation67_spill] sm:$0xff] %v6893_v16  ;;  %4639 = vmatmul.mubr.msk.bf16.gmra.mxu0 %vm272_vm1, %v1363_v45  ;;  %v2092_v30 = vrot.slane %v6896_v1, 1  ;;  %v764_v32 = vrot.slane %v6880_v27, 1  ;;  %v1982_v24 = vmax.f32 %v6683_v51, %v6889_v61  ;;  %v1983_v7 = vmax.f32 %v6687_v33, %v6893_v16  ;;  %v6930_v45 = vld [vmem:[#allocation2 + $0x230] sm:$0xff]  ;;  %v6943_v16 = vld [vmem:[#allocation2 + $0x248] sm:$0xff] }
 0x11e   : > { %9573 = vst [vmem:[#allocation68_spill] sm:$0xff] %v6896_v1  ;;  %9574 = vst [vmem:[#allocation69_spill] sm:$0xff] %v6899_v56  ;;  %v9371_v59 = vrot.slane %v6899_v56, 1  ;;  %v815_v43 = vsel %vm772_vm2, %v716_v19, %v740_v47  ;;  %v6919_v54 = vmax.f32 %v457_v12, %v6911_v4  ;;  %v611_v41 = vmax.f32 %v6677_v18, %v6860_v31 }
 0x11f   : > { %v2152_v15 = vsel %vm772_vm2, %v9367_v3, %v2092_v30  ;;  %v791_v51 = vsel %vm772_vm2, %v740_v47, %v764_v32  ;;  %v839_v40 = vsel %vm772_vm2, %v764_v32, %v716_v19  ;;  %v899_v36 = vmax.f32 %v6869_v57, %v815_v43  ;;  %v6941_v47 = vld [vmem:[#allocation2 + $0x240] sm:$0xff]  ;;  %v6945_v19 = vld [vmem:[#allocation2 + $0x250] sm:$0xff] }
 0x120   : > { %v2132_v33 = vsel %vm772_vm2, %v2092_v30, %v9371_v59  ;;  %v6937_v12 = vmax.f32 %v6878_v28, %v2152_v15  ;;  %v900_v3 = vmax.f32 %v6871_v50, %v791_v51  ;;  %v901_v10 = vmax.f32 %v6880_v27, %v839_v40  ;;  %v462_v28 = vld [vmem:[#allocation2 + $0x238] sm:$0xff] }
 0x121   : > { %v6948_v32 = vmax.f32 %v6896_v1, %v2132_v33  ;;  %v935_v43 = vrot.slane %v899_v36, 6  ;;  %v1080_v56 = vrot.slane %v899_v36, 1  ;;  %v6951_v30 = vmax.f32 %v458_v62, %v6930_v45  ;;  %v466_v40 = vld [vmem:[#allocation2 + $0x258] sm:$0xff] }
 0x122   : > { %9575 = vst [vmem:[#allocation70_spill] sm:$0xff] %v6937_v12  ;;  %v959_v15 = vrot.slane %v900_v3, 6  ;;  %v983_v59 = vrot.slane %v901_v10, 6  ;;  %v1104_v12 = vrot.slane %v900_v3, 1  ;;  %v1128_v51 = vrot.slane %v901_v10, 1  ;;  %v470_v1 = vld [vmem:[#allocation2 + $0x278] sm:$0xff] }
 0x123   : > { %9576 = vst [vmem:[#allocation71_spill] sm:$0xff] %v6948_v32  ;;  %v6953_v23 = vmax.f32 %v459_v55, %v462_v28  ;;  %v545_v21 = vmax.f32 %v6911_v4, %v6941_v47  ;;  %v546_v33 = vmax.f32 %v6930_v45, %v6943_v16  ;;  %v6960_v36 = vmax.f32 %v462_v28, %v6945_v19 }
 0x124   : > { %v1008_v62 = vsel %vm989_vm3, %v959_v15, %v983_v59  ;;  %v1032_v3 = vsel %vm989_vm3, %v935_v43, %v959_v15  ;;  %v1056_v10 = vsel %vm989_vm3, %v983_v59, %v935_v43  ;;  %v1152_v55 = vsel %vm772_vm2, %v1104_v12, %v1128_v51 }
 0x125   : > { %9577 = vst [vmem:[#allocation72_spill] sm:$0xff] %v6953_v23  ;;  %9578 = vst [vmem:[#allocation73_spill] sm:$0xff] %v6960_v36  ;;  %v1176_v32 = vsel %vm772_vm2, %v1080_v56, %v1104_v12  ;;  %v1200_v53 = vsel %vm772_vm2, %v1128_v51, %v1080_v56  ;;  %v1261_v0 = vmax.f32 %v1032_v3, %v1152_v55 }
 0x126   : > { %v548_v8 = vmax.f32 %v6941_v47, %v466_v40  ;;  %v1260_v25 = vmax.f32 %v1056_v10, %v1176_v32  ;;  %v1262_v13 = vmax.f32 %v1008_v62, %v1200_v53  ;;  %v549_v15 = vmax.f32 %v6943_v16, %v467_v17 }
 0x127   : > { %v551_v61 = vmax.f32 %v466_v40, %v469_v14  ;;  %v6977_v59 = vmax.f32 %v1261_v0, %v6871_v50  ;;  %v552_v43 = vmax.f32 %v467_v17, %v470_v1  ;;  %v612_v12 = vmax.f32 %v6726_v38, %v6863_v34 }
 0x128   : > { %v6984_v56 = vmax.f32 %v1260_v25, %v6869_v57  ;;  %v6987_v51 = vmax.f32 %v1262_v13, %v6880_v27  ;;  %v613_v53 = vmax.f32 %v6737_v49, %v6883_v48  ;;  %v614_v0 = vmax.f32 %v6781_v35, %v6919_v54 }
 0x129   : > { %v6995_v14 = vmax.f32 %v6865_v20, %v6977_v59  ;;  %v6998_v18 = vmax.f32 %v1982_v24, %v6977_v59  ;;  %v615_v25 = vmax.f32 %v6841_v60, %v6951_v30  ;;  %v616_v13 = vmax.f32 %v6849_v42, %v6953_v23  ;;  %v9619_v23 = vld [vmem:[#allocation23_spill] sm:$0xff] }
 0x12a   : > { %9579 = vst [vmem:[#allocation74_spill] sm:$0xff] %v6987_v51  ;;  %v1364_v38 = vpack.c.bf16 %v6977_v59, %v6984_v56  ;;  %v7008_v49 = vmax.f32 %v6855_v5, %v6984_v56  ;;  %v7012_v35 = vmax.f32 %v6867_v37, %v6987_v51  ;;  %v9583_v20 = vmax.f32 %v6667_v9, %v6875_v46 }
 0x12b   : > { %9580 = vst [vmem:[#allocation75_spill] sm:$0xff] %v6995_v14  ;;  %v7021_v60 = vmax.f32 %v1983_v7, %v6987_v51  ;;  %v2093_v42 = vrot.slane %v6998_v18, 1  ;;  %v617_v50 = vmax.f32 %v6860_v31, %v545_v21  ;;  %v618_v5 = vmax.f32 %v6863_v34, %v546_v33  ;;  %v468_v7 = vld [vmem:[#allocation2 + $0x268] sm:$0xff] }
 0x12c   : > { %9581 = vst [vmem:[#allocation76_spill] sm:$0xff] %v7008_v49  ;;  %9582 = vst [vmem:[#allocation77_spill] sm:$0xff] %v7012_v35  ;;  %v7018_v57 = vmax.f32 %v9583_v20, %v6984_v56  ;;  %4642 = vmatprep.mubr.msk.bf16.mxu0 %vm272_vm1, %v1364_v38  ;;  %v619_v27 = vmax.f32 %v6883_v48, %v6960_v36  ;;  %v7031_v9 = vmax.f32 %v6919_v54, %v548_v8 }
 0x12d   : > { %v7034_v1 = vmax.f32 %v6951_v30, %v549_v15  ;;  %v9394_v24 = vrot.slane %v7021_v60, 1  ;;  %v7037_v32 = vmax.f32 %v545_v21, %v551_v61  ;;  %v7039_v31 = vmax.f32 %v546_v33, %v552_v43 }
 0x12e   : > { %v9395_v37 = vrot.slane %v7018_v57, 1  ;;  %9584 = vst [vmem:[#allocation78_spill] sm:$0xff] %v7031_v9  ;;  %v7042_v34 = vmax.f32 %v611_v41, %v6911_v4  ;;  %v7049_v8 = vmax.f32 %v612_v12, %v6930_v45  ;;  %v7051_v54 = vmax.f32 %v613_v53, %v462_v28 }
 0x12f   : > { %9585 = vst [vmem:[#allocation79_spill] sm:$0xff] %v7034_v1  ;;  %9586 = vst [vmem:[#allocation80_spill] sm:$0xff] %v7037_v32  ;;  %v7054_v30 = vmax.f32 %v614_v0, %v6941_v47  ;;  %v2133_v21 = vsel %vm772_vm2, %v2093_v42, %v9394_v24  ;;  %v7064_v61 = vmax.f32 %v615_v25, %v6943_v16  ;;  %v9601_v36 = vrot.slane %v5865_v2, 1 }
 0x130   : > { %9587 = vst [vmem:[#allocation81_spill] sm:$0xff] %v7039_v31  ;;  %v2153_v48 = vsel %vm772_vm2, %v9395_v37, %v2093_v42  ;;  %v7067_v4 = vmax.f32 %v616_v13, %v6945_v19  ;;  %v7070_v28 = vmax.f32 %v6998_v18, %v2133_v21  ;;  %v7072_v45 = vmax.f32 %v617_v50, %v466_v40 }
 0x131   : > { %v7061_v41 = vmax.f32 %v7018_v57, %v2153_v48  ;;  %v7074_v47 = vmax.f32 %v618_v5, %v467_v17  ;;  %v7076_v33 = vmax.f32 %v619_v27, %v468_v7  ;;  %v717_v62 = vrot.slane %v7042_v34, 1 }
 0x132   : > { %9588 = vst [vmem:[#allocation82_spill] sm:$0xff] %v7067_v4  ;;  %9589 = vst [vmem:[#allocation83_spill] sm:$0xff] %v7072_v45  ;;  %v718_v3 = vrot.slane %v7054_v30, 1  ;;  %v741_v10 = vrot.slane %v7049_v8, 1  ;;  %v742_v16 = vrot.slane %v7064_v61, 1  ;;  %v719_v19 = vrot.slane %v7072_v45, 1 }
 0x133   : > { %9590 = vst [vmem:[#allocation84_spill] sm:$0xff] %v7074_v47  ;;  %9591 = vst [vmem:[#allocation85_spill] sm:$0xff] %v7076_v33  ;;  %v743_v55 = vrot.slane %v7074_v47, 1  ;;  %v765_v15 = vrot.slane %v7051_v54, 1  ;;  %v766_v40 = vrot.slane %v7067_v4, 1  ;;  %v767_v17 = vrot.slane %v7076_v33, 1 }
 0x134   : > { %v816_v43 = vsel %vm772_vm2, %v717_v62, %v741_v10  ;;  %v817_v12 = vsel %vm772_vm2, %v718_v3, %v742_v16 }
 0x135   : > { %v792_v0 = vsel %vm772_vm2, %v741_v10, %v765_v15  ;;  %v793_v25 = vsel %vm772_vm2, %v742_v16, %v766_v40  ;;  %v818_v13 = vsel %vm772_vm2, %v719_v19, %v743_v55  ;;  %v840_v38 = vsel %vm772_vm2, %v765_v15, %v717_v62 }
 0x136   : > { %v794_v20 = vsel %vm772_vm2, %v743_v55, %v767_v17  ;;  %v841_v42 = vsel %vm772_vm2, %v766_v40, %v718_v3  ;;  %v842_v50 = vsel %vm772_vm2, %v767_v17, %v719_v19  ;;  %v902_v5 = vmax.f32 %v7042_v34, %v816_v43 }
 0x137   : > { %v903_v27 = vmax.f32 %v7049_v8, %v792_v0  ;;  %v904_v7 = vmax.f32 %v7051_v54, %v840_v38  ;;  %v7111_v48 = vmax.f32 %v7054_v30, %v817_v12  ;;  %v7114_v21 = vmax.f32 %v7064_v61, %v793_v25 }
 0x138   : > { %v7117_v62 = vmax.f32 %v7067_v4, %v841_v42  ;;  %v7120_v3 = vmax.f32 %v7072_v45, %v818_v13  ;;  %v7123_v10 = vmax.f32 %v7074_v47, %v794_v20  ;;  %v7126_v16 = vmax.f32 %v7076_v33, %v842_v50  ;;  %v9621_v33 = vld [vmem:[#allocation11_spill] sm:$0xff]  ;;  %v9624_v45 = vld [vmem:[#allocation14_spill] sm:$0xff] }
 0x139   : > { %9592 = vst [vmem:[#allocation86_spill] sm:$0xff] %v7111_v48  ;;  %9593 = vst [vmem:[#allocation87_spill] sm:$0xff] %v7114_v21  ;;  %v936_v19 = vrot.slane %v902_v5, 6  ;;  %v937_v55 = vrot.slane %v7111_v48, 6  ;;  %v960_v15 = vrot.slane %v903_v27, 6  ;;  %v9396_v40 = vrot.slane %v7114_v21, 6 }
 0x13a   : > { %9594 = vst [vmem:[#allocation88_spill] sm:$0xff] %v7117_v62  ;;  %9595 = vst [vmem:[#allocation89_spill] sm:$0xff] %v7120_v3  ;;  %v984_v12 = vrot.slane %v904_v7, 6  ;;  %v9397_v0 = vrot.slane %v7117_v62, 6  ;;  %v1081_v38 = vrot.slane %v902_v5, 1  ;;  %v9399_v20 = vrot.slane %v7111_v48, 1 }
 0x13b   : > { %9596 = vst [vmem:[#allocation90_spill] sm:$0xff] %v7123_v10  ;;  %9597 = vst [vmem:[#allocation91_spill] sm:$0xff] %v7126_v16  ;;  %v1033_v25 = vsel %vm989_vm3, %v936_v19, %v960_v15  ;;  %v1034_v13 = vsel %vm989_vm3, %v937_v55, %v9396_v40  ;;  %v1105_v24 = vrot.slane %v903_v27, 1  ;;  %v1106_v37 = vrot.slane %v7114_v21, 1 }
 0x13c   : > { %v1009_v42 = vsel %vm989_vm3, %v960_v15, %v984_v12  ;;  %v1057_v50 = vsel %vm989_vm3, %v984_v12, %v936_v19  ;;  %v1058_v17 = vsel %vm989_vm3, %v9397_v0, %v937_v55  ;;  %v1129_v40 = vrot.slane %v904_v7, 1 }
 0x13d   : > { %v9400_v53 = vrot.slane %v7117_v62, 1  ;;  %v1985_v15 = vmax.f32 %v6787_v52, %v6995_v14  ;;  %v1986_v19 = vmax.f32 %v6791_v39, %v7012_v35  ;;  %v9598_v12 = vrot.slane %v5577_v63, 1  ;;  %v9620_v14 = vld [vmem:[#allocation5_spill] sm:$0xff] }
 0x13e   : > { %v9599_v55 = vrot.slane %v5582_v26, 1  ;;  %v1153_v43 = vsel %vm772_vm2, %v1105_v24, %v1129_v40  ;;  %v1177_v7 = vsel %vm772_vm2, %v1081_v38, %v1105_v24  ;;  %v1178_v52 = vsel %vm772_vm2, %v9399_v20, %v1106_v37 }
 0x13f   : > { %v1201_v39 = vsel %vm772_vm2, %v1129_v40, %v1081_v38  ;;  %v1154_v5 = vsel %vm772_vm2, %v1106_v37, %v9400_v53  ;;  %v1266_v31 = vmax.f32 %v1058_v17, %v1178_v52  ;;  %v9600_v24 = vrot.slane %v5859_v6, 1 }
 0x140   : > { %v2160_v27 = vsel %vm772_vm2, %v9599_v55, %v9598_v12  ;;  %v1263_v12 = vmax.f32 %v1057_v50, %v1177_v7  ;;  %v1264_v55 = vmax.f32 %v1033_v25, %v1153_v43  ;;  %v1265_v0 = vmax.f32 %v1009_v42, %v1201_v39  ;;  %v9612_v42 = vld [vmem:[#allocation15_spill] sm:$0xff]  ;;  %v9613_v7 = vld [vmem:[#allocation12_spill] sm:$0xff]  ;;  %v9614_v39 = vld [vmem:[#allocation21_spill] sm:$0xff] }
 0x141   : > { %v1267_v32 = vmax.f32 %v1034_v13, %v1154_v5  ;;  %v2163_v20 = vsel %vm772_vm2, %v9601_v36, %v9600_v24  ;;  %v7183_v1 = vmax.f32 %v5582_v26, %v2160_v27  ;;  %v7192_v17 = vmax.f32 %v5665_v22, %v5685_v44  ;;  %v9605_v36 = vld [vmem:[#allocation20_spill] sm:$0xff] }
 0x142   : > { %v1335_v40 = vmax.f32 %v1263_v12, %v7042_v34  ;;  %v1336_v38 = vmax.f32 %v1264_v55, %v7049_v8  ;;  %v7188_v37 = vmax.f32 %v1265_v0, %v7051_v54  ;;  %v7195_v43 = vmax.f32 %v1266_v31, %v7054_v30  ;;  %v9615_v55 = vld [vmem:[#allocation25_spill] sm:$0xff] }
 0x143   : > { %v7198_v25 = vmax.f32 %v1267_v32, %v7064_v61  ;;  %v7202_v13 = vmax.f32 %v9605_v36, %v5780_v58  ;;  %v7205_v34 = vmax.f32 %v5865_v2, %v2163_v20  ;;  %v9608_v31 = vmax.f32 %v6772_v29, %v7008_v49 }
 0x144   : > { %9602 = vst [vmem:[#allocation92_spill] sm:$0xff] %v7188_v37  ;;  %9603 = vst [vmem:[#allocation93_spill] sm:$0xff] %v7195_v43  ;;  %v1365_v8 = vpack.c.bf16 %v1336_v38, %v1335_v40  ;;  %v7208_v54 = vmax.f32 %v6984_v56, %v1335_v40  ;;  %v7211_v44 = vmax.f32 %v6977_v59, %v1336_v38  ;;  %v2240_v50 = vrot.slane %v9612_v42, 6  ;;  %v9618_v56 = vld [vmem:[#allocation24_spill] sm:$0xff] }
 0x145   : > { %9604 = vst [vmem:[#allocation94_spill] sm:$0xff] %v7198_v25  ;;  %v7216_v30 = vmax.f32 %v9608_v31, %v1335_v40  ;;  %v7219_v32 = vmax.f32 %v1335_v40, %v7195_v43  ;;  %v7222_v58 = vmax.f32 %v1336_v38, %v7198_v25  ;;  %v7224_v61 = vmax.f32 %v1985_v15, %v1336_v38  ;;  %v9616_v40 = vld [vmem:[#allocation9_spill] sm:$0xff]  ;;  %v9617_v15 = vld [vmem:[#allocation19_spill] sm:$0xff] }
 0x146   : > { %9606 = vst [vmem:[#allocation20_spill] sm:$0xff] %v7208_v54  ;;  %9607 = vst [vmem:[#allocation95_spill] sm:$0xff] %v7211_v44  ;;  %v7227_v0 = vmax.f32 %v1986_v19, %v7188_v37  ;;  %4643 = vmatmul.mubr.msk.bf16.gmra.mxu0 %vm272_vm1, %v1365_v8  ;;  %v2241_v52 = vrot.slane %v9613_v7, 6  ;;  %v2242_v12 = vrot.slane %v9614_v39, 6  ;;  %v2243_v24 = vrot.slane %v9615_v55, 6 }
 0x147   : > { %9609 = vst [vmem:[#allocation96_spill] sm:$0xff] %v7219_v32  ;;  %9610 = vst [vmem:[#allocation97_spill] sm:$0xff] %v7222_v58  ;;  %v9409_v20 = vrot.slane %v7216_v30, 1  ;;  %v2094_v19 = vrot.slane %v7224_v61, 1  ;;  %v2260_v38 = vrot.slane %v9616_v40, 6  ;;  %v2261_v5 = vrot.slane %v9617_v15, 6 }
 0x148   : > { %v9407_v27 = vrot.slane %v7227_v0, 1  ;;  %v2262_v59 = vrot.slane %v9618_v56, 6  ;;  %v2263_v58 = vrot.slane %v9619_v23, 6  ;;  %v2279_v32 = vrot.slane %v9620_v14, 6 }
 0x149   : > { %v2154_v31 = vsel %vm772_vm2, %v9409_v20, %v2094_v19  ;;  %v2281_v49 = vrot.slane %v7192_v17, 6  ;;  %v2283_v20 = vrot.slane %v7205_v34, 6  ;;  %v9622_v47 = vrot.slane %v9621_v33, 6 }
 0x14a   : > { %v2134_v8 = vsel %vm772_vm2, %v2094_v19, %v9407_v27  ;;  %v7257_v53 = vmax.f32 %v7216_v30, %v2154_v31  ;;  %v2280_v27 = vrot.slane %v7183_v1, 6  ;;  %v2282_v19 = vrot.slane %v7202_v13, 6 }
 0x14b   : > { %v7260_v9 = vmax.f32 %v7224_v61, %v2134_v8  ;;  %v2299_v31 = vsel %vm989_vm3, %v9622_v47, %v2279_v32  ;;  %v9623_v8 = vmov %v9622_v47  ;;  %v9625_v35 = vrot.slane %v9624_v45, 6 }
 0x14c   : > { %v2320_v10 = vsel %vm989_vm3, %v2240_v50, %v2260_v38  ;;  %v7282_v16 = vsel %vm989_vm3, %v2241_v52, %v2261_v5  ;;  %v2300_v4 = vsel %vm989_vm3, %v2260_v38, %v2280_v27  ;;  %v2301_v47 = vsel %vm989_vm3, %v2261_v5, %v2281_v49 }
 0x14d   : > { %v2319_v3 = vsel %vm989_vm3, %v9625_v35, %v9623_v8  ;;  %v7290_v44 = vsel %vm989_vm3, %v2262_v59, %v2282_v19  ;;  %v7294_v35 = vsel %vm989_vm3, %v2263_v58, %v2283_v20  ;;  %v2322_v8 = vsel %vm989_vm3, %v2242_v12, %v2262_v59 }
 0x14e   : > { %v7300_v29 = vsel %vm989_vm3, %v2243_v24, %v2263_v58  ;;  %v9626_v38 = vrot.slane %v9624_v45, 6  ;;  %v2340_v25 = vsel %vm989_vm3, %v2280_v27, %v2240_v50  ;;  %v2341_v54 = vsel %vm989_vm3, %v2281_v49, %v2241_v52 }
 0x14f   : > { %v2342_v46 = vsel %vm989_vm3, %v2282_v19, %v2242_v12  ;;  %v2343_v59 = vsel %vm989_vm3, %v2283_v20, %v2243_v24  ;;  %v2360_v58 = vrot.slane %v9612_v42, 1  ;;  %v2361_v43 = vrot.slane %v9613_v7, 1 }
 0x150   : > { %v2339_v5 = vsel %vm989_vm3, %v2279_v32, %v9626_v38  ;;  %v2362_v51 = vrot.slane %v9614_v39, 1  ;;  %v2363_v32 = vrot.slane %v9615_v55, 1  ;;  %v2380_v38 = vrot.slane %v9616_v40, 1 }
 0x151   : > { %v2381_v50 = vrot.slane %v9617_v15, 1  ;;  %v2382_v49 = vrot.slane %v9618_v56, 1  ;;  %v2383_v27 = vrot.slane %v9619_v23, 1  ;;  %v2399_v52 = vrot.slane %v9620_v14, 1 }
 0x152   : > { %v2400_v20 = vrot.slane %v7183_v1, 1  ;;  %v2401_v42 = vrot.slane %v7192_v17, 1  ;;  %v2402_v7 = vrot.slane %v7202_v13, 1  ;;  %v2403_v39 = vrot.slane %v7205_v34, 1 }
 0x153   : > { %v9627_v12 = vrot.slane %v9621_v33, 1  ;;  %v9629_v56 = vrot.slane %v9624_v45, 1  ;;  %v2440_v14 = vsel %vm772_vm2, %v2360_v58, %v2380_v38  ;;  %v2441_v1 = vsel %vm772_vm2, %v2361_v43, %v2381_v50 }
 0x154   : > { %v2420_v17 = vsel %vm772_vm2, %v2380_v38, %v2400_v20  ;;  %v2421_v13 = vsel %vm772_vm2, %v2381_v50, %v2401_v42  ;;  %v2422_v33 = vsel %vm772_vm2, %v2382_v49, %v2402_v7  ;;  %v2423_v34 = vsel %vm772_vm2, %v2383_v27, %v2403_v39 }
 0x155   : > { %v2419_v55 = vsel %vm772_vm2, %v9627_v12, %v2399_v52  ;;  %v9628_v15 = vmov %v9627_v12  ;;  %v2442_v24 = vsel %vm772_vm2, %v2362_v51, %v2382_v49  ;;  %v2443_v40 = vsel %vm772_vm2, %v2363_v32, %v2383_v27 }
 0x156   : > { %v2439_v23 = vsel %vm772_vm2, %v9629_v56, %v9628_v15  ;;  %v9630_v19 = vmov %v9629_v56  ;;  %v2460_v50 = vsel %vm772_vm2, %v2400_v20, %v2360_v58  ;;  %v2461_v12 = vsel %vm772_vm2, %v2401_v42, %v2361_v43 }
 0x157   : > { %v2459_v38 = vsel %vm772_vm2, %v2399_v52, %v9630_v19  ;;  %v2462_v15 = vsel %vm772_vm2, %v2402_v7, %v2362_v51  ;;  %v2463_v49 = vsel %vm772_vm2, %v2403_v39, %v2363_v32  ;;  %v2479_v56 = vmax.f32 %v2339_v5, %v2439_v23  ;;  %v9631_v32 = vld [vmem:[#allocation13_spill] sm:$0xff]  ;;  %v9637_v39 = vld [vmem:[#allocation6_spill] sm:$0xff] }
 0x158   : > { %v2480_v37 = vmax.f32 %v2319_v3, %v2419_v55  ;;  %v2481_v27 = vmax.f32 %v2299_v31, %v2459_v38  ;;  %v2482_v48 = vmax.f32 %v2340_v25, %v2440_v14  ;;  %v2483_v45 = vmax.f32 %v2320_v10, %v2420_v17  ;;  %v9632_v3 = vld [vmem:[#allocation10_spill] sm:$0xff]  ;;  %v9633_v25 = vld [vmem:[#allocation8_spill] sm:$0xff]  ;;  %v9638_v55 = vld [vmem:[#allocation17_spill] sm:$0xff] }
 0x159   : > { %v2484_v21 = vmax.f32 %v2300_v4, %v2460_v50  ;;  %v2485_v62 = vmax.f32 %v2341_v54, %v2441_v1  ;;  %v2486_v52 = vmax.f32 %v7282_v16, %v2421_v13  ;;  %v2487_v19 = vmax.f32 %v2301_v47, %v2461_v12  ;;  %v9634_v54 = vld [vmem:[#allocation7_spill] sm:$0xff]  ;;  %v9635_v47 = vld [vmem:[#allocation18_spill] sm:$0xff] }
 0x15a   : > { %v2488_v58 = vmax.f32 %v2342_v46, %v2442_v24  ;;  %v2489_v20 = vmax.f32 %v2322_v8, %v2422_v33  ;;  %v2490_v43 = vmax.f32 %v7290_v44, %v2462_v15  ;;  %v2491_v42 = vmax.f32 %v2343_v59, %v2443_v40  ;;  %v9636_v44 = vld [vmem:[#allocation16_spill] sm:$0xff]  ;;  %v9640_v38 = vld [vmem:[#allocation26_spill] sm:$0xff]  ;;  %v9641_v50 = vld [vmem:[#allocation3_spill] sm:$0xff] }
 0x15b   : > { %v2492_v51 = vmax.f32 %v7300_v29, %v2423_v34  ;;  %v2493_v7 = vmax.f32 %v7294_v35, %v2463_v49  ;;  %v2539_v5 = vmax.f32 %v2479_v56, %v9631_v32  ;;  %v2540_v31 = vmax.f32 %v2480_v37, %v9632_v3  ;;  %v9642_v12 = vld [vmem:[#allocation27_spill] sm:$0xff] }
 0x15c   : > { %v2541_v10 = vmax.f32 %v2481_v27, %v9633_v25  ;;  %v2542_v4 = vmax.f32 %v2482_v48, %v5577_v63  ;;  %v2543_v16 = vmax.f32 %v2483_v45, %v9634_v54  ;;  %v2544_v46 = vmax.f32 %v2484_v21, %v5582_v26  ;;  %v9639_v63 = vld [vmem:[#allocation22_spill] sm:$0xff]  ;;  %v9648_v25 = vld [vmem:[#allocation28_spill] sm:$0xff] }
 0x15d   : > { %v2545_v8 = vmax.f32 %v2485_v62, %v9635_v47  ;;  %v2546_v59 = vmax.f32 %v2486_v52, %v9636_v44  ;;  %v2547_v29 = vmax.f32 %v2487_v19, %v5665_v22  ;;  %v2548_v35 = vmax.f32 %v2488_v58, %v9637_v39 }
 0x15e   : > { %v2549_v23 = vmax.f32 %v2489_v20, %v9638_v55  ;;  %v2550_v37 = vmax.f32 %v2490_v43, %v9605_v36  ;;  %v7382_v14 = vmax.f32 %v2491_v42, %v5859_v6  ;;  %v7385_v48 = vmax.f32 %v2492_v51, %v9639_v63  ;;  %v9644_v42 = vld [vmem:[#allocation4_spill] sm:$0xff] }
 0x15f   : > { %v7388_v26 = vmax.f32 %v2493_v7, %v5865_v2  ;;  %v2861_v21 = vmax.f32 %v2539_v5, %v2542_v4  ;;  %v2862_v62 = vmax.f32 %v2540_v31, %v2543_v16  ;;  %v2863_v1 = vmax.f32 %v2541_v10, %v2544_v46  ;;  %v9646_v7 = vld [vmem:[#allocation31_spill] sm:$0xff] }
 0x160   : > { %v2864_v17 = vmax.f32 %v2542_v4, %v2545_v8  ;;  %v2865_v22 = vmax.f32 %v2543_v16, %v2546_v59  ;;  %v2866_v13 = vmax.f32 %v2544_v46, %v2547_v29  ;;  %v7390_v33 = vmax.f32 %v2545_v8, %v2548_v35  ;;  %v9649_v4 = vld [vmem:[#allocation29_spill] sm:$0xff] }
 0x161   : > { %v7392_v34 = vmax.f32 %v2546_v59, %v2549_v23  ;;  %v7394_v36 = vmax.f32 %v2547_v29, %v2550_v37  ;;  %v7397_v6 = vmax.f32 %v2548_v35, %v7382_v14  ;;  %v7400_v24 = vmax.f32 %v2549_v23, %v7385_v48 }
 0x162   : > { %v7403_v2 = vmax.f32 %v2550_v37, %v7388_v26  ;;  %v2915_v40 = vmax.f32 %v2861_v21, %v7390_v33  ;;  %v9643_v15 = vmax.f32 %v9641_v50, %v9642_v12  ;;  %v2599_v56 = vpack.c.bf16 %v2546_v59, %v2545_v8  ;;  %v9650_v8 = vld [vmem:[#allocation32_spill] sm:$0xff] }
 0x163   : > { %v2916_v27 = vmax.f32 %v2862_v62, %v7392_v34  ;;  %v2917_v45 = vmax.f32 %v2863_v1, %v7394_v36  ;;  %v2918_v52 = vmax.f32 %v2864_v17, %v7397_v6  ;;  %v2919_v19 = vmax.f32 %v2865_v22, %v7400_v24 }
 0x164   : > { %v7410_v49 = vmax.f32 %v9643_v15, %v9640_v38  ;;  %v2920_v58 = vmax.f32 %v2866_v13, %v7403_v2  ;;  %v2963_v20 = vmax.f32 %v2915_v40, %v7382_v14  ;;  %4682 = vmatprep.mubr.msk.bf16.mxu0 %vm272_vm1, %v2599_v56  ;;  %v2600_v43 = vpack.c.bf16 %v2549_v23, %v2548_v35  ;;  %v9651_v23 = vld [vmem:[#allocation33_spill] sm:$0xff] }
 0x165   : > { %v9645_v51 = vrot.slane %v9644_v42, 1  ;;  %v9647_v32 = vrot.slane %v9646_v7, 1  ;;  %v2964_v3 = vmax.f32 %v2916_v27, %v7385_v48  ;;  %v2965_v31 = vmax.f32 %v2917_v45, %v7388_v26 }
 0x166   : > { %v2966_v10 = vmax.f32 %v2918_v52, %v9648_v25  ;;  %v2967_v54 = vmax.f32 %v2919_v19, %v9649_v4  ;;  %v3011_v16 = vrot.slane %v2963_v20, 1  ;;  %v2968_v46 = vmax.f32 %v2920_v58, %v7410_v49  ;;  %4683 = vmatmul.mubr.msk.bf16.vlgmr.msra.gmra.mxu0 %vm272_vm1, %v2600_v43 }
 0x167   : > { %v2165_v5 = vsel %vm772_vm2, %v9647_v32, %v9645_v51  ;;  %v2245_v44 = vrot.slane %v9650_v8, 6  ;;  %v3027_v59 = vrot.slane %v2964_v3, 1  ;;  %v3043_v29 = vrot.slane %v2965_v31, 1 }
 0x168   : > { %v7432_v47 = vmax.f32 %v9646_v7, %v2165_v5  ;;  %v3012_v39 = vrot.slane %v2966_v10, 1  ;;  %v3028_v35 = vrot.slane %v2967_v54, 1  ;;  %v3044_v55 = vrot.slane %v2968_v46, 1 }
 0x169   : > { %v2265_v37 = vrot.slane %v9651_v23, 6  ;;  %v2365_v21 = vrot.slane %v9650_v8, 1  ;;  %v3059_v62 = vsel %vm772_vm2, %v3027_v59, %v3043_v29  ;;  %v3075_v1 = vsel %vm772_vm2, %v3011_v16, %v3027_v59 }
 0x16a   : > { %v2285_v63 = vrot.slane %v7432_v47, 6  ;;  %v3091_v17 = vsel %vm772_vm2, %v3043_v29, %v3011_v16  ;;  %v3076_v22 = vsel %vm772_vm2, %v3012_v39, %v3028_v35  ;;  %v3107_v13 = vmax.f32 %v2963_v20, %v3075_v1 }
 0x16b   : > { %v3108_v40 = vmax.f32 %v2964_v3, %v3059_v62  ;;  %v3109_v38 = vmax.f32 %v2965_v31, %v3091_v17  ;;  %v3060_v50 = vsel %vm772_vm2, %v3028_v35, %v3044_v55  ;;  %v3092_v12 = vsel %vm772_vm2, %v3044_v55, %v3012_v39 }
 0x16c   : > { %v3110_v15 = vmax.f32 %v2966_v10, %v3076_v22  ;;  %v3111_v56 = vmax.f32 %v2967_v54, %v3060_v50  ;;  %v2305_v27 = vsel %vm989_vm3, %v2265_v37, %v2285_v63  ;;  %v3155_v45 = vrot.slane %v3107_v13, 6 }
 0x16d   : > { %v3171_v52 = vrot.slane %v3108_v40, 6  ;;  %v3187_v19 = vrot.slane %v3109_v38, 6  ;;  %v3235_v58 = vrot.slane %v3107_v13, 1  ;;  %v3251_v43 = vrot.slane %v3108_v40, 1 }
 0x16e   : > { %v3267_v51 = vrot.slane %v3109_v38, 1  ;;  %v3112_v32 = vmax.f32 %v2968_v46, %v3092_v12  ;;  %v3156_v5 = vrot.slane %v3110_v15, 6  ;;  %v3172_v8 = vrot.slane %v3111_v56, 6 }
 0x16f   : > { %v3203_v31 = vsel %vm989_vm3, %v3155_v45, %v3171_v52  ;;  %v3219_v16 = vsel %vm989_vm3, %v3187_v19, %v3155_v45  ;;  %v3236_v59 = vrot.slane %v3110_v15, 1  ;;  %v3299_v39 = vsel %vm772_vm2, %v3235_v58, %v3251_v43 }
 0x170   : > { %v3283_v29 = vsel %vm772_vm2, %v3251_v43, %v3267_v51  ;;  %v3188_v35 = vrot.slane %v3112_v32, 6  ;;  %v3252_v55 = vrot.slane %v3111_v56, 1  ;;  %v3315_v62 = vmax.f32 %v3219_v16, %v3299_v39  ;;  %v9652_v16 = vld [vmem:[#allocation35_spill] sm:$0xff] }
 0x171   : > { %v3316_v1 = vmax.f32 %v3203_v31, %v3283_v29  ;;  %v3204_v46 = vsel %vm989_vm3, %v3156_v5, %v3172_v8  ;;  %v3268_v17 = vrot.slane %v3112_v32, 1  ;;  %v2325_v40 = vsel %vm989_vm3, %v2245_v44, %v2265_v37 }
 0x172   : > { %v3220_v22 = vsel %vm989_vm3, %v3188_v35, %v3156_v5  ;;  %v3300_v13 = vsel %vm772_vm2, %v3236_v59, %v3252_v55  ;;  %v2345_v38 = vsel %vm989_vm3, %v2285_v63, %v2245_v44  ;;  %v3347_v50 = vmax.f32 %v3315_v62, %v2963_v20  ;;  %v9654_v59 = vld [vmem:[#allocation36_spill] sm:$0xff]  ;;  %v9658_v62 = vld [vmem:[#allocation38_spill] sm:$0xff] }
 0x173   : > { %v3348_v12 = vmax.f32 %v3316_v1, %v2964_v3  ;;  %v3284_v15 = vsel %vm772_vm2, %v3252_v55, %v3268_v17  ;;  %v3317_v56 = vmax.f32 %v3220_v22, %v3300_v13  ;;  %v2385_v52 = vrot.slane %v9651_v23, 1 }
 0x174   : > { %v3318_v45 = vmax.f32 %v3204_v46, %v3284_v15  ;;  %v2405_v19 = vrot.slane %v7432_v47, 1  ;;  %v7476_v58 = vmax.f32 %v7382_v14, %v9648_v25  ;;  %v7480_v44 = vmax.f32 %v7385_v48, %v9649_v4 }
 0x175   : > { %v3379_v43 = vpack.c.bf16 %v3348_v12, %v3347_v50  ;;  %v3349_v37 = vmax.f32 %v3317_v56, %v2966_v10  ;;  %v7484_v20 = vmax.f32 %v7388_v26, %v7410_v49  ;;  %v2445_v47 = vsel %vm772_vm2, %v2365_v21, %v2385_v52 }
 0x176   : > { %v3350_v3 = vmax.f32 %v3318_v45, %v2967_v54  ;;  %v2425_v23 = vsel %vm772_vm2, %v2385_v52, %v2405_v19  ;;  %v2465_v63 = vsel %vm772_vm2, %v2405_v19, %v2365_v21  ;;  %v2497_v10 = vmax.f32 %v2345_v38, %v2445_v47 }
 0x177   : > { %4716 = vmatprep.mubr.msk.bf16.mxu1 %vm272_vm1, %v3379_v43  ;;  %v2498_v51 = vmax.f32 %v2325_v40, %v2425_v23  ;;  %v2499_v32 = vmax.f32 %v2305_v27, %v2465_v63  ;;  %v2921_v5 = vmax.f32 %v7390_v33, %v7476_v58  ;;  %v2922_v54 = vmax.f32 %v7392_v34, %v7480_v44  ;;  %v9656_v27 = vld [vmem:[#allocation30_spill] sm:$0xff] }
 0x178   : > { %v3380_v26 = vpack.c.bf16 %v3350_v3, %v3349_v37  ;;  %v2923_v31 = vmax.f32 %v7394_v36, %v7484_v20  ;;  %v9653_v8 = vrot.slane %v9652_v16, 1  ;;  %v9655_v29 = vrot.slane %v9654_v59, 1  ;;  %v9657_v36 = vld [vmem:[#allocation37_spill] sm:$0xff] }
 0x179   : > { %v7506_v39 = vmax.f32 %v2497_v10, %v9644_v42  ;;  %v7509_v35 = vmax.f32 %v2498_v51, %v9656_v27  ;;  %v7512_v33 = vmax.f32 %v2499_v32, %v9646_v7  ;;  %v2246_v55 = vrot.slane %v9657_v36, 6 }
 0x17a   : > { %v2166_v21 = vsel %vm772_vm2, %v9655_v29, %v9653_v8  ;;  %4717 = vmatmul.mubr.msk.bf16.vlgmr.msra.gmra.mxu1 %vm272_vm1, %v3380_v26  ;;  %v2266_v1 = vrot.slane %v9658_v62, 6  ;;  %v2366_v46 = vrot.slane %v9657_v36, 1  ;;  %v2386_v17 = vrot.slane %v9658_v62, 1 }
 0x17b   : > { %v2202_v34 = vmax.f32 %v9654_v59, %v2166_v21  ;;  %v2969_v42 = vmax.f32 %v2921_v5, %v7506_v39  ;;  %v2970_v22 = vmax.f32 %v2922_v54, %v7509_v35  ;;  %v2971_v13 = vmax.f32 %v2923_v31, %v7512_v33 }
 0x17c   : > { %v2326_v40 = vsel %vm989_vm3, %v2246_v55, %v2266_v1  ;;  %v2446_v50 = vsel %vm772_vm2, %v2366_v46, %v2386_v17  ;;  %v7529_v12 = vmax.f32 %v9648_v25, %v7506_v39  ;;  %v7541_v3 = vmax.f32 %v9649_v4, %v7509_v35 }
 0x17d   : > { %v2286_v7 = vrot.slane %v2202_v34, 6  ;;  %v2406_v38 = vrot.slane %v2202_v34, 1  ;;  %v3013_v15 = vrot.slane %v2969_v42, 1  ;;  %v3029_v56 = vrot.slane %v2970_v22, 1 }
 0x17e   : > { %v3045_v45 = vrot.slane %v2971_v13, 1  ;;  %v7554_v8 = vmax.f32 %v7410_v49, %v7512_v33  ;;  %v2924_v29 = vmax.f32 %v7397_v6, %v7529_v12  ;;  %v2925_v6 = vmax.f32 %v7400_v24, %v7541_v3 }
 0x17f   : > { %v2306_v52 = vsel %vm989_vm3, %v2266_v1, %v2286_v7  ;;  %v2346_v19 = vsel %vm989_vm3, %v2286_v7, %v2246_v55  ;;  %v2426_v43 = vsel %vm772_vm2, %v2386_v17, %v2406_v38  ;;  %v2466_v37 = vsel %vm772_vm2, %v2406_v38, %v2366_v46  ;;  %v9659_v1 = vld [vmem:[#allocation34_spill] sm:$0xff] }
 0x180   : > { %v3061_v23 = vsel %vm772_vm2, %v3029_v56, %v3045_v45  ;;  %v3077_v47 = vsel %vm772_vm2, %v3013_v15, %v3029_v56  ;;  %v3093_v63 = vsel %vm772_vm2, %v3045_v45, %v3013_v15  ;;  %v2500_v10 = vmax.f32 %v2346_v19, %v2446_v50 }
 0x181   : > { %v3113_v51 = vmax.f32 %v2969_v42, %v3077_v47  ;;  %v3114_v32 = vmax.f32 %v2970_v22, %v3061_v23  ;;  %v3115_v5 = vmax.f32 %v2971_v13, %v3093_v63  ;;  %v2501_v26 = vmax.f32 %v2326_v40, %v2426_v43  ;;  %v9662_v43 = vld [vmem:[#allocation41_spill] sm:$0xff] }
 0x182   : > { %v2502_v54 = vmax.f32 %v2306_v52, %v2466_v37  ;;  %v7550_v31 = vmax.f32 %v2500_v10, %v9652_v16  ;;  %v2926_v13 = vmax.f32 %v7403_v2, %v7554_v8  ;;  %v2601_v38 = vpack.c.bf16 %v7385_v48, %v7382_v14  ;;  %v9660_v52 = vld [vmem:[#allocation39_spill] sm:$0xff]  ;;  %v9664_v14 = vld [vmem:[#allocation42_spill] sm:$0xff] }
 0x183   : > { %v3157_v21 = vrot.slane %v3113_v51, 6  ;;  %v3173_v27 = vrot.slane %v3114_v32, 6  ;;  %v3189_v34 = vrot.slane %v3115_v5, 6  ;;  %v3237_v36 = vrot.slane %v3113_v51, 1 }
 0x184   : > { %v3253_v55 = vrot.slane %v3114_v32, 1  ;;  %v3269_v62 = vrot.slane %v3115_v5, 1  ;;  %v7559_v46 = vmax.f32 %v2501_v26, %v9659_v1  ;;  %v7562_v17 = vmax.f32 %v2502_v54, %v9654_v59  ;;  %4686 = vmatprep.mubr.msk.bf16.mxu0 %vm272_vm1, %v2601_v38  ;;  %v9665_v5 = vld [vmem:[#allocation43_spill] sm:$0xff] }
 0x185   : > { %v3205_v16 = vsel %vm989_vm3, %v3157_v21, %v3173_v27  ;;  %v3221_v49 = vsel %vm989_vm3, %v3189_v34, %v3157_v21  ;;  %v2972_v59 = vmax.f32 %v2924_v29, %v7550_v31  ;;  %v2602_v2 = vpack.c.bf16 %v9649_v4, %v9648_v25 }
 0x186   : > { %v3285_v7 = vsel %vm772_vm2, %v3253_v55, %v3269_v62  ;;  %v3301_v40 = vsel %vm772_vm2, %v3237_v36, %v3253_v55  ;;  %v2973_v56 = vmax.f32 %v2925_v6, %v7559_v46  ;;  %v2974_v24 = vmax.f32 %v2926_v13, %v7562_v17 }
 0x187   : > { %v3319_v50 = vmax.f32 %v3221_v49, %v3301_v40  ;;  %v3320_v15 = vmax.f32 %v3205_v16, %v3285_v7  ;;  %v3014_v45 = vrot.slane %v2972_v59, 1  ;;  %v9661_v19 = vrot.slane %v9660_v52, 1  ;;  %4687 = vmatmul.mubr.msk.bf16.gmra.mxu0 %vm272_vm1, %v2602_v2 }
 0x188   : > { %v9663_v37 = vrot.slane %v9662_v43, 1  ;;  %v2247_v48 = vrot.slane %v9664_v14, 6  ;;  %v3030_v10 = vrot.slane %v2973_v56, 1  ;;  %v3046_v51 = vrot.slane %v2974_v24, 1 }
 0x189   : > { %v3351_v47 = vmax.f32 %v3319_v50, %v2969_v42  ;;  %v3352_v63 = vmax.f32 %v3320_v15, %v2970_v22  ;;  %v2267_v26 = vrot.slane %v9665_v5, 6  ;;  %v2367_v25 = vrot.slane %v9664_v14, 1 }
 0x18a   : > { %v2167_v23 = vsel %vm772_vm2, %v9663_v37, %v9661_v19  ;;  %v2387_v4 = vrot.slane %v9665_v5, 1  ;;  %v3062_v29 = vsel %vm772_vm2, %v3030_v10, %v3046_v51  ;;  %v3078_v42 = vsel %vm772_vm2, %v3014_v45, %v3030_v10  ;;  %v9666_v5 = vld [vmem:[#allocation40_spill] sm:$0xff] }
 0x18b   : > { %v2205_v32 = vmax.f32 %v9662_v43, %v2167_v23  ;;  %v3381_v54 = vpack.c.bf16 %v3352_v63, %v3351_v47  ;;  %v3094_v22 = vsel %vm772_vm2, %v3046_v51, %v3014_v45  ;;  %v3116_v21 = vmax.f32 %v2972_v59, %v3078_v42 }
 0x18c   : > { %v3117_v27 = vmax.f32 %v2973_v56, %v3062_v29  ;;  %v3118_v34 = vmax.f32 %v2974_v24, %v3094_v22  ;;  %v2327_v55 = vsel %vm989_vm3, %v2247_v48, %v2267_v26  ;;  %v2447_v1 = vsel %vm772_vm2, %v2367_v25, %v2387_v4 }
 0x18d   : > { %v2287_v36 = vrot.slane %v2205_v32, 6  ;;  %4720 = vmatprep.mubr.msk.bf16.mxu1 %vm272_vm1, %v3381_v54  ;;  %v2407_v62 = vrot.slane %v2205_v32, 1  ;;  %v7609_v16 = vmax.f32 %v7506_v39, %v7550_v31  ;;  %v3158_v49 = vrot.slane %v3116_v21, 6 }
 0x18e   : > { %v3174_v6 = vrot.slane %v3117_v27, 6  ;;  %v3190_v13 = vrot.slane %v3118_v34, 6  ;;  %v3238_v7 = vrot.slane %v3116_v21, 1  ;;  %v3254_v40 = vrot.slane %v3117_v27, 1  ;;  %v9667_v27 = vld [vmem:[#allocation44_spill] sm:$0xff] }
 0x18f   : > { %v3270_v38 = vrot.slane %v3118_v34, 1  ;;  %v2307_v50 = vsel %vm989_vm3, %v2267_v26, %v2287_v36  ;;  %v2347_v15 = vsel %vm989_vm3, %v2287_v36, %v2247_v48  ;;  %v2427_v2 = vsel %vm772_vm2, %v2387_v4, %v2407_v62 }
 0x190   : > { %v3206_v24 = vsel %vm989_vm3, %v3158_v49, %v3174_v6  ;;  %v3222_v45 = vsel %vm989_vm3, %v3190_v13, %v3158_v49  ;;  %v2467_v19 = vsel %vm772_vm2, %v2407_v62, %v2367_v25  ;;  %v3302_v23 = vsel %vm772_vm2, %v3238_v7, %v3254_v40 }
 0x191   : > { %v3286_v37 = vsel %vm772_vm2, %v3254_v40, %v3270_v38  ;;  %v2503_v14 = vmax.f32 %v2347_v15, %v2447_v1  ;;  %v2504_v48 = vmax.f32 %v2327_v55, %v2427_v2  ;;  %v3321_v47 = vmax.f32 %v3222_v45, %v3302_v23 }
 0x192   : > { %v3322_v63 = vmax.f32 %v3206_v24, %v3286_v37  ;;  %v2505_v10 = vmax.f32 %v2307_v50, %v2467_v19  ;;  %v7629_v51 = vmax.f32 %v7509_v35, %v7559_v46  ;;  %v7639_v25 = vmax.f32 %v7512_v33, %v7562_v17  ;;  %v9669_v33 = vld [vmem:[#allocation46_spill] sm:$0xff] }
 0x193   : > { %v7632_v32 = vmax.f32 %v2503_v14, %v9660_v52  ;;  %v7635_v26 = vmax.f32 %v2504_v48, %v9666_v5  ;;  %v2927_v4 = vmax.f32 %v7476_v58, %v7609_v16  ;;  %v3353_v54 = vmax.f32 %v3321_v47, %v2972_v59  ;;  %v9671_v59 = vld [vmem:[#allocation47_spill] sm:$0xff] }
 0x194   : > { %v3354_v29 = vmax.f32 %v3322_v63, %v2973_v56  ;;  %v7644_v42 = vmax.f32 %v2505_v10, %v9662_v43  ;;  %v2928_v22 = vmax.f32 %v7480_v44, %v7629_v51  ;;  %v2929_v52 = vmax.f32 %v7484_v20, %v7639_v25  ;;  %v9672_v44 = vld [vmem:[#allocation48_spill] sm:$0xff] }
 0x195   : > { %v2975_v21 = vmax.f32 %v2927_v4, %v7632_v32  ;;  %v9668_v34 = vrot.slane %v9667_v27, 1  ;;  %v9670_v36 = vrot.slane %v9669_v33, 1  ;;  %v2248_v56 = vrot.slane %v9671_v59, 6 }
 0x196   : > { %v3382_v55 = vpack.c.bf16 %v3354_v29, %v3353_v54  ;;  %v2976_v43 = vmax.f32 %v2928_v22, %v7635_v26  ;;  %v2268_v1 = vrot.slane %v9672_v44, 6  ;;  %v2977_v20 = vmax.f32 %v2929_v52, %v7644_v42 }
 0x197   : > { %v2168_v58 = vsel %vm772_vm2, %v9670_v36, %v9668_v34  ;;  %v3015_v49 = vrot.slane %v2975_v21, 1  ;;  %v2368_v6 = vrot.slane %v9671_v59, 1  ;;  %v2388_v13 = vrot.slane %v9672_v44, 1  ;;  %v9673_v44 = vld [vmem:[#allocation45_spill] sm:$0xff] }
 0x198   : > { %v2208_v62 = vmax.f32 %v9669_v33, %v2168_v58  ;;  %4721 = vmatmul.mubr.msk.bf16.gmra.mxu1 %vm272_vm1, %v3382_v55  ;;  %v3031_v7 = vrot.slane %v2976_v43, 1  ;;  %v2328_v38 = vsel %vm989_vm3, %v2248_v56, %v2268_v1  ;;  %v3047_v15 = vrot.slane %v2977_v20, 1 }
 0x199   : > { %v2448_v24 = vsel %vm772_vm2, %v2368_v6, %v2388_v13  ;;  %v7671_v45 = vmax.f32 %v7550_v31, %v7632_v32  ;;  %v7675_v2 = vmax.f32 %v7559_v46, %v7635_v26  ;;  %v7693_v36 = vmax.f32 %v7562_v17, %v7644_v42 }
 0x19a   : > { %v2288_v40 = vrot.slane %v2208_v62, 6  ;;  %v2408_v50 = vrot.slane %v2208_v62, 1  ;;  %v3079_v19 = vsel %vm772_vm2, %v3015_v49, %v3031_v7  ;;  %v3063_v48 = vsel %vm772_vm2, %v3031_v7, %v3047_v15 }
 0x19b   : > { %v3095_v47 = vsel %vm772_vm2, %v3047_v15, %v3015_v49  ;;  %v3119_v63 = vmax.f32 %v2975_v21, %v3079_v19  ;;  %v3120_v5 = vmax.f32 %v2976_v43, %v3063_v48  ;;  %v2930_v49 = vmax.f32 %v7529_v12, %v7671_v45 }
 0x19c   : > { %v2308_v37 = vsel %vm989_vm3, %v2268_v1, %v2288_v40  ;;  %v2348_v23 = vsel %vm989_vm3, %v2288_v40, %v2248_v56  ;;  %v2428_v14 = vsel %vm772_vm2, %v2388_v13, %v2408_v50  ;;  %v2468_v10 = vsel %vm772_vm2, %v2408_v50, %v2368_v6 }
 0x19d   : > { %v3121_v4 = vmax.f32 %v2977_v20, %v3095_v47  ;;  %v2506_v54 = vmax.f32 %v2348_v23, %v2448_v24  ;;  %v2507_v29 = vmax.f32 %v2328_v38, %v2428_v14  ;;  %v3159_v22 = vrot.slane %v3119_v63, 6  ;;  %v9674_v24 = vld [vmem:[#allocation50_spill] sm:$0xff] }
 0x19e   : > { %v3239_v52 = vrot.slane %v3119_v63, 1  ;;  %v2508_v34 = vmax.f32 %v2308_v37, %v2468_v10  ;;  %v3175_v58 = vrot.slane %v3120_v5, 6  ;;  %v3255_v56 = vrot.slane %v3120_v5, 1  ;;  %v9676_v37 = vld [vmem:[#allocation51_spill] sm:$0xff] }
 0x19f   : > { %v3191_v59 = vrot.slane %v3121_v4, 6  ;;  %v3271_v55 = vrot.slane %v3121_v4, 1  ;;  %v7696_v62 = vmax.f32 %v2506_v54, %v9667_v27  ;;  %v7699_v1 = vmax.f32 %v2507_v29, %v9673_v44 }
 0x1a0   : > { %v7702_v20 = vmax.f32 %v2508_v34, %v9669_v33  ;;  %v3207_v17 = vsel %vm989_vm3, %v3159_v22, %v3175_v58  ;;  %v3303_v27 = vsel %vm772_vm2, %v3239_v52, %v3255_v56  ;;  %v2931_v33 = vmax.f32 %v7541_v3, %v7675_v2 }
 0x1a1   : > { %v3223_v6 = vsel %vm989_vm3, %v3191_v59, %v3159_v22  ;;  %v3287_v13 = vsel %vm772_vm2, %v3255_v56, %v3271_v55  ;;  %v2932_v12 = vmax.f32 %v7554_v8, %v7693_v36  ;;  %v2978_v38 = vmax.f32 %v2930_v49, %v7696_v62 }
 0x1a2   : > { %v3323_v7 = vmax.f32 %v3223_v6, %v3303_v27  ;;  %v3324_v40 = vmax.f32 %v3207_v17, %v3287_v13  ;;  %v2603_v50 = vpack.c.bf16 %v7509_v35, %v7506_v39  ;;  %v2604_v15 = vpack.c.bf16 %v7559_v46, %v7550_v31  ;;  %v9678_v35 = vld [vmem:[#allocation52_spill] sm:$0xff]  ;;  %v9679_v46 = vld [vmem:[#allocation53_spill] sm:$0xff] }
 0x1a3   : > { %v9675_v19 = vrot.slane %v9674_v24, 1  ;;  %v9677_v23 = vrot.slane %v9676_v37, 1  ;;  %v2979_v47 = vmax.f32 %v2931_v33, %v7699_v1  ;;  %v2980_v8 = vmax.f32 %v2932_v12, %v7702_v20 }
 0x1a4   : > { %v3355_v48 = vmax.f32 %v3323_v7, %v2975_v21  ;;  %v3356_v3 = vmax.f32 %v3324_v40, %v2976_v43  ;;  %v3016_v63 = vrot.slane %v2978_v38, 1  ;;  %4690 = vmatprep.mubr.msk.bf16.mxu0 %vm272_vm1, %v2603_v50  ;;  %v2249_v31 = vrot.slane %v9678_v35, 6 }
 0x1a5   : > { %v2169_v14 = vsel %vm772_vm2, %v9677_v23, %v9675_v19  ;;  %v2269_v10 = vrot.slane %v9679_v46, 6  ;;  %v3032_v4 = vrot.slane %v2979_v47, 1  ;;  %v3048_v54 = vrot.slane %v2980_v8, 1  ;;  %4691 = vmatmul.mubr.msk.bf16.gmra.mxu0 %vm272_vm1, %v2604_v15 }
 0x1a6   : > { %v2211_v39 = vmax.f32 %v9676_v37, %v2169_v14  ;;  %v3383_v5 = vpack.c.bf16 %v3356_v3, %v3355_v48  ;;  %v2369_v21 = vrot.slane %v9678_v35, 1  ;;  %v2389_v22 = vrot.slane %v9679_v46, 1  ;;  %v9680_v46 = vld [vmem:[#allocation49_spill] sm:$0xff] }
 0x1a7   : > { %v2329_v29 = vsel %vm989_vm3, %v2249_v31, %v2269_v10  ;;  %v3064_v34 = vsel %vm772_vm2, %v3032_v4, %v3048_v54  ;;  %v3080_v58 = vsel %vm772_vm2, %v3016_v63, %v3032_v4  ;;  %v3096_v59 = vsel %vm772_vm2, %v3048_v54, %v3016_v63 }
 0x1a8   : > { %v2289_v43 = vrot.slane %v2211_v39, 6  ;;  %v2409_v52 = vrot.slane %v2211_v39, 1  ;;  %4724 = vmatprep.mubr.msk.bf16.mxu1 %vm272_vm1, %v3383_v5  ;;  %v7749_v56 = vmax.f32 %v7632_v32, %v7696_v62  ;;  %v3122_v55 = vmax.f32 %v2978_v38, %v3080_v58 }
 0x1a9   : > { %v3123_v44 = vmax.f32 %v2979_v47, %v3064_v34  ;;  %v3124_v49 = vmax.f32 %v2980_v8, %v3096_v59  ;;  %v2449_v27 = vsel %vm772_vm2, %v2369_v21, %v2389_v22  ;;  %v7767_v63 = vmax.f32 %v7635_v26, %v7699_v1  ;;  %v9685_v59 = vld [vmem:[#allocation57_spill] sm:$0xff] }
 0x1aa   : > { %v2309_v17 = vsel %vm989_vm3, %v2269_v10, %v2289_v43  ;;  %v2349_v6 = vsel %vm989_vm3, %v2289_v43, %v2249_v31  ;;  %v2429_v13 = vsel %vm772_vm2, %v2389_v22, %v2409_v52  ;;  %v2469_v7 = vsel %vm772_vm2, %v2409_v52, %v2369_v21  ;;  %v9683_v52 = vld [vmem:[#allocation56_spill] sm:$0xff] }
 0x1ab   : > { %v3160_v40 = vrot.slane %v3122_v55, 6  ;;  %v3176_v33 = vrot.slane %v3123_v44, 6  ;;  %v3192_v12 = vrot.slane %v3124_v49, 6  ;;  %v3240_v50 = vrot.slane %v3122_v55, 1 }
 0x1ac   : > { %v3256_v15 = vrot.slane %v3123_v44, 1  ;;  %v3272_v19 = vrot.slane %v3124_v49, 1  ;;  %v2509_v23 = vmax.f32 %v2349_v6, %v2449_v27  ;;  %v2510_v14 = vmax.f32 %v2329_v29, %v2429_v13 }
 0x1ad   : > { %v3208_v48 = vsel %vm989_vm3, %v3160_v40, %v3176_v33  ;;  %v3224_v3 = vsel %vm989_vm3, %v3192_v12, %v3160_v40  ;;  %v2511_v8 = vmax.f32 %v2309_v17, %v2469_v7  ;;  %v7784_v21 = vmax.f32 %v7644_v42, %v7702_v20  ;;  %v9686_v17 = vld [vmem:[#allocation58_spill] sm:$0xff] }
 0x1ae   : > { %v3288_v39 = vsel %vm772_vm2, %v3256_v15, %v3272_v19  ;;  %v3304_v35 = vsel %vm772_vm2, %v3240_v50, %v3256_v15  ;;  %v7774_v31 = vmax.f32 %v2509_v23, %v9674_v24  ;;  %v7777_v10 = vmax.f32 %v2510_v14, %v9680_v46  ;;  %v9681_v24 = vld [vmem:[#allocation54_spill] sm:$0xff] }
 0x1af   : > { %v3325_v5 = vmax.f32 %v3224_v3, %v3304_v35  ;;  %v3326_v4 = vmax.f32 %v3208_v48, %v3288_v39  ;;  %v7780_v54 = vmax.f32 %v2511_v8, %v9676_v37  ;;  %v2933_v43 = vmax.f32 %v7609_v16, %v7749_v56 }
 0x1b0   : > { %v2934_v29 = vmax.f32 %v7629_v51, %v7767_v63  ;;  %v9682_v22 = vrot.slane %v9681_v24, 1  ;;  %v9684_v34 = vrot.slane %v9683_v52, 1  ;;  %v2250_v37 = vrot.slane %v9685_v59, 6 }
 0x1b1   : > { %v3357_v55 = vmax.f32 %v3325_v5, %v2978_v38  ;;  %v3358_v44 = vmax.f32 %v3326_v4, %v2979_v47  ;;  %v2935_v42 = vmax.f32 %v7639_v25, %v7784_v21  ;;  %v2981_v16 = vmax.f32 %v2933_v43, %v7774_v31 }
 0x1b2   : > { %v2170_v58 = vsel %vm772_vm2, %v9684_v34, %v9682_v22  ;;  %v2982_v51 = vmax.f32 %v2934_v29, %v7777_v10  ;;  %v2270_v6 = vrot.slane %v9686_v17, 6  ;;  %v2370_v13 = vrot.slane %v9685_v59, 1  ;;  %v9687_v59 = vld [vmem:[#allocation55_spill] sm:$0xff] }
 0x1b3   : > { %v2214_v49 = vmax.f32 %v9683_v52, %v2170_v58  ;;  %v3384_v27 = vpack.c.bf16 %v3358_v44, %v3357_v55  ;;  %v2983_v7 = vmax.f32 %v2935_v42, %v7780_v54  ;;  %v2390_v38 = vrot.slane %v9686_v17, 1 }
 0x1b4   : > { %v3017_v47 = vrot.slane %v2981_v16, 1  ;;  %v3033_v33 = vrot.slane %v2982_v51, 1  ;;  %v2330_v25 = vsel %vm989_vm3, %v2250_v37, %v2270_v6  ;;  %v7833_v55 = vmax.f32 %v7696_v62, %v7774_v31 }
 0x1b5   : > { %v2290_v40 = vrot.slane %v2214_v49, 6  ;;  %v2410_v12 = vrot.slane %v2214_v49, 1  ;;  %4725 = vmatmul.mubr.msk.bf16.gmra.mxu1 %vm272_vm1, %v3384_v27  ;;  %v3049_v50 = vrot.slane %v2983_v7, 1  ;;  %v2450_v23 = vsel %vm772_vm2, %v2370_v13, %v2390_v38 }
 0x1b6   : > { %v3081_v14 = vsel %vm772_vm2, %v3017_v47, %v3033_v33  ;;  %v2936_v27 = vmax.f32 %v7671_v45, %v7833_v55 }
 0x1b7   : > { %v2310_v15 = vsel %vm989_vm3, %v2270_v6, %v2290_v40  ;;  %v2350_v19 = vsel %vm989_vm3, %v2290_v40, %v2250_v37  ;;  %v2430_v48 = vsel %vm772_vm2, %v2390_v38, %v2410_v12  ;;  %v2470_v3 = vsel %vm772_vm2, %v2410_v12, %v2370_v13 }
 0x1b8   : > { %v2512_v8 = vmax.f32 %v2350_v19, %v2450_v23  ;;  %v3065_v39 = vsel %vm772_vm2, %v3033_v33, %v3049_v50  ;;  %v3097_v35 = vsel %vm772_vm2, %v3049_v50, %v3017_v47  ;;  %v3125_v46 = vmax.f32 %v2981_v16, %v3081_v14  ;;  %v9690_v23 = vld [vmem:[#allocation61_spill] sm:$0xff] }
 0x1b9   : > { %v2513_v5 = vmax.f32 %v2330_v25, %v2430_v48  ;;  %v3126_v4 = vmax.f32 %v2982_v51, %v3065_v39  ;;  %v3127_v43 = vmax.f32 %v2983_v7, %v3097_v35  ;;  %v2514_v29 = vmax.f32 %v2310_v15, %v2470_v3  ;;  %v9688_v15 = vld [vmem:[#allocation59_spill] sm:$0xff] }
 0x1ba   : > { %v7826_v22 = vmax.f32 %v2512_v8, %v9681_v24  ;;  %v3161_v34 = vrot.slane %v3125_v46, 6  ;;  %v3241_v58 = vrot.slane %v3125_v46, 1  ;;  %v7840_v24 = vmax.f32 %v7699_v1, %v7777_v10 }
 0x1bb   : > { %v7829_v37 = vmax.f32 %v2513_v5, %v9687_v59  ;;  %v3177_v44 = vrot.slane %v3126_v4, 6  ;;  %v3193_v42 = vrot.slane %v3127_v43, 6  ;;  %v3257_v49 = vrot.slane %v3126_v4, 1 }
 0x1bc   : > { %v3273_v17 = vrot.slane %v3127_v43, 1  ;;  %v7836_v6 = vmax.f32 %v2514_v29, %v9683_v52  ;;  %v7844_v13 = vmax.f32 %v7702_v20, %v7780_v54  ;;  %v2937_v20 = vmax.f32 %v7675_v2, %v7840_v24 }
 0x1bd   : > { %v3209_v7 = vsel %vm989_vm3, %v3161_v34, %v3177_v44  ;;  %v3225_v40 = vsel %vm989_vm3, %v3193_v42, %v3161_v34  ;;  %v3305_v38 = vsel %vm772_vm2, %v3241_v58, %v3257_v49  ;;  %v2984_v25 = vmax.f32 %v2936_v27, %v7826_v22 }
 0x1be   : > { %v3289_v52 = vsel %vm772_vm2, %v3257_v49, %v3273_v17  ;;  %v3327_v47 = vmax.f32 %v3225_v40, %v3305_v38  ;;  %v2938_v45 = vmax.f32 %v7693_v36, %v7844_v13  ;;  %v2605_v12 = vpack.c.bf16 %v7635_v26, %v7632_v32  ;;  %v9692_v26 = vld [vmem:[#allocation62_spill] sm:$0xff] }
 0x1bf   : > { %v3328_v33 = vmax.f32 %v3209_v7, %v3289_v52  ;;  %v2606_v50 = vpack.c.bf16 %v7699_v1, %v7696_v62  ;;  %v9689_v19 = vrot.slane %v9688_v15, 1  ;;  %v9691_v14 = vrot.slane %v9690_v23, 1  ;;  %v9693_v1 = vld [vmem:[#allocation63_spill] sm:$0xff] }
 0x1c0   : > { %v3359_v3 = vmax.f32 %v3327_v47, %v2981_v16  ;;  %v2985_v8 = vmax.f32 %v2937_v20, %v7829_v37  ;;  %v2986_v36 = vmax.f32 %v2938_v45, %v7836_v6  ;;  %v3018_v39 = vrot.slane %v2984_v25, 1  ;;  %4694 = vmatprep.mubr.msk.bf16.mxu0 %vm272_vm1, %v2605_v12 }
 0x1c1   : > { %v2171_v48 = vsel %vm772_vm2, %v9691_v14, %v9689_v19  ;;  %v3360_v2 = vmax.f32 %v3328_v33, %v2982_v51  ;;  %v2251_v62 = vrot.slane %v9692_v26, 6  ;;  %v2271_v35 = vrot.slane %v9693_v1, 6  ;;  %4695 = vmatmul.mubr.msk.bf16.gmra.mxu0 %vm272_vm1, %v2606_v50 }
 0x1c2   : > { %v2217_v32 = vmax.f32 %v9690_v23, %v2171_v48  ;;  %v3034_v5 = vrot.slane %v2985_v8, 1  ;;  %v3050_v4 = vrot.slane %v2986_v36, 1  ;;  %v2371_v16 = vrot.slane %v9692_v26, 1 }
 0x1c3   : > { %v3385_v46 = vpack.c.bf16 %v3360_v2, %v3359_v3  ;;  %v2331_v43 = vsel %vm989_vm3, %v2251_v62, %v2271_v35  ;;  %v2391_v29 = vrot.slane %v9693_v1, 1  ;;  %v7891_v42 = vmax.f32 %v7774_v31, %v7826_v22  ;;  %v9694_v1 = vld [vmem:[#allocation60_spill] sm:$0xff] }
 0x1c4   : > { %v2291_v51 = vrot.slane %v2217_v32, 6  ;;  %v2411_v34 = vrot.slane %v2217_v32, 1  ;;  %v3066_v58 = vsel %vm772_vm2, %v3034_v5, %v3050_v4  ;;  %v3082_v59 = vsel %vm772_vm2, %v3018_v39, %v3034_v5 }
 0x1c5   : > { %4728 = vmatprep.mubr.msk.bf16.mxu1 %vm272_vm1, %v3385_v46  ;;  %v3098_v44 = vsel %vm772_vm2, %v3050_v4, %v3018_v39  ;;  %v3128_v49 = vmax.f32 %v2984_v25, %v3082_v59  ;;  %v3129_v17 = vmax.f32 %v2985_v8, %v3066_v58  ;;  %v2451_v38 = vsel %vm772_vm2, %v2371_v16, %v2391_v29 }
 0x1c6   : > { %v3130_v27 = vmax.f32 %v2986_v36, %v3098_v44  ;;  %v2311_v7 = vsel %vm989_vm3, %v2271_v35, %v2291_v51  ;;  %v2351_v40 = vsel %vm989_vm3, %v2291_v51, %v2251_v62  ;;  %v2431_v52 = vsel %vm772_vm2, %v2391_v29, %v2411_v34  ;;  %v9699_v44 = vld [vmem:[#allocation70_spill] sm:$0xff] }
 0x1c7   : > { %v2471_v47 = vsel %vm772_vm2, %v2411_v34, %v2371_v16  ;;  %v3162_v33 = vrot.slane %v3128_v49, 6  ;;  %v3178_v20 = vrot.slane %v3129_v17, 6  ;;  %v3242_v12 = vrot.slane %v3128_v49, 1  ;;  %v9697_v34 = vld [vmem:[#allocation69_spill] sm:$0xff] }
 0x1c8   : > { %v3194_v45 = vrot.slane %v3130_v27, 6  ;;  %v3258_v50 = vrot.slane %v3129_v17, 1  ;;  %v3274_v19 = vrot.slane %v3130_v27, 1  ;;  %v2515_v14 = vmax.f32 %v2351_v40, %v2451_v38 }
 0x1c9   : > { %v2516_v48 = vmax.f32 %v2331_v43, %v2431_v52  ;;  %v3210_v3 = vsel %vm989_vm3, %v3162_v33, %v3178_v20  ;;  %v2517_v36 = vmax.f32 %v2311_v7, %v2471_v47  ;;  %v7909_v39 = vmax.f32 %v7777_v10, %v7829_v37  ;;  %v9700_v7 = vld [vmem:[#allocation71_spill] sm:$0xff] }
 0x1ca   : > { %v3226_v2 = vsel %vm989_vm3, %v3194_v45, %v3162_v33  ;;  %v3290_v32 = vsel %vm772_vm2, %v3258_v50, %v3274_v19  ;;  %v3306_v26 = vsel %vm772_vm2, %v3242_v12, %v3258_v50  ;;  %v7916_v62 = vmax.f32 %v2515_v14, %v9688_v15  ;;  %v9695_v15 = vld [vmem:[#allocation65_spill] sm:$0xff] }
 0x1cb   : > { %v7919_v35 = vmax.f32 %v2516_v48, %v9694_v1  ;;  %v3329_v46 = vmax.f32 %v3226_v2, %v3306_v26  ;;  %v3330_v5 = vmax.f32 %v3210_v3, %v3290_v32  ;;  %v7922_v4 = vmax.f32 %v2517_v36, %v9690_v23 }
 0x1cc   : > { %v7926_v16 = vmax.f32 %v7780_v54, %v7836_v6  ;;  %v2939_v51 = vmax.f32 %v7749_v56, %v7891_v42  ;;  %v2940_v43 = vmax.f32 %v7767_v63, %v7909_v39  ;;  %v9696_v29 = vrot.slane %v9695_v15, 1 }
 0x1cd   : > { %v9698_v58 = vrot.slane %v9697_v34, 1  ;;  %v2252_v23 = vrot.slane %v9699_v44, 6  ;;  %v3361_v49 = vmax.f32 %v3329_v46, %v2984_v25  ;;  %v3362_v17 = vmax.f32 %v3330_v5, %v2985_v8 }
 0x1ce   : > { %v2941_v54 = vmax.f32 %v7784_v21, %v7926_v16  ;;  %v2987_v56 = vmax.f32 %v2939_v51, %v7916_v62  ;;  %v2988_v63 = vmax.f32 %v2940_v43, %v7919_v35  ;;  %v2272_v40 = vrot.slane %v9700_v7, 6 }
 0x1cf   : > { %v2172_v59 = vsel %vm772_vm2, %v9698_v58, %v9696_v29  ;;  %v2372_v52 = vrot.slane %v9699_v44, 1  ;;  %v3386_v38 = vpack.c.bf16 %v3362_v17, %v3361_v49  ;;  %v2392_v25 = vrot.slane %v9700_v7, 1  ;;  %v9701_v44 = vld [vmem:[#allocation68_spill] sm:$0xff] }
 0x1d0   : > { %v2220_v27 = vmax.f32 %v9697_v34, %v2172_v59  ;;  %v2989_v47 = vmax.f32 %v2941_v54, %v7922_v4  ;;  %v3019_v8 = vrot.slane %v2987_v56, 1  ;;  %v3035_v20 = vrot.slane %v2988_v63, 1 }
 0x1d1   : > { %v2332_v21 = vsel %vm989_vm3, %v2252_v23, %v2272_v40  ;;  %4729 = vmatmul.mubr.msk.bf16.gmra.mxu1 %vm272_vm1, %v3386_v38  ;;  %v2452_v14 = vsel %vm772_vm2, %v2372_v52, %v2392_v25  ;;  %v7975_v49 = vmax.f32 %v7826_v22, %v7916_v62 }
 0x1d2   : > { %v2292_v33 = vrot.slane %v2220_v27, 6  ;;  %v2412_v45 = vrot.slane %v2220_v27, 1  ;;  %v3051_v12 = vrot.slane %v2989_v47, 1  ;;  %v3083_v48 = vsel %vm772_vm2, %v3019_v8, %v3035_v20 }
 0x1d3   : > { %v3131_v1 = vmax.f32 %v2987_v56, %v3083_v48  ;;  %v2942_v38 = vmax.f32 %v7833_v55, %v7975_v49 }
 0x1d4   : > { %v2312_v50 = vsel %vm989_vm3, %v2272_v40, %v2292_v33  ;;  %v2352_v19 = vsel %vm989_vm3, %v2292_v33, %v2252_v23  ;;  %v2432_v3 = vsel %vm772_vm2, %v2392_v25, %v2412_v45  ;;  %v2472_v2 = vsel %vm772_vm2, %v2412_v45, %v2372_v52 }
 0x1d5   : > { %v2518_v36 = vmax.f32 %v2352_v19, %v2452_v14  ;;  %v3067_v32 = vsel %vm772_vm2, %v3035_v20, %v3051_v12  ;;  %v3099_v26 = vsel %vm772_vm2, %v3051_v12, %v3019_v8  ;;  %v2519_v46 = vmax.f32 %v2332_v21, %v2432_v3 }
 0x1d6   : > { %v3132_v5 = vmax.f32 %v2988_v63, %v3067_v32  ;;  %v3133_v51 = vmax.f32 %v2989_v47, %v3099_v26  ;;  %v2520_v43 = vmax.f32 %v2312_v50, %v2472_v2  ;;  %v3163_v58 = vrot.slane %v3131_v1, 6 }
 0x1d7   : > { %v7968_v29 = vmax.f32 %v2518_v36, %v9695_v15  ;;  %v3243_v59 = vrot.slane %v3131_v1, 1  ;;  %v7971_v23 = vmax.f32 %v2519_v46, %v9701_v44  ;;  %v7982_v15 = vmax.f32 %v7829_v37, %v7919_v35 }
 0x1d8   : > { %v3179_v17 = vrot.slane %v3132_v5, 6  ;;  %v3195_v54 = vrot.slane %v3133_v51, 6  ;;  %v3259_v27 = vrot.slane %v3132_v5, 1  ;;  %v3275_v7 = vrot.slane %v3133_v51, 1 }
 0x1d9   : > { %v7978_v40 = vmax.f32 %v2520_v43, %v9697_v34  ;;  %v7986_v52 = vmax.f32 %v7836_v6, %v7922_v4  ;;  %v2943_v6 = vmax.f32 %v7840_v24, %v7982_v15  ;;  %v8003_v21 = vmax.f32 %v2942_v38, %v7968_v29 }
 0x1da   : > { %v3211_v47 = vsel %vm989_vm3, %v3163_v58, %v3179_v17  ;;  %v3227_v33 = vsel %vm989_vm3, %v3195_v54, %v3163_v58  ;;  %v3291_v34 = vsel %vm772_vm2, %v3259_v27, %v3275_v7  ;;  %v3307_v25 = vsel %vm772_vm2, %v3243_v59, %v3259_v27 }
 0x1db   : > { %v3331_v8 = vmax.f32 %v3227_v33, %v3307_v25  ;;  %v3332_v20 = vmax.f32 %v3211_v47, %v3291_v34  ;;  %v2944_v55 = vmax.f32 %v7844_v13, %v7986_v52  ;;  %v2607_v45 = vpack.c.bf16 %v7777_v10, %v7774_v31 }
 0x1dc   : > { %v2608_v12 = vpack.c.bf16 %v7829_v37, %v7826_v22  ;;  %v9702_v50 = vrot.slane %v7018_v57, 1  ;;  %v9703_v19 = vrot.slane %v7021_v60, 1  ;;  %v2991_v13 = vmax.f32 %v2943_v6, %v7971_v23 }
 0x1dd   : > { %v3363_v24 = vmax.f32 %v3331_v8, %v2987_v56  ;;  %v3364_v48 = vmax.f32 %v3332_v20, %v2988_v63  ;;  %v2992_v3 = vmax.f32 %v2944_v55, %v7978_v40  ;;  %v3020_v2 = vrot.slane %v8003_v21, 1  ;;  %4698 = vmatprep.mubr.msk.bf16.mxu0 %vm272_vm1, %v2607_v45 }
 0x1de   : > { %v2173_v14 = vsel %vm772_vm2, %v9703_v19, %v9702_v50  ;;  %v2253_v10 = vrot.slane %v7061_v41, 6  ;;  %v2273_v22 = vrot.slane %v7070_v28, 6  ;;  %v3036_v36 = vrot.slane %v2991_v13, 1  ;;  %4699 = vmatmul.mubr.msk.bf16.gmra.mxu0 %vm272_vm1, %v2608_v12  ;;  %v8057_v19 = vpop.f32.mrf.mxu1 }
 0x1df   : > { %v2223_v31 = vmax.f32 %v7021_v60, %v2173_v14  ;;  %v3387_v37 = vpack.c.bf16 %v3364_v48, %v3363_v24  ;;  %v3052_v32 = vrot.slane %v2992_v3, 1  ;;  %v2373_v56 = vrot.slane %v7061_v41, 1  ;;  %v8059_v14 = vpop.f32.mrf.mxu0 }
 0x1e0   : > { %v2333_v26 = vsel %vm989_vm3, %v2253_v10, %v2273_v22  ;;  %v2393_v1 = vrot.slane %v7070_v28, 1  ;;  %v3084_v51 = vsel %vm772_vm2, %v3020_v2, %v3036_v36  ;;  %v8036_v41 = vmax.f32 %v7916_v62, %v7968_v29 }
 0x1e1   : > { %v2293_v63 = vrot.slane %v2223_v31, 6  ;;  %v2413_v46 = vrot.slane %v2223_v31, 1  ;;  %4732 = vmatprep.mubr.msk.bf16.mxu1 %vm272_vm1, %v3387_v37  ;;  %v3068_v5 = vsel %vm772_vm2, %v3036_v36, %v3052_v32  ;;  %v3100_v43 = vsel %vm772_vm2, %v3052_v32, %v3020_v2  ;;  %v8078_v36 = vpop.f32.mrf.mxu1  ;;  %v8080_v32 = vpop.f32.mrf.mxu0 }
 0x1e2   : > { %v3134_v58 = vmax.f32 %v8003_v21, %v3084_v51  ;;  %v3135_v59 = vmax.f32 %v2991_v13, %v3068_v5  ;;  %v3136_v28 = vmax.f32 %v2992_v3, %v3100_v43  ;;  %v2453_v27 = vsel %vm772_vm2, %v2373_v56, %v2393_v1 }
 0x1e3   : > { %v2313_v44 = vsel %vm989_vm3, %v2273_v22, %v2293_v63  ;;  %v2353_v17 = vsel %vm989_vm3, %v2293_v63, %v2253_v10  ;;  %v2433_v54 = vsel %vm772_vm2, %v2393_v1, %v2413_v46  ;;  %v2473_v7 = vsel %vm772_vm2, %v2413_v46, %v2373_v56  ;;  %v8097_v5 = vpop.f32.mrf.mxu1 }
 0x1e4   : > { %v3164_v38 = vrot.slane %v3134_v58, 6  ;;  %v3180_v47 = vrot.slane %v3135_v59, 6  ;;  %v3196_v33 = vrot.slane %v3136_v28, 6  ;;  %v3244_v34 = vrot.slane %v3134_v58, 1 }
 0x1e5   : > { %v3260_v25 = vrot.slane %v3135_v59, 1  ;;  %v3276_v8 = vrot.slane %v3136_v28, 1  ;;  %v2521_v20 = vmax.f32 %v2353_v17, %v2453_v27  ;;  %v2522_v6 = vmax.f32 %v2333_v26, %v2433_v54 }
 0x1e6   : > { %v3212_v55 = vsel %vm989_vm3, %v3164_v38, %v3180_v47  ;;  %v3228_v45 = vsel %vm989_vm3, %v3196_v33, %v3164_v38  ;;  %v2523_v12 = vmax.f32 %v2313_v44, %v2473_v7  ;;  %v8055_v50 = vmax.f32 %v7919_v35, %v7971_v23  ;;  %v8111_v44 = vpop.f32.mrf.mxu1 }
 0x1e7   : > { %v3292_v24 = vsel %vm772_vm2, %v3260_v25, %v3276_v8  ;;  %v3308_v48 = vsel %vm772_vm2, %v3244_v34, %v3260_v25  ;;  %v8066_v3 = vmax.f32 %v2521_v20, %v7018_v57  ;;  %v8069_v2 = vmax.f32 %v2522_v6, %v6998_v18 }
 0x1e8   : > { %v3333_v31 = vmax.f32 %v3228_v45, %v3308_v48  ;;  %v3334_v10 = vmax.f32 %v3212_v55, %v3292_v24  ;;  %v8072_v22 = vmax.f32 %v2523_v12, %v7021_v60  ;;  %v8076_v37 = vmax.f32 %v7922_v4, %v7978_v40  ;;  %v8126_v34 = vpop.f32.mrf.mxu1 }
 0x1e9   : > { %v2945_v57 = vmax.f32 %v7891_v42, %v8036_v41  ;;  %v2946_v18 = vmax.f32 %v7909_v39, %v8055_v50  ;;  %v9704_v56 = vrot.slane %v7216_v30, 1  ;;  %v9705_v63 = vrot.slane %v7227_v0, 1  ;;  %v8099_v39 = vpop.f32.mrf.mxu0  ;;  %9706 = vst [vmem:[#allocation15_spill] sm:$0xff] %v8126_v34 }
 0x1ea   : > { %v2254_v4 = vrot.slane %v7257_v53, 6  ;;  %v3365_v26 = vmax.f32 %v3333_v31, %v8003_v21  ;;  %v3366_v1 = vmax.f32 %v3334_v10, %v2991_v13  ;;  %v2947_v46 = vmax.f32 %v7926_v16, %v8076_v37  ;;  %v8141_v31 = vpop.f32.mrf.mxu1 }
 0x1eb   : > { %v2174_v60 = vsel %vm772_vm2, %v9705_v63, %v9704_v56  ;;  %v8102_v51 = vmax.f32 %v2945_v57, %v8066_v3  ;;  %v8105_v43 = vmax.f32 %v2946_v18, %v8069_v2  ;;  %v2274_v58 = vrot.slane %v7260_v9, 6  ;;  %v8113_v17 = vpop.f32.mrf.mxu0  ;;  %9707 = vst [vmem:[#allocation12_spill] sm:$0xff] %v8141_v31 }
 0x1ec   : > { %v2226_v42 = vmax.f32 %v7227_v0, %v2174_v60  ;;  %v2374_v21 = vrot.slane %v7257_v53, 1  ;;  %v3388_v13 = vpack.c.bf16 %v3366_v1, %v3365_v26  ;;  %v2995_v59 = vmax.f32 %v2947_v46, %v8072_v22  ;;  %v8156_v46 = vpop.f32.mrf.mxu1 }
 0x1ed   : > { %v2394_v28 = vrot.slane %v7260_v9, 1  ;;  %v3021_v54 = vrot.slane %v8102_v51, 1  ;;  %v3037_v27 = vrot.slane %v8105_v43, 1  ;;  %v2334_v7 = vsel %vm989_vm3, %v2254_v4, %v2274_v58  ;;  %v8128_v25 = vpop.f32.mrf.mxu0  ;;  %9709 = vst [vmem:[#allocation25_spill] sm:$0xff] %v8156_v46 }
 0x1ee   : > { %v2294_v16 = vrot.slane %v2226_v42, 6  ;;  %v2414_v38 = vrot.slane %v2226_v42, 1  ;;  %4733 = vmatmul.mubr.msk.bf16.gmra.mxu1 %vm272_vm1, %v3388_v13  ;;  %v3053_v53 = vrot.slane %v2995_v59, 1  ;;  %v8154_v1 = vmax.f32 %v7968_v29, %v8066_v3 }
 0x1ef   : > { %v2454_v33 = vsel %vm772_vm2, %v2374_v21, %v2394_v28  ;;  %v3085_v8 = vsel %vm772_vm2, %v3021_v54, %v3037_v27  ;;  %v8143_v10 = vpop.f32.mrf.mxu0 }
 0x1f0   : > { %v2314_v47 = vsel %vm989_vm3, %v2274_v58, %v2294_v16  ;;  %v2354_v9 = vsel %vm989_vm3, %v2294_v16, %v2254_v4  ;;  %v2434_v20 = vsel %vm772_vm2, %v2394_v28, %v2414_v38  ;;  %v2474_v6 = vsel %vm772_vm2, %v2414_v38, %v2374_v21  ;;  %9708 = vst [vmem:[#allocation21_spill] sm:$0xff] %v8143_v10  ;;  %v4778_v10 = vld [vmem:[#allocation2 + $0x250] sm:$0xff] }
 0x1f1   : > { %v2524_v55 = vmax.f32 %v2354_v9, %v2454_v33  ;;  %v3069_v45 = vsel %vm772_vm2, %v3037_v27, %v3053_v53  ;;  %v3101_v12 = vsel %vm772_vm2, %v3053_v53, %v3021_v54  ;;  %v3137_v24 = vmax.f32 %v8102_v51, %v3085_v8  ;;  %v8158_v42 = vpop.f32.mrf.mxu0  ;;  %v8173_v54 = vpop.f32.mrf.mxu1 }
 0x1f2   : > { %v2525_v48 = vmax.f32 %v2334_v7, %v2434_v20  ;;  %v3138_v57 = vmax.f32 %v8105_v43, %v3069_v45  ;;  %v3139_v18 = vmax.f32 %v2995_v59, %v3101_v12  ;;  %v2526_v56 = vmax.f32 %v2314_v47, %v2474_v6  ;;  %9710 = vst [vmem:[#allocation9_spill] sm:$0xff] %v8158_v42  ;;  %v9715_v45 = vld [vmem:[#allocation88_spill] sm:$0xff] }
 0x1f3   : > { %v8147_v63 = vmax.f32 %v2524_v55, %v7216_v30  ;;  %v3165_v60 = vrot.slane %v3137_v24, 6  ;;  %v3245_v4 = vrot.slane %v3137_v24, 1  ;;  %v8165_v16 = vmax.f32 %v7971_v23, %v8069_v2  ;;  %9711 = vst [vmem:[#allocation19_spill] sm:$0xff] %v8173_v54  ;;  %v8175_v27 = vpop.f32.mrf.mxu0  ;;  %v8189_v33 = vpop.f32.mrf.mxu1  ;;  %v9717_v24 = vld [vmem:[#allocation87_spill] sm:$0xff] }
 0x1f4   : > { %v8150_v26 = vmax.f32 %v2525_v48, %v7224_v61  ;;  %v3181_v58 = vrot.slane %v3138_v57, 6  ;;  %v3197_v21 = vrot.slane %v3139_v18, 6  ;;  %v3261_v13 = vrot.slane %v3138_v57, 1  ;;  %9712 = vst [vmem:[#allocation24_spill] sm:$0xff] %v8175_v27  ;;  %9713 = vst [vmem:[#allocation23_spill] sm:$0xff] %v8189_v33 }
 0x1f5   : > { %v3277_v59 = vrot.slane %v3139_v18, 1  ;;  %v8161_v30 = vmax.f32 %v2526_v56, %v7227_v0  ;;  %v8169_v61 = vmax.f32 %v7978_v40, %v8072_v22  ;;  %v2948_v28 = vmax.f32 %v7975_v49, %v8154_v1  ;;  %v8191_v8 = vpop.f32.mrf.mxu0 }
 0x1f6   : > { %v3213_v7 = vsel %vm989_vm3, %v3165_v60, %v3181_v58  ;;  %v3229_v0 = vsel %vm989_vm3, %v3197_v21, %v3165_v60  ;;  %v3309_v40 = vsel %vm772_vm2, %v3245_v4, %v3261_v13  ;;  %v2949_v49 = vmax.f32 %v7982_v15, %v8165_v16  ;;  %9714 = vst [vmem:[#allocation5_spill] sm:$0xff] %v8191_v8  ;;  %v9725_v58 = vld [vmem:[#allocation74_spill] sm:$0xff] }
 0x1f7   : > { %v3293_v38 = vsel %vm772_vm2, %v3261_v13, %v3277_v59  ;;  %v3335_v53 = vmax.f32 %v3229_v0, %v3309_v40  ;;  %v2950_v9 = vmax.f32 %v7986_v52, %v8169_v61  ;;  %v8194_v20 = vmax.f32 %v2948_v28, %v8147_v63  ;;  %v9726_v13 = vld [vmem:[#allocation93_spill] sm:$0xff]  ;;  %v9727_v59 = vld [vmem:[#allocation64_spill] sm:$0xff] }
 0x1f8   : > { %v3336_v47 = vmax.f32 %v3213_v7, %v3293_v38  ;;  %v2609_v6 = vpack.c.bf16 %v7919_v35, %v7916_v62  ;;  %v2610_v55 = vpack.c.bf16 %v7971_v23, %v7968_v29  ;;  %v9716_v12 = vrot.slane %v9715_v45, 6  ;;  %v8212_v62 = vpop.f32.mrf.mxu1  ;;  %v8214_v35 = vpop.f32.mrf.mxu0  ;;  %v9721_v23 = vld [vmem:[#allocation86_spill] sm:$0xff]  ;;  %v9728_v28 = vld [vmem:[#allocation20_spill] sm:$0xff] }
 0x1f9   : > { %v9718_v15 = vrot.slane %v9717_v24, 6  ;;  %v3367_v48 = vmax.f32 %v3335_v53, %v8102_v51  ;;  %v8209_v18 = vmax.f32 %v2949_v49, %v8150_v26  ;;  %v2998_v56 = vmax.f32 %v2950_v9, %v8161_v30  ;;  %9719 = vst [vmem:[#allocation11_spill] sm:$0xff] %v8212_v62  ;;  %9720 = vst [vmem:[#allocation14_spill] sm:$0xff] %v8214_v35  ;;  %v9734_v24 = vld [vmem:[#allocation66_spill] sm:$0xff] }
 0x1fa   : > { %v3368_v57 = vmax.f32 %v3336_v47, %v8105_v43  ;;  %v3022_v29 = vrot.slane %v8194_v20, 1  ;;  %4702 = vmatprep.mubr.msk.bf16.mxu0 %vm272_vm1, %v2609_v6  ;;  %v9722_v60 = vrot.slane %v9721_v23, 1  ;;  %v9723_v4 = vrot.slane %v9715_v45, 1  ;;  %v9724_v43 = vld [vmem:[#allocation92_spill] sm:$0xff]  ;;  %v8236_v49 = vpop.f32.mrf.mxu1  ;;  %v8238_v9 = vpop.f32.mrf.mxu0  ;;  %v9732_v6 = vld [vmem:[#allocation67_spill] sm:$0xff] }
 0x1fb   : > { %v1010_v52 = vsel %vm989_vm3, %v9718_v15, %v9716_v12  ;;  %v8226_v21 = vmax.f32 %v9725_v58, %v9724_v43  ;;  %v9729_v7 = vmax.f32 %v9727_v59, %v9728_v28  ;;  %v3038_v40 = vrot.slane %v8209_v18, 1  ;;  %4703 = vmatmul.mubr.msk.bf16.gmra.mxu0 %vm272_vm1, %v2610_v55  ;;  %9730 = vst [vmem:[#allocation13_spill] sm:$0xff] %v8236_v49  ;;  %v9733_v12 = vld [vmem:[#allocation94_spill] sm:$0xff]  ;;  %v9735_v15 = vld [vmem:[#allocation95_spill] sm:$0xff] }
 0x1fc   : > { %v1202_v51 = vsel %vm772_vm2, %v9723_v4, %v9722_v60  ;;  %v3389_v38 = vpack.c.bf16 %v3368_v57, %v3367_v48  ;;  %v3054_v53 = vrot.slane %v2998_v56, 1  ;;  %9731 = vst [vmem:[#allocation10_spill] sm:$0xff] %v8238_v9  ;;  %v9736_v23 = vmax.f32 %v9734_v24, %v9735_v15  ;;  %v8263_v59 = vpop.f32.mrf.mxu1 }
 0x1fd   : > { %v8232_v0 = vmax.f32 %v9729_v7, %v9726_v13  ;;  %v1268_v47 = vmax.f32 %v1010_v52, %v1202_v51  ;;  %v1989_v45 = vmax.f32 %v9732_v6, %v8226_v21  ;;  %v8251_v57 = vmax.f32 %v8066_v3, %v8147_v63  ;;  %v9737_v51 = vld [vmem:[#allocation82_spill] sm:$0xff]  ;;  %9738 = vst [vmem:[#allocation8_spill] sm:$0xff] %v8263_v59  ;;  %v8265_v7 = vpop.f32.mrf.mxu0 }
 0x1fe   : > { %v8246_v60 = vmax.f32 %v9736_v23, %v9733_v12  ;;  %4736 = vmatprep.mubr.msk.bf16.mxu1 %vm272_vm1, %v3389_v38  ;;  %v3070_v55 = vsel %vm772_vm2, %v3038_v40, %v3054_v53  ;;  %v3086_v52 = vsel %vm772_vm2, %v3022_v29, %v3038_v40  ;;  %v3102_v4 = vsel %vm772_vm2, %v3054_v53, %v3022_v29 }
 0x1ff   : > { %v2075_v48 = vrot.slane %v8232_v0, 1  ;;  %v8261_v58 = vmax.f32 %v1268_v47, %v9737_v51  ;;  %9739 = vst [vmem:[#allocation7_spill] sm:$0xff] %v8265_v7  ;;  %v3140_v6 = vmax.f32 %v8194_v20, %v3086_v52  ;;  %v3141_v38 = vmax.f32 %v8209_v18, %v3070_v55  ;;  %v8283_v47 = vpop.f32.mrf.mxu1  ;;  %v8285_v55 = vpop.f32.mrf.mxu0 }
 0x200   : > { %v3142_v24 = vmax.f32 %v2998_v56, %v3102_v4  ;;  %v2095_v23 = vrot.slane %v8246_v60, 1  ;;  %v8275_v29 = vmax.f32 %v8069_v2, %v8150_v26  ;;  %v8279_v40 = vmax.f32 %v8072_v22, %v8161_v30  ;;  %9740 = vst [vmem:[#allocation18_spill] sm:$0xff] %v8283_v47  ;;  %9741 = vst [vmem:[#allocation16_spill] sm:$0xff] %v8285_v55 }
 0x201   : > { %v8271_v49 = vmax.f32 %v1989_v45, %v8261_v58  ;;  %v3166_v56 = vrot.slane %v3140_v6, 6  ;;  %v3182_v52 = vrot.slane %v3141_v38, 6  ;;  %v3246_v45 = vrot.slane %v3140_v6, 1  ;;  %v8290_v22 = vpop.f32.mrf.mxu0  ;;  %v8307_v62 = vpop.f32.mrf.mxu1 }
 0x202   : > { %v3198_v4 = vrot.slane %v3142_v24, 6  ;;  %v3262_v51 = vrot.slane %v3141_v38, 1  ;;  %v3278_v59 = vrot.slane %v3142_v24, 1  ;;  %v2155_v9 = vsel %vm772_vm2, %v2075_v48, %v2095_v23  ;;  %9742 = vst [vmem:[#allocation6_spill] sm:$0xff] %v8290_v22  ;;  %9743 = vst [vmem:[#allocation17_spill] sm:$0xff] %v8307_v62 }
 0x203   : > { %v2115_v7 = vrot.slane %v8271_v49, 1  ;;  %v3214_v53 = vsel %vm989_vm3, %v3166_v56, %v3182_v52  ;;  %v2227_v55 = vmax.f32 %v8232_v0, %v2155_v9  ;;  %v2952_v6 = vmax.f32 %v8055_v50, %v8275_v29 }
 0x204   : > { %v3230_v47 = vsel %vm989_vm3, %v3198_v4, %v3166_v56  ;;  %v3294_v38 = vsel %vm772_vm2, %v3262_v51, %v3278_v59  ;;  %v3310_v24 = vsel %vm772_vm2, %v3246_v45, %v3262_v51  ;;  %v8309_v56 = vpop.f32.mrf.mxu0  ;;  %v2953_v45 = vmax.f32 %v8076_v37, %v8279_v40  ;;  %v9745_v51 = vld [vmem:[#allocation91_spill] sm:$0xff]  ;;  %v9750_v37 = vld [vmem:[#allocation89_spill] sm:$0xff] }
 0x205   : > { %v2135_v22 = vsel %vm772_vm2, %v2095_v23, %v2115_v7  ;;  %v2175_v52 = vsel %vm772_vm2, %v2115_v7, %v2075_v48  ;;  %9744 = vst [vmem:[#allocation22_spill] sm:$0xff] %v8309_v56  ;;  %v3337_v9 = vmax.f32 %v3230_v47, %v3310_v24  ;;  %v3338_v4 = vmax.f32 %v3214_v53, %v3294_v38 }
 0x206   : > { %v2228_v50 = vmax.f32 %v8246_v60, %v2135_v22  ;;  %v2229_v35 = vmax.f32 %v8271_v49, %v2175_v52  ;;  %v2255_v59 = vrot.slane %v2227_v55, 6  ;;  %v2375_v33 = vrot.slane %v2227_v55, 1  ;;  %v8318_v56 = vpop.f32.mrf.mxu0  ;;  %v9747_v22 = vld [vmem:[#allocation90_spill] sm:$0xff] }
 0x207   : > { %v986_v23 = vrot.slane %v9745_v51, 6  ;;  %v3369_v8 = vmax.f32 %v3337_v9, %v8194_v20  ;;  %v3370_v48 = vmax.f32 %v3338_v4, %v8209_v18  ;;  %9746 = vst [vmem:[#allocation26_spill] sm:$0xff] %v8318_v56  ;;  %v9748_v38 = vrot.slane %v9747_v22, 6  ;;  %v8330_v9 = vpop.f32.mrf.mxu1 }
 0x208   : > { %v2275_v7 = vrot.slane %v2228_v50, 6  ;;  %v2295_v62 = vrot.slane %v2229_v35, 6  ;;  %v2395_v53 = vrot.slane %v2228_v50, 1  ;;  %v2415_v47 = vrot.slane %v2229_v35, 1  ;;  %9752 = vst [vmem:[#allocation3_spill] sm:$0xff] %v8330_v9 }
 0x209   : > { %v1011_v55 = vsel %vm989_vm3, %v9748_v38, %v986_v23  ;;  %v9749_v24 = vmov %v9748_v38  ;;  %v9751_v52 = vrot.slane %v9750_v37, 6  ;;  %v3390_v18 = vpack.c.bf16 %v3370_v48, %v3369_v8 }
 0x20a   : > { %v2315_v4 = vsel %vm989_vm3, %v2275_v7, %v2295_v62  ;;  %v2335_v35 = vsel %vm989_vm3, %v2255_v59, %v2275_v7  ;;  %v2355_v50 = vsel %vm989_vm3, %v2295_v62, %v2255_v59  ;;  %v2435_v38 = vsel %vm772_vm2, %v2395_v53, %v2415_v47  ;;  %v8350_v59 = vpop.f32.mrf.mxu0 }
 0x20b   : > { %v1035_v20 = vsel %vm989_vm3, %v9751_v52, %v9749_v24  ;;  %v2455_v56 = vsel %vm772_vm2, %v2375_v33, %v2395_v53  ;;  %v2475_v24 = vsel %vm772_vm2, %v2415_v47, %v2375_v33  ;;  %v9753_v8 = vmov %v9751_v52  ;;  %4737 = vmatmul.mubr.msk.bf16.gmra.mxu1 %vm272_vm1, %v3390_v18 }
 0x20c   : > { %v1059_v48 = vsel %vm989_vm3, %v986_v23, %v9753_v8  ;;  %v2527_v7 = vmax.f32 %v2355_v50, %v2455_v56  ;;  %v2528_v52 = vmax.f32 %v2335_v35, %v2435_v38  ;;  %v2529_v9 = vmax.f32 %v2315_v4, %v2475_v24  ;;  %9754 = vst [vmem:[#allocation27_spill] sm:$0xff] %v8350_v59  ;;  %v8395_v8 = vpop.f32.mrf.mxu0 }
 0x20d   : > { %v1131_v62 = vrot.slane %v9745_v51, 1  ;;  %v9755_v54 = vrot.slane %v9747_v22, 1  ;;  %v9756_v53 = vrot.slane %v9750_v37, 1  ;;  %v8360_v47 = vmax.f32 %v9724_v43, %v8261_v58  ;;  %v8366_v51 = vpop.f32.mrf.mxu1  ;;  %9762 = vst [vmem:[#allocation31_spill] sm:$0xff] %v8395_v8 }
 0x20e   : > { %v2611_v56 = vpack.c.bf16 %v8069_v2, %v8066_v3  ;;  %v2612_v23 = vpack.c.bf16 %v8150_v26, %v8147_v63  ;;  %9757 = vst [vmem:[#allocation4_spill] sm:$0xff] %v8366_v51  ;;  %v8369_v18 = vmax.f32 %v2527_v7, %v8232_v0  ;;  %v8372_v4 = vmax.f32 %v2528_v52, %v8246_v60  ;;  %v9760_v0 = vld [vmem:[#allocation77_spill] sm:$0xff]  ;;  %v9764_v7 = vld [vmem:[#allocation84_spill] sm:$0xff]  ;;  %v8475_v51 = vld [vmem:[#allocation2 + $0x280] sm:$0xff] }
 0x20f   : > { %v1179_v33 = vsel %vm772_vm2, %v9756_v53, %v9755_v54  ;;  %v8375_v54 = vmax.f32 %v2529_v9, %v8271_v49  ;;  %v9758_v43 = vrot.slane %v9747_v22, 1  ;;  %v9759_v3 = vmov %v9756_v53 }
 0x210   : > { %v1203_v2 = vsel %vm772_vm2, %v1131_v62, %v9759_v3  ;;  %v1269_v50 = vmax.f32 %v1059_v48, %v1179_v33  ;;  %v1992_v24 = vmax.f32 %v9760_v0, %v8360_v47  ;;  %4706 = vmatprep.mubr.msk.bf16.mxu0 %vm272_vm1, %v2611_v56  ;;  %v9761_v49 = vmax.f32 %v8036_v41, %v8251_v57  ;;  %v9766_v33 = vld [vmem:[#allocation85_spill] sm:$0xff] }
 0x211   : > { %v1155_v35 = vsel %vm772_vm2, %v9758_v43, %v1131_v62  ;;  %v3000_v22 = vmax.f32 %v2952_v6, %v8372_v4  ;;  %v3001_v9 = vmax.f32 %v2953_v45, %v8375_v54  ;;  %v1271_v37 = vmax.f32 %v1011_v55, %v1203_v2  ;;  %4707 = vmatmul.mubr.msk.bf16.gmra.mxu0 %vm272_vm1, %v2612_v23  ;;  %v8411_v6 = vpop.f32.mrf.mxu1  ;;  %v9767_v23 = vld [vmem:[#allocation76_spill] sm:$0xff]  ;;  %v9771_v2 = vld [vmem:[#allocation97_spill] sm:$0xff] }
 0x212   : > { %v1270_v38 = vmax.f32 %v1035_v20, %v1155_v35  ;;  %v2999_v60 = vmax.f32 %v9761_v49, %v8369_v18  ;;  %v9763_v20 = vld [vmem:[#allocation83_spill] sm:$0xff]  ;;  %v8405_v62 = vmax.f32 %v8147_v63, %v8369_v18  ;;  %v8409_v41 = vmax.f32 %v8150_v26, %v8372_v4  ;;  %9765 = vst [vmem:[#allocation28_spill] sm:$0xff] %v8411_v6  ;;  %v9768_v43 = vld [vmem:[#allocation96_spill] sm:$0xff] }
 0x213   : > { %v8398_v48 = vmax.f32 %v1269_v50, %v9763_v20  ;;  %v3039_v55 = vrot.slane %v3000_v22, 1  ;;  %v3055_v53 = vrot.slane %v3001_v9, 1  ;;  %v8414_v56 = vmax.f32 %v1271_v37, %v9766_v33  ;;  %v9770_v63 = vld [vmem:[#allocation75_spill] sm:$0xff]  ;;  %v8443_v33 = vpop.f32.mrf.mxu0 }
 0x214   : > { %v8401_v52 = vmax.f32 %v1270_v38, %v9764_v7  ;;  %v3023_v45 = vrot.slane %v2999_v60, 1  ;;  %v9769_v35 = vmax.f32 %v9767_v23, %v9768_v43  ;;  %v9772_v50 = vmax.f32 %v9770_v63, %v9771_v2  ;;  %9773 = vst [vmem:[#allocation29_spill] sm:$0xff] %v8443_v33 }
 0x215   : > { %v8430_v38 = vmax.f32 %v8161_v30, %v8375_v54  ;;  %v3071_v49 = vsel %vm772_vm2, %v3039_v55, %v3055_v53  ;;  %v8441_v7 = vmax.f32 %v1992_v24, %v8414_v56  ;;  %v8458_v6 = vpop.f32.mrf.mxu0 }
 0x216   : > { %v8420_v3 = vmax.f32 %v9769_v35, %v8398_v48  ;;  %v8426_v26 = vmax.f32 %v9772_v50, %v8401_v52  ;;  %v3087_v37 = vsel %vm772_vm2, %v3023_v45, %v3039_v55  ;;  %v3103_v20 = vsel %vm772_vm2, %v3055_v53, %v3023_v45  ;;  %v8446_v50 = vpop.f32.mrf.mxu1  ;;  %9775 = vst [vmem:[#allocation33_spill] sm:$0xff] %v8458_v6 }
 0x217   : > { %v3143_v23 = vmax.f32 %v2999_v60, %v3087_v37  ;;  %v3144_v30 = vmax.f32 %v3000_v22, %v3071_v49  ;;  %v3145_v35 = vmax.f32 %v3001_v9, %v3103_v20  ;;  %9774 = vst [vmem:[#allocation32_spill] sm:$0xff] %v8446_v50  ;;  %v2116_v8 = vrot.slane %v8441_v7, 1  ;;  %v8477_v42 = vpop.f32.mrf.mxu0 }
 0x218   : > { %v2076_v63 = vrot.slane %v8420_v3, 1  ;;  %v2096_v0 = vrot.slane %v8426_v26, 1  ;;  %v2955_v55 = vmax.f32 %v8165_v16, %v8409_v41  ;;  %9777 = vst [vmem:[#allocation36_spill] sm:$0xff] %v8477_v42 }
 0x219   : > { %v3167_v45 = vrot.slane %v3143_v23, 6  ;;  %v3183_v53 = vrot.slane %v3144_v30, 6  ;;  %v3199_v33 = vrot.slane %v3145_v35, 6  ;;  %v3247_v37 = vrot.slane %v3143_v23, 1 }
 0x21a   : > { %v3263_v49 = vrot.slane %v3144_v30, 1  ;;  %v3279_v9 = vrot.slane %v3145_v35, 1  ;;  %v2136_v20 = vsel %vm772_vm2, %v2096_v0, %v2116_v8  ;;  %v2156_v50 = vsel %vm772_vm2, %v2076_v63, %v2096_v0  ;;  %v8467_v30 = vpop.f32.mrf.mxu1 }
 0x21b   : > { %v3215_v16 = vsel %vm989_vm3, %v3167_v45, %v3183_v53  ;;  %v3231_v24 = vsel %vm989_vm3, %v3199_v33, %v3167_v45  ;;  %v2176_v59 = vsel %vm772_vm2, %v2116_v8, %v2076_v63  ;;  %v2230_v23 = vmax.f32 %v8420_v3, %v2156_v50  ;;  %9776 = vst [vmem:[#allocation35_spill] sm:$0xff] %v8467_v30 }
 0x21c   : > { %v3295_v35 = vsel %vm772_vm2, %v3263_v49, %v3279_v9  ;;  %v3311_v0 = vsel %vm772_vm2, %v3247_v37, %v3263_v49  ;;  %v2231_v6 = vmax.f32 %v8426_v26, %v2136_v20  ;;  %v2232_v53 = vmax.f32 %v8441_v7, %v2176_v59  ;;  %v8479_v37 = vld [vmem:[#allocation2 + $0x268] sm:$0xff]  ;;  %v4780_v59 = vld [vmem:[#allocation2 + $0x270] sm:$0xff] }
 0x21d   : > { %v3339_v33 = vmax.f32 %v3231_v24, %v3311_v0  ;;  %v3340_v45 = vmax.f32 %v3215_v16, %v3295_v35  ;;  %v2256_v27 = vrot.slane %v2230_v23, 6  ;;  %v2376_v8 = vrot.slane %v2230_v23, 1  ;;  %v8484_v24 = vpop.f32.mrf.mxu1 }
 0x21e   : > { %v2276_v63 = vrot.slane %v2231_v6, 6  ;;  %v2296_v50 = vrot.slane %v2232_v53, 6  ;;  %v2396_v46 = vrot.slane %v2231_v6, 1  ;;  %v2416_v30 = vrot.slane %v2232_v53, 1  ;;  %9778 = vst [vmem:[#allocation30_spill] sm:$0xff] %v8484_v24 }
 0x21f   : > { %v3371_v9 = vmax.f32 %v3339_v33, %v2999_v60  ;;  %v3372_v31 = vmax.f32 %v3340_v45, %v3000_v22  ;;  %v550_v49 = vmax.f32 %v4778_v10, %v8479_v37  ;;  %v9779_v33 = vld [vmem:[#allocation72_spill] sm:$0xff] }
 0x220   : > { %v2316_v20 = vsel %vm989_vm3, %v2276_v63, %v2296_v50  ;;  %v2336_v6 = vsel %vm989_vm3, %v2256_v27, %v2276_v63  ;;  %v2356_v60 = vsel %vm989_vm3, %v2296_v50, %v2256_v27  ;;  %v2436_v22 = vsel %vm772_vm2, %v2396_v46, %v2416_v30  ;;  %v9780_v63 = vld [vmem:[#allocation78_spill] sm:$0xff]  ;;  %v8502_v27 = vpop.f32.mrf.mxu0  ;;  %v9782_v50 = vld [vmem:[#allocation79_spill] sm:$0xff] }
 0x221   : > { %v3391_v16 = vpack.c.bf16 %v3372_v31, %v3371_v9  ;;  %v2456_v10 = vsel %vm772_vm2, %v2376_v8, %v2396_v46  ;;  %v2476_v23 = vsel %vm772_vm2, %v2416_v30, %v2376_v8  ;;  %v2531_v35 = vmax.f32 %v2336_v6, %v2436_v22  ;;  %9781 = vst [vmem:[#allocation37_spill] sm:$0xff] %v8502_v27  ;;  %v4781_v46 = vld [vmem:[#allocation2 + $0x278] sm:$0xff] }
 0x222   : > { %v2530_v0 = vmax.f32 %v2356_v60, %v2456_v10  ;;  %v2532_v53 = vmax.f32 %v2316_v20, %v2476_v23  ;;  %v622_v45 = vmax.f32 %v9779_v33, %v550_v49  ;;  %v8500_v42 = vmax.f32 %v9780_v63, %v4780_v59  ;;  %v8515_v49 = vpop.f32.mrf.mxu1 }
 0x223   : > { %4740 = vmatprep.mubr.msk.bf16.mxu1 %vm272_vm1, %v3391_v16  ;;  %v8506_v31 = vmax.f32 %v2531_v35, %v8426_v26  ;;  %v8509_v9 = vmax.f32 %v9782_v50, %v4781_v46  ;;  %v1933_v30 = vmax.f32 %v9726_v13, %v8398_v48  ;;  %v1934_v8 = vmax.f32 %v9733_v12, %v8401_v52  ;;  %v8548_v35 = vpop.f32.mrf.mxu0 }
 0x224   : > { %9783 = vst [vmem:[#allocation38_spill] sm:$0xff] %v8515_v49  ;;  %v8518_v59 = vmax.f32 %v2530_v0, %v8420_v3  ;;  %v8521_v20 = vmax.f32 %v2532_v53, %v8441_v7  ;;  %v8524_v26 = vmax.f32 %v622_v45, %v8475_v51  ;;  %v720_v6 = vrot.slane %v8500_v42, 1  ;;  %9786 = vst [vmem:[#allocation34_spill] sm:$0xff] %v8548_v35 }
 0x225   : > { %v8528_v60 = vmax.f32 %v2955_v55, %v8506_v31  ;;  %v744_v13 = vrot.slane %v8509_v9, 1  ;;  %v1935_v12 = vmax.f32 %v8261_v58, %v8414_v56  ;;  %v8534_v22 = vmax.f32 %v9728_v28, %v1933_v30 }
 0x226   : > { %v9784_v3 = vmax.f32 %v8154_v1, %v8405_v62  ;;  %v9785_v16 = vmax.f32 %v8169_v61, %v8430_v38  ;;  %v768_v55 = vrot.slane %v8524_v26, 1  ;;  %v8546_v23 = vmax.f32 %v9735_v15, %v1934_v8  ;;  %v8558_v61 = vpop.f32.mrf.mxu1 }
 0x227   : > { %v3040_v28 = vrot.slane %v8528_v60, 1  ;;  %v819_v58 = vsel %vm772_vm2, %v720_v6, %v744_v13  ;;  %v8554_v1 = vmax.f32 %v8226_v21, %v1935_v12  ;;  %v2909_v0 = vmax.f32 %v8369_v18, %v8518_v59  ;;  %9787 = vst [vmem:[#allocation39_spill] sm:$0xff] %v8558_v61  ;;  %v8577_v12 = vpop.f32.mrf.mxu0 }
 0x228   : > { %v3002_v7 = vmax.f32 %v9784_v3, %v8518_v59  ;;  %v3004_v10 = vmax.f32 %v9785_v16, %v8521_v20  ;;  %v795_v15 = vsel %vm772_vm2, %v744_v13, %v768_v55  ;;  %v843_v45 = vsel %vm772_vm2, %v768_v55, %v720_v6  ;;  %9788 = vst [vmem:[#allocation41_spill] sm:$0xff] %v8577_v12 }
 0x229   : > { %v911_v63 = vmax.f32 %v8500_v42, %v819_v58  ;;  %v912_v46 = vmax.f32 %v8509_v9, %v795_v15  ;;  %v913_v21 = vmax.f32 %v8524_v26, %v843_v45  ;;  %v2910_v50 = vmax.f32 %v8372_v4, %v8506_v31  ;;  %v8580_v15 = vpop.f32.mrf.mxu1 }
 0x22a   : > { %v3024_v53 = vrot.slane %v3002_v7, 1  ;;  %v3056_v33 = vrot.slane %v3004_v10, 1  ;;  %v2911_v6 = vmax.f32 %v8375_v54, %v8521_v20  ;;  %9789 = vst [vmem:[#allocation42_spill] sm:$0xff] %v8580_v15  ;;  %v474_v15 = vld [vmem:[#allocation2 + $0x298] sm:$0xff] }
 0x22b   : > { %v939_v58 = vrot.slane %v911_v63, 6  ;;  %v963_v45 = vrot.slane %v912_v46, 6  ;;  %v987_v35 = vrot.slane %v913_v21, 6  ;;  %v1084_v61 = vrot.slane %v911_v63, 1 }
 0x22c   : > { %v3072_v30 = vsel %vm772_vm2, %v3040_v28, %v3056_v33  ;;  %v3088_v8 = vsel %vm772_vm2, %v3024_v53, %v3040_v28  ;;  %v3104_v13 = vsel %vm772_vm2, %v3056_v33, %v3024_v53  ;;  %v1108_v27 = vrot.slane %v912_v46, 1 }
 0x22d   : > { %v3146_v3 = vmax.f32 %v3002_v7, %v3088_v8  ;;  %v3147_v16 = vmax.f32 %v8528_v60, %v3072_v30  ;;  %v3148_v55 = vmax.f32 %v3004_v10, %v3104_v13  ;;  %v1012_v54 = vsel %vm989_vm3, %v963_v45, %v987_v35  ;;  %v8586_v10 = vpop.f32.mrf.mxu0 }
 0x22e   : > { %v1036_v30 = vsel %vm989_vm3, %v939_v58, %v963_v45  ;;  %9790 = vst [vmem:[#allocation43_spill] sm:$0xff] %v8586_v10  ;;  %v1060_v46 = vsel %vm989_vm3, %v987_v35, %v939_v58  ;;  %v1132_v13 = vrot.slane %v913_v21, 1  ;;  %v1180_v45 = vsel %vm772_vm2, %v1084_v61, %v1108_v27  ;;  %v472_v58 = vld [vmem:[#allocation2 + $0x288] sm:$0xff] }
 0x22f   : > { %v3168_v28 = vrot.slane %v3146_v3, 6  ;;  %v3184_v49 = vrot.slane %v3147_v16, 6  ;;  %v3200_v24 = vrot.slane %v3148_v55, 6  ;;  %v3248_v53 = vrot.slane %v3146_v3, 1  ;;  %v8594_v3 = vpop.f32.mrf.mxu1  ;;  %v8612_v10 = vpop.f32.mrf.mxu0 }
 0x230   : > { %v3264_v33 = vrot.slane %v3147_v16, 1  ;;  %v3280_v34 = vrot.slane %v3148_v55, 1  ;;  %9791 = vst [vmem:[#allocation40_spill] sm:$0xff] %v8594_v3  ;;  %v1156_v35 = vsel %vm772_vm2, %v1108_v27, %v1132_v13  ;;  %v1204_v21 = vsel %vm772_vm2, %v1132_v13, %v1084_v61  ;;  %v9793_v61 = vld [vmem:[#allocation73_spill] sm:$0xff] }
 0x231   : > { %v3216_v8 = vsel %vm989_vm3, %v3168_v28, %v3184_v49  ;;  %v3232_v63 = vsel %vm989_vm3, %v3200_v24, %v3168_v28  ;;  %v8603_v49 = vmax.f32 %v8251_v57, %v2909_v0  ;;  %v1272_v28 = vmax.f32 %v1060_v46, %v1180_v45  ;;  %v8644_v13 = vpop.f32.mrf.mxu0 }
 0x232   : > { %v3296_v16 = vsel %vm772_vm2, %v3264_v33, %v3280_v34  ;;  %v3312_v55 = vsel %vm772_vm2, %v3248_v53, %v3264_v33  ;;  %v1273_v34 = vmax.f32 %v1036_v30, %v1156_v35  ;;  %v1274_v3 = vmax.f32 %v1012_v54, %v1204_v21  ;;  %v473_v33 = vld [vmem:[#allocation2 + $0x290] sm:$0xff]  ;;  %v8622_v30 = vpop.f32.mrf.mxu1 }
 0x233   : > { %v3341_v12 = vmax.f32 %v3232_v63, %v3312_v55  ;;  %v3342_v24 = vmax.f32 %v3216_v8, %v3296_v16  ;;  %v8610_v53 = vmax.f32 %v8275_v29, %v2910_v50  ;;  %v8616_v8 = vmax.f32 %v8279_v40, %v2911_v6  ;;  %v9795_v40 = vld [vmem:[#allocation81_spill] sm:$0xff] }
 0x234   : > { %v9792_v27 = vmax.f32 %v8479_v37, %v8475_v51  ;;  %v1344_v29 = vmax.f32 %v1272_v28, %v8500_v42  ;;  %v1345_v50 = vmax.f32 %v1273_v34, %v8509_v9  ;;  %v8627_v54 = vmax.f32 %v1274_v3, %v8524_v26  ;;  %v8672_v28 = vpop.f32.mrf.mxu0 }
 0x235   : > { %v3373_v57 = vmax.f32 %v3341_v12, %v3002_v7  ;;  %v3374_v0 = vmax.f32 %v3342_v24, %v8528_v60  ;;  %v9794_v7 = vld [vmem:[#allocation80_spill] sm:$0xff]  ;;  %v8633_v6 = vmax.f32 %v9795_v40, %v473_v33  ;;  %v2613_v51 = vpack.c.bf16 %v8372_v4, %v8369_v18  ;;  %v8652_v4 = vpop.f32.mrf.mxu1 }
 0x236   : > { %v625_v63 = vmax.f32 %v9793_v61, %v9792_v27  ;;  %v8630_v12 = vmax.f32 %v9794_v7, %v472_v58  ;;  %v2053_v37 = vmax.f32 %v8534_v22, %v1344_v29  ;;  %v2054_v42 = vmax.f32 %v8546_v23, %v1345_v50 }
 0x237   : > { %v3392_v60 = vpack.c.bf16 %v3374_v0, %v3373_v57  ;;  %v2055_v9 = vmax.f32 %v8554_v1, %v8627_v54  ;;  %v745_v3 = vrot.slane %v8633_v6, 1  ;;  %v1936_v16 = vmax.f32 %v8398_v48, %v1344_v29  ;;  %4710 = vmatprep.mubr.msk.bf16.mxu0 %vm272_vm1, %v2613_v51 }
 0x238   : > { %v8635_v46 = vmax.f32 %v625_v63, %v474_v15  ;;  %v721_v26 = vrot.slane %v8630_v12, 1  ;;  %v1937_v18 = vmax.f32 %v8401_v52, %v1345_v50  ;;  %v2077_v22 = vrot.slane %v2053_v37, 1 }
 0x239   : > { %4741 = vmatmul.mubr.msk.bf16.gmra.mxu1 %vm272_vm1, %v3392_v60  ;;  %v2097_v23 = vrot.slane %v2054_v42, 1  ;;  %v2117_v1 = vrot.slane %v2055_v9, 1  ;;  %v1938_v55 = vmax.f32 %v8414_v56, %v8627_v54  ;;  %v8663_v52 = vmax.f32 %v9768_v43, %v1936_v16  ;;  %v8675_v43 = vpop.f32.mrf.mxu1 }
 0x23a   : > { %v769_v15 = vrot.slane %v8635_v46, 1  ;;  %v820_v24 = vsel %vm772_vm2, %v721_v26, %v745_v3  ;;  %v1997_v29 = vmax.f32 %v9771_v2, %v1937_v18 }
 0x23b   : > { %v2137_v35 = vsel %vm772_vm2, %v2097_v23, %v2117_v1  ;;  %v2157_v21 = vsel %vm772_vm2, %v2077_v22, %v2097_v23  ;;  %v2177_v56 = vsel %vm772_vm2, %v2117_v1, %v2077_v22  ;;  %v914_v58 = vmax.f32 %v8630_v12, %v820_v24  ;;  %v8687_v18 = vpop.f32.mrf.mxu1 }
 0x23c   : > { %v796_v45 = vsel %vm772_vm2, %v745_v3, %v769_v15  ;;  %v844_v48 = vsel %vm772_vm2, %v769_v15, %v721_v26  ;;  %v2233_v34 = vmax.f32 %v2053_v37, %v2157_v21  ;;  %v2234_v33 = vmax.f32 %v2054_v42, %v2137_v35  ;;  %v8679_v15 = vpop.f32.mrf.mxu0 }
 0x23d   : > { %v2235_v57 = vmax.f32 %v2055_v9, %v2177_v56  ;;  %v915_v0 = vmax.f32 %v8633_v6, %v796_v45  ;;  %v916_v27 = vmax.f32 %v8635_v46, %v844_v48  ;;  %v940_v61 = vrot.slane %v914_v58, 6 }
 0x23e   : > { %v1085_v63 = vrot.slane %v914_v58, 1  ;;  %v2257_v50 = vrot.slane %v2233_v34, 6  ;;  %v2277_v54 = vrot.slane %v2234_v33, 6  ;;  %v2377_v60 = vrot.slane %v2233_v34, 1 }
 0x23f   : > { %v2297_v7 = vrot.slane %v2235_v57, 6  ;;  %v2397_v40 = vrot.slane %v2234_v33, 1  ;;  %v2417_v51 = vrot.slane %v2235_v57, 1  ;;  %v964_v26 = vrot.slane %v915_v0, 6 }
 0x240   : > { %v988_v3 = vrot.slane %v916_v27, 6  ;;  %v2337_v22 = vsel %vm989_vm3, %v2257_v50, %v2277_v54  ;;  %v1109_v2 = vrot.slane %v915_v0, 1  ;;  %v1133_v33 = vrot.slane %v916_v27, 1 }
 0x241   : > { %v2317_v16 = vsel %vm989_vm3, %v2277_v54, %v2297_v7  ;;  %v2357_v23 = vsel %vm989_vm3, %v2297_v7, %v2257_v50  ;;  %v2437_v1 = vsel %vm772_vm2, %v2397_v40, %v2417_v51  ;;  %v2457_v45 = vsel %vm772_vm2, %v2377_v60, %v2397_v40  ;;  %v8704_v50 = vpop.f32.mrf.mxu0 }
 0x242   : > { %v2477_v24 = vsel %vm772_vm2, %v2417_v51, %v2377_v60  ;;  %v1013_v48 = vsel %vm989_vm3, %v964_v26, %v988_v3  ;;  %v2533_v35 = vmax.f32 %v2357_v23, %v2457_v45  ;;  %v2534_v21 = vmax.f32 %v2337_v22, %v2437_v1  ;;  %v8706_v51 = vpop.f32.mrf.mxu1 }
 0x243   : > { %v2535_v56 = vmax.f32 %v2317_v16, %v2477_v24  ;;  %v1037_v58 = vsel %vm989_vm3, %v940_v61, %v964_v26  ;;  %v1061_v34 = vsel %vm989_vm3, %v988_v3, %v940_v61  ;;  %v1181_v57 = vsel %vm772_vm2, %v1085_v63, %v1109_v2 }
 0x244   : > { %v1998_v0 = vmax.f32 %v8360_v47, %v1938_v55  ;;  %v2593_v54 = vmax.f32 %v2533_v35, %v2053_v37  ;;  %v2594_v7 = vmax.f32 %v2534_v21, %v2054_v42  ;;  %v1275_v40 = vmax.f32 %v1061_v34, %v1181_v57 }
 0x245   : > { %v2595_v60 = vmax.f32 %v2535_v56, %v2055_v9  ;;  %v1157_v26 = vsel %vm772_vm2, %v1109_v2, %v1133_v33  ;;  %v1205_v61 = vsel %vm772_vm2, %v1133_v33, %v1085_v63  ;;  %v2614_v27 = vpack.c.bf16 %v8506_v31, %v8518_v59  ;;  %v8721_v63 = vpop.f32.mrf.mxu0 }
 0x246   : > { %v3005_v3 = vmax.f32 %v8603_v49, %v2593_v54  ;;  %v3006_v47 = vmax.f32 %v8610_v53, %v2594_v7  ;;  %v1276_v42 = vmax.f32 %v1037_v58, %v1157_v26  ;;  %v1277_v9 = vmax.f32 %v1013_v48, %v1205_v61  ;;  %v8724_v53 = vpop.f32.mrf.mxu1 }
 0x247   : > { %v3007_v37 = vmax.f32 %v8616_v8, %v2595_v60  ;;  %v1347_v55 = vmax.f32 %v1275_v40, %v8630_v12  ;;  %v2912_v16 = vmax.f32 %v8518_v59, %v2593_v54  ;;  %v2913_v22 = vmax.f32 %v8506_v31, %v2594_v7  ;;  %4711 = vmatmul.mubr.msk.bf16.gmra.mxu0 %vm272_vm1, %v2614_v27  ;;  %v8736_v58 = vpop.f32.mrf.mxu0 }
 0x248   : > { %v3025_v23 = vrot.slane %v3005_v3, 1  ;;  %v3041_v2 = vrot.slane %v3006_v47, 1  ;;  %v1348_v49 = vmax.f32 %v1276_v42, %v8633_v6  ;;  %v1349_v8 = vmax.f32 %v1277_v9, %v8635_v46  ;;  %v8740_v33 = vpop.f32.mrf.mxu1 }
 0x249   : > { %v3057_v1 = vrot.slane %v3007_v37, 1  ;;  %v2056_v45 = vmax.f32 %v8663_v52, %v1347_v55  ;;  %v2914_v12 = vmax.f32 %v8521_v20, %v2595_v60  ;;  %v2960_v59 = vmax.f32 %v8405_v62, %v2912_v16 }
 0x24a   : > { %v3089_v24 = vsel %vm772_vm2, %v3025_v23, %v3041_v2  ;;  %v2057_v6 = vmax.f32 %v1997_v29, %v1348_v49  ;;  %v2058_v46 = vmax.f32 %v1998_v0, %v1349_v8  ;;  %v2961_v62 = vmax.f32 %v8409_v41, %v2913_v22  ;;  %v1861_v16 = vpop.f32.mrf.mxu1 }
 0x24b   : > { %v3073_v31 = vsel %vm772_vm2, %v3041_v2, %v3057_v1  ;;  %v3105_v48 = vsel %vm772_vm2, %v3057_v1, %v3025_v23  ;;  %v3149_v35 = vmax.f32 %v3005_v3, %v3089_v24  ;;  %v2078_v52 = vrot.slane %v2056_v45, 1 }
 0x24c   : > { %v3150_v21 = vmax.f32 %v3006_v47, %v3073_v31  ;;  %v3151_v56 = vmax.f32 %v3007_v37, %v3105_v48  ;;  %v2098_v20 = vrot.slane %v2057_v6, 1  ;;  %v2962_v34 = vmax.f32 %v8430_v38, %v2914_v12  ;;  %v8748_v38 = vpop.f32.mrf.mxu0 }
 0x24d   : > { %v3169_v57 = vrot.slane %v3149_v35, 6  ;;  %v3249_v60 = vrot.slane %v3149_v35, 1  ;;  %v2118_v26 = vrot.slane %v2058_v46, 1 }
 0x24e   : > { %v3185_v54 = vrot.slane %v3150_v21, 6  ;;  %v3201_v7 = vrot.slane %v3151_v56, 6  ;;  %v3265_v40 = vrot.slane %v3150_v21, 1  ;;  %v3281_v29 = vrot.slane %v3151_v56, 1  ;;  %v8758_v35 = vpop.f32.mrf.mxu0 }
 0x24f   : > { %v2158_v0 = vsel %vm772_vm2, %v2078_v52, %v2098_v20  ;;  %v2138_v9 = vsel %vm772_vm2, %v2098_v20, %v2118_v26  ;;  %v2178_v55 = vsel %vm772_vm2, %v2118_v26, %v2078_v52 }
 0x250   : > { %v3217_v61 = vsel %vm989_vm3, %v3169_v57, %v3185_v54  ;;  %v3233_v41 = vsel %vm989_vm3, %v3201_v7, %v3169_v57  ;;  %v2236_v27 = vmax.f32 %v2056_v45, %v2158_v0  ;;  %v3297_v37 = vsel %vm772_vm2, %v3265_v40, %v3281_v29  ;;  %v8760_v57 = vpop.f32.mrf.mxu1  ;;  %v8775_v0 = vpop.f32.mrf.mxu0 }
 0x251   : > { %v3313_v42 = vsel %vm772_vm2, %v3249_v60, %v3265_v40  ;;  %v3344_v23 = vmax.f32 %v3217_v61, %v3297_v37  ;;  %v2237_v2 = vmax.f32 %v2057_v6, %v2138_v9  ;;  %v2238_v1 = vmax.f32 %v2058_v46, %v2178_v55 }
 0x252   : > { %v3343_v22 = vmax.f32 %v3233_v41, %v3313_v42  ;;  %v2258_v49 = vrot.slane %v2236_v27, 6  ;;  %v2378_v8 = vrot.slane %v2236_v27, 1  ;;  %v8777_v61 = vpop.f32.mrf.mxu1 }
 0x253   : > { %v3376_v31 = vmax.f32 %v3344_v23, %v3006_v47  ;;  %v2278_v24 = vrot.slane %v2237_v2, 6  ;;  %v2298_v48 = vrot.slane %v2238_v1, 6  ;;  %v2398_v21 = vrot.slane %v2237_v2, 1 }
 0x254   : > { %v3375_v12 = vmax.f32 %v3343_v22, %v3005_v3  ;;  %v2418_v56 = vrot.slane %v2238_v1, 1  ;;  %v8779_v22 = vpop.f32.mrf.mxu0  ;;  %v1755_v23 = vadd.f32 %v8057_v19, %v8059_v14  ;;  %v1747_v2 = vadd.f32 %v8078_v36, %v8080_v32  ;;  %v9798_v19 = vld [vmem:[#allocation12_spill] sm:$0xff]  ;;  %v9799_v36 = vld [vmem:[#allocation43_spill] sm:$0xff] }
 0x255   : > { %v2318_v52 = vsel %vm989_vm3, %v2278_v24, %v2298_v48  ;;  %v2338_v54 = vsel %vm989_vm3, %v2258_v49, %v2278_v24  ;;  %v2358_v7 = vsel %vm989_vm3, %v2298_v48, %v2258_v49  ;;  %v2458_v47 = vsel %vm772_vm2, %v2378_v8, %v2398_v21 }
 0x256   : > { %v3393_v20 = vpack.c.bf16 %v3376_v31, %v3375_v12  ;;  %v2438_v3 = vsel %vm772_vm2, %v2398_v21, %v2418_v56  ;;  %v2478_v60 = vsel %vm772_vm2, %v2418_v56, %v2378_v8  ;;  %v2536_v40 = vmax.f32 %v2358_v7, %v2458_v47  ;;  %v9797_v8 = vld [vmem:[#allocation21_spill] sm:$0xff] }
 0x257   : > { %v2537_v29 = vmax.f32 %v2338_v54, %v2438_v3  ;;  %v2538_v26 = vmax.f32 %v2318_v52, %v2478_v60  ;;  %v1758_v1 = vadd.f32 %v8097_v5, %v8099_v39  ;;  %v8789_v49 = vadd.f32 %v8111_v44, %v8113_v17  ;;  %v172_v44 = vld [vmem:[%s9243_s2] sm:$0x1] }
 0x258   : > { %4744 = vmatprep.mubr.msk.bf16.mxu1 %vm272_vm1, %v3393_v20  ;;  %v2596_v41 = vmax.f32 %v2536_v40, %v2056_v45  ;;  %v4719_v45 = vpop.f32.mrf.mxu1  ;;  %v8797_v14 = vadd.f32 %v9798_v19, %v9797_v8  ;;  %v8801_v32 = vadd.f32 %v8622_v30, %v9799_v36  ;;  %v8805_v5 = vadd.f32 %v8652_v4, %v8612_v10  ;;  %v4688_v4 = vpop.f32.mrf.mxu0 }
 0x259   : > { %v2597_v27 = vmax.f32 %v2537_v29, %v2057_v6  ;;  %v2598_v37 = vmax.f32 %v2538_v26, %v2058_v46  ;;  %v8809_v39 = vadd.f32 %v8675_v43, %v8644_v13  ;;  %v8822_v10 = vadd.f32 %v8687_v18, %v8672_v28  ;;  %v9802_v26 = vld [vmem:[#allocation24_spill] sm:$0xff] }
 0x25a   : > { %v3008_v42 = vmax.f32 %v2960_v59, %v2596_v41  ;;  %v8826_v31 = vadd.f32 %v8706_v51, %v8679_v15  ;;  %v8828_v24 = vpop.f32.mrf.mxu1  ;;  %v8832_v48 = vadd.f32 %v8724_v53, %v8704_v50  ;;  %v8836_v21 = vadd.f32 %v8740_v33, %v8721_v63  ;;  %v8842_v47 = vpop.f32.mrf.mxu0  ;;  %v9800_v53 = vld [vmem:[#allocation9_spill] sm:$0xff]  ;;  %v9803_v41 = vld [vmem:[#allocation19_spill] sm:$0xff] }
 0x25b   : > { %v3009_v9 = vmax.f32 %v2961_v62, %v2597_v27  ;;  %v3010_v55 = vmax.f32 %v2962_v34, %v2598_v37  ;;  %v9796_v62 = vld [vmem:[#allocation15_spill] sm:$0xff]  ;;  %v8839_v28 = vadd.f32 %v1861_v16, %v8736_v58  ;;  %v173_v18 = vmax.f32 %v172_v44, 0.0  ;;  %v9801_v58 = vld [vmem:[#allocation25_spill] sm:$0xff] }
 0x25c   : > { %v3026_v6 = vrot.slane %v3008_v42, 1  ;;  %v8793_v34 = vadd.f32 %v9796_v62, %v8128_v25  ;;  %v180_v3 = vsub.s32 0, %v4903_v11  ;;  %v8851_v33 = vadd.f32 %v9801_v58, %v9800_v53  ;;  %v8854_v60 = vpop.f32.mrf.mxu1  ;;  %v8872_v62 = vpop.f32.mrf.mxu0 }
 0x25d   : > { %v3042_v59 = vrot.slane %v3009_v9, 1  ;;  %v3058_v46 = vrot.slane %v3010_v55, 1  ;;  %v174_v7 = vpack.c.bf16 %v173_v18, %v173_v18  ;;  %v2831_v16 = vadd.f32 %v8748_v38, %v1755_v23 }
 0x25e   : > { %v8862_v27 = vadd.f32 %v9803_v41, %v9802_v26  ;;  %v2832_v11 = vadd.f32 %v8775_v0, %v1758_v1  ;;  %v2836_v44 = vadd.f32 %v8872_v62, %v8851_v33 }
 0x25f   : > { %v3074_v17 = vsel %vm772_vm2, %v3042_v59, %v3058_v46  ;;  %v3090_v25 = vsel %vm772_vm2, %v3026_v6, %v3042_v59  ;;  %v3106_v30 = vsel %vm772_vm2, %v3058_v46, %v3026_v6  ;;  %v176_v37 = vpack.i.b16 %v174_v7, %v174_v7 }
 0x260   : > { %v3152_v13 = vmax.f32 %v3008_v42, %v3090_v25  ;;  %v3153_v43 = vmax.f32 %v3009_v9, %v3074_v17  ;;  %v3154_v12 = vmax.f32 %v3010_v55, %v3106_v30  ;;  %v8867_v55 = vld [vmem:[%s9243_s2] ss:$0 sm:$0xff]  ;;  %v3611_v23 = vadd.f32 %v8760_v57, %v2831_v16  ;;  %v2721_v17 = vpop.f32.mrf.mxu0 }
 0x261   : > { %v2829_v59 = vadd.f32 %v8758_v35, %v1747_v2  ;;  %v181_v46 = vrot.slane %v176_v37, %v180_v3  ;;  %v8887_v2 = vpop.f32.mrf.mxu1 }
 0x262   : > { %v3170_v56 = vrot.slane %v3152_v13, 6  ;;  %v3186_v20 = vrot.slane %v3153_v43, 6  ;;  %v3202_v52 = vrot.slane %v3154_v12, 6  ;;  %v3250_v54 = vrot.slane %v3152_v13, 1 }
 0x263   : > { %v3266_v15 = vrot.slane %v3153_v43, 1  ;;  %v3282_v51 = vrot.slane %v3154_v12, 1  ;;  %v8884_v35 = vadd.f32 %v8867_v55, %v3611_v23  ;;  %v3609_v0 = vadd.f32 %v8777_v61, %v2829_v59 }
 0x264   : > { %v3218_v50 = vsel %vm989_vm3, %v3170_v56, %v3186_v20  ;;  %v3234_v63 = vsel %vm989_vm3, %v3202_v52, %v3170_v56  ;;  %v4312_v1 = vcombine.low %v181_v46, %v181_v46  ;;  %v2834_v52 = vadd.f32 %v2721_v17, %v8862_v27 }
 0x265   : > { %v3298_v40 = vsel %vm772_vm2, %v3266_v15, %v3282_v51  ;;  %v3314_v29 = vsel %vm772_vm2, %v3250_v54, %v3266_v15  ;;  %v3682_v61 = vmax.f32 %v8884_v35, 0.0  ;;  %v8895_v36 = vadd.f32 %v8867_v55, %v3609_v0 }
 0x266   : > { %v3345_v6 = vmax.f32 %v3234_v63, %v3314_v29  ;;  %v3346_v38 = vmax.f32 %v3218_v50, %v3298_v40  ;;  %186 = vst [vmem:[%s8877_s6] sm:$0xf] %v4312_v1  ;;  %187 = vst [vmem:[%s8877_s6 + $0x4] sm:$0xf] %v4312_v1 }
 0x267   : > { %188 = vst [vmem:[%s8877_s6 + $0x8] sm:$0x1] %v4312_v1  ;;  %192 = vst [vmem:[%s8877_s6 + $0x18] sm:$0xf] %v4312_v1  ;;  %v4514_v25 = vpack.c.bf16 %v3682_v61, %v3682_v61  ;;  %v3680_v30 = vmax.f32 %v8895_v36, 0.0 }
 0x268   : > { %v8879_v8 = vmax.f32 %v3345_v6, %v3008_v42  ;;  %v8881_v57 = vmax.f32 %v3346_v38, %v3009_v9  ;;  %v3612_v42 = vadd.f32 %v4719_v45, %v2832_v11  ;;  %v2830_v9 = vadd.f32 %v8779_v22, %v8789_v49  ;;  %237 = vst [vmem:[%s8877_s6 + $0xcc] sm:$0xf] %v4312_v1  ;;  %v4692_v11 = vpop.f32.mrf.mxu0 }
 0x269   : > { %v8898_v45 = vadd.f32 %v4688_v4, %v8793_v34  ;;  %238 = vst [vmem:[%s8877_s6 + $0xd0] sm:$0xf] %v4312_v1  ;;  %239 = vst [vmem:[%s8877_s6 + $0xd4] sm:$0x1] %v4312_v1  ;;  %v2833_v34 = vadd.f32 %v8842_v47, %v8797_v14  ;;  %v4723_v14 = vpop.f32.mrf.mxu1  ;;  %v3829_v18 = vshrl.u32 %v4514_v25, 16  ;;  %v4512_v56 = vpack.c.bf16 %v3680_v30, %v3680_v30 }
 0x26a   : > { %v3394_v19 = vpack.c.bf16 %v8881_v57, %v8879_v8  ;;  %189 = vst [vmem:[%s8877_s6 + $0xc] sm:$0xf] %v4312_v1  ;;  %190 = vst [vmem:[%s8877_s6 + $0x10] sm:$0xf] %v4312_v1  ;;  %v3651_v22 = vadd.f32 %v8867_v55, %v3612_v42  ;;  %v3610_v49 = vadd.f32 %v8828_v24, %v2830_v9  ;;  %v3832_v54 = vshll.u32 %v4514_v25, 16 }
 0x26b   : > { %191 = vst [vmem:[%s8877_s6 + $0x14] sm:$0x1] %v4312_v1  ;;  %193 = vst [vmem:[%s8877_s6 + $0x1c] sm:$0xf] %v4312_v1  ;;  %v3615_v4 = vadd.f32 %v8854_v60, %v8898_v45  ;;  %v3613_v12 = vadd.f32 %v8887_v2, %v2833_v34  ;;  %v3616_v24 = vadd.f32 %v4723_v14, %v2836_v44  ;;  %v3831_v3 = vrot.slane %v3829_v18, 7  ;;  %v9810_v18 = vld [vmem:[#allocation5_spill] sm:$0xff] }
 0x26c   : > { %194 = vst [vmem:[%s8877_s6 + $0x20] sm:$0x1] %v4312_v1  ;;  %195 = vst [vmem:[%s8877_s6 + $0x24] sm:$0xf] %v4312_v1  ;;  %4745 = vmatmul.mubr.msk.bf16.gmra.mxu1 %vm272_vm1, %v3394_v19  ;;  %v3683_v13 = vmax.f32 %v3651_v22, 0.0  ;;  %v3649_v43 = vadd.f32 %v8867_v55, %v3610_v49  ;;  %v3812_v47 = vshrl.u32 %v4512_v56, 16 }
 0x26d   : > { %196 = vst [vmem:[%s8877_s6 + $0x28] sm:$0xf] %v4312_v1  ;;  %197 = vst [vmem:[%s8877_s6 + $0x2c] sm:$0x1] %v4312_v1  ;;  %v3654_v20 = vadd.f32 %v8867_v55, %v3615_v4  ;;  %v3652_v7 = vadd.f32 %v8867_v55, %v3613_v12  ;;  %v3655_v63 = vadd.f32 %v8867_v55, %v3616_v24  ;;  %v3815_v58 = vshll.u32 %v4512_v56, 16  ;;  %v2734_v4 = vpop.f32.mrf.mxu0  ;;  %v3501_v12 = vpop.f32.mrf.mxu1  ;;  %v9811_v56 = vld [vmem:[#allocation23_spill] sm:$0xff] }
 0x26e   : > { %198 = vst [vmem:[%s8877_s6 + $0x30] sm:$0xf] %v4312_v1  ;;  %199 = vst [vmem:[%s8877_s6 + $0x34] sm:$0xf] %v4312_v1  ;;  %v4515_v15 = vpack.c.bf16 %v3683_v13, %v3683_v13  ;;  %v3681_v51 = vmax.f32 %v3649_v43, 0.0  ;;  %v3834_v40 = vor.u32 %v3832_v54, %v3831_v3  ;;  %v3814_v26 = vrot.slane %v3812_v47, 7 }
 0x26f   : > { %200 = vst [vmem:[%s8877_s6 + $0x38] sm:$0x1] %v4312_v1  ;;  %201 = vst [vmem:[%s8877_s6 + $0x3c] sm:$0xf] %v4312_v1  ;;  %v3686_v50 = vmax.f32 %v3654_v20, 0.0  ;;  %v3684_v60 = vmax.f32 %v3652_v7, 0.0  ;;  %v1787_v20 = vadd.f32 %v9811_v56, %v9810_v18  ;;  %v3614_v7 = vadd.f32 %v3501_v12, %v2834_v52 }
 0x270   : > { %202 = vst [vmem:[%s8877_s6 + $0x40] sm:$0xf] %v4312_v1  ;;  %203 = vst [vmem:[%s8877_s6 + $0x44] sm:$0x1] %v4312_v1  ;;  %v3837_v33 = vshrl.u32 %v4515_v15, 16  ;;  %v4513_v16 = vpack.c.bf16 %v3681_v51, %v3681_v51  ;;  %v3840_v41 = vshll.u32 %v4515_v15, 16  ;;  %v3817_v8 = vor.u32 %v3815_v58, %v3814_v26 }
 0x271   : > { %204 = vst [vmem:[%s8877_s6 + $0x48] sm:$0xf] %v4312_v1  ;;  %205 = vst [vmem:[%s8877_s6 + $0x4c] sm:$0xf] %v4312_v1  ;;  %v4434_v29 = vld [vmem:[%s8877_s6 + $0x18] sm:$0xf]  ;;  %v4518_v27 = vpack.c.bf16 %v3686_v50, %v3686_v50  ;;  %v4516_v46 = vpack.c.bf16 %v3684_v60, %v3684_v60  ;;  %v2839_v60 = vadd.f32 %v4692_v11, %v1787_v20 }
 0x272   : > { %206 = vst [vmem:[%s8877_s6 + $0x50] sm:$0x1] %v4312_v1  ;;  %207 = vst [vmem:[%s8877_s6 + $0x54] sm:$0xf] %v4312_v1  ;;  %v3835_v37 = vrot.slane %v3831_v3, 4  ;;  %v3839_v23 = vrot.slane %v3837_v33, 7  ;;  %v4145_v62 = vsel %vm8978_vm9, %v3834_v40, %v4434_v29  ;;  %v4693_v40 = vpop.f32.mrf.mxu0 }
 0x273   : > { %208 = vst [vmem:[%s8877_s6 + $0x58] sm:$0xf] %v4312_v1  ;;  %209 = vst [vmem:[%s8877_s6 + $0x5c] sm:$0x1] %v4312_v1  ;;  %v4429_v6 = vld [vmem:[%s8877_s6 + $0xc] sm:$0xf] }
 0x274   : > { %210 = vst [vmem:[%s8877_s6 + $0x60] sm:$0xf] %v4312_v1  ;;  %211 = vst [vmem:[%s8877_s6 + $0x64] sm:$0xf] %v4312_v1  ;;  %v3820_v59 = vshrl.u32 %v4513_v16, 16  ;;  %v3823_v0 = vshll.u32 %v4513_v16, 16  ;;  %v3842_v42 = vor.u32 %v3840_v41, %v3839_v23  ;;  %v4136_v61 = vsel %vm8978_vm9, %v3817_v8, %v4429_v6  ;;  %v2737_v11 = vpop.f32.mrf.mxu0 }
 0x275   : > { %212 = vst [vmem:[%s8877_s6 + $0x68] sm:$0x1] %v4312_v1  ;;  %213 = vst [vmem:[%s8877_s6 + $0x6c] sm:$0xf] %v4312_v1  ;;  %v4437_v35 = vld [vmem:[%s8877_s6 + $0x20] sm:$0x1]  ;;  %v3653_v16 = vadd.f32 %v8867_v55, %v3614_v7 }
 0x276   : > { %214 = vst [vmem:[%s8877_s6 + $0x70] sm:$0xf] %v4312_v1  ;;  %215 = vst [vmem:[%s8877_s6 + $0x74] sm:$0x1] %v4312_v1  ;;  %v3863_v2 = vshrl.u32 %v4518_v27, 16  ;;  %v3844_v9 = vrot.slane %v3839_v23, 4  ;;  %v3843_v34 = vsel %vm8986_vm10, %v3835_v37, %v3842_v42 }
 0x277   : > { %216 = vst [vmem:[%s8877_s6 + $0x78] sm:$0xf] %v4312_v1  ;;  %217 = vst [vmem:[%s8877_s6 + $0x7c] sm:$0xf] %v4312_v1  ;;  %v3822_v19 = vrot.slane %v3820_v59, 7  ;;  %v3866_v22 = vshll.u32 %v4518_v27, 16 }
 0x278   : > { %218 = vst [vmem:[%s8877_s6 + $0x80] sm:$0x1] %v4312_v1  ;;  %219 = vst [vmem:[%s8877_s6 + $0x84] sm:$0xf] %v4312_v1  ;;  %v4432_v36 = vld [vmem:[%s8877_s6 + $0x14] sm:$0x1]  ;;  %v4149_v44 = vsel %vm8994_vm11, %v3844_v9, %v4437_v35 }
 0x279   : > { %220 = vst [vmem:[%s8877_s6 + $0x88] sm:$0xf] %v4312_v1  ;;  %221 = vst [vmem:[%s8877_s6 + $0x8c] sm:$0x1] %v4312_v1  ;;  %v3865_v45 = vrot.slane %v3863_v2, 7  ;;  %v3846_v49 = vshrl.u32 %v4516_v46, 16  ;;  %v3825_v17 = vor.u32 %v3823_v0, %v3822_v19 }
 0x27a   : > { %222 = vst [vmem:[%s8877_s6 + $0x90] sm:$0xf] %v4312_v1  ;;  %223 = vst [vmem:[%s8877_s6 + $0x94] sm:$0xf] %v4312_v1  ;;  %v3827_v25 = vrot.slane %v3822_v19, 4  ;;  %v3849_v43 = vshll.u32 %v4516_v46, 16  ;;  %v4726_v46 = vpop.f32.mrf.mxu1 }
 0x27b   : > { %224 = vst [vmem:[%s8877_s6 + $0x98] sm:$0x1] %v4312_v1  ;;  %225 = vst [vmem:[%s8877_s6 + $0x9c] sm:$0xf] %v4312_v1  ;;  %v4444_v30 = vld [vmem:[%s8877_s6 + $0x30] sm:$0xf]  ;;  %v3868_v14 = vor.u32 %v3866_v22, %v3865_v45  ;;  %v3619_v35 = vadd.f32 %v4726_v46, %v2839_v60 }
 0x27c   : > { %226 = vst [vmem:[%s8877_s6 + $0xa0] sm:$0xf] %v4312_v1  ;;  %227 = vst [vmem:[%s8877_s6 + $0xa4] sm:$0x1] %v4312_v1  ;;  %v9011_v13 = vrot.slane %v3846_v49, 7  ;;  %v3687_v24 = vmax.f32 %v3655_v63, 0.0  ;;  %v4142_v15 = vsel %vm8994_vm11, %v3827_v25, %v4432_v36  ;;  %v3514_v36 = vpop.f32.mrf.mxu1 }
 0x27d   : > { %228 = vst [vmem:[%s8877_s6 + $0xa8] sm:$0xf] %v4312_v1  ;;  %229 = vst [vmem:[%s8877_s6 + $0xac] sm:$0xf] %v4312_v1  ;;  %v4439_v51 = vld [vmem:[%s8877_s6 + $0x24] sm:$0xf]  ;;  %v4159_v3 = vsel %vm8978_vm9, %v3868_v14, %v4444_v30  ;;  %v3658_v49 = vadd.f32 %v8867_v55, %v3619_v35 }
 0x27e   : > { %230 = vst [vmem:[%s8877_s6 + $0xb0] sm:$0x1] %v4312_v1  ;;  %231 = vst [vmem:[%s8877_s6 + $0xb4] sm:$0xf] %v4312_v1  ;;  %v3851_v47 = vor.u32 %v3849_v43, %v9011_v13  ;;  %v4519_v50 = vpack.c.bf16 %v3687_v24, %v3687_v24  ;;  %v9812_v63 = vld [vmem:[#allocation14_spill] sm:$0xff]  ;;  %v9813_v58 = vld [vmem:[#allocation11_spill] sm:$0xff]  ;;  %v4727_v30 = vpop.f32.mrf.mxu1 }
 0x27f   : > { %232 = vst [vmem:[%s8877_s6 + $0xb8] sm:$0xf] %v4312_v1  ;;  %233 = vst [vmem:[%s8877_s6 + $0xbc] sm:$0x1] %v4312_v1  ;;  %v1779_v33 = vadd.f32 %v9813_v58, %v9812_v63  ;;  %v9815_v41 = vld [vmem:[#allocation13_spill] sm:$0xff]  ;;  %v3685_v37 = vmax.f32 %v3653_v16, 0.0 }
 0x280   : > { %234 = vst [vmem:[%s8877_s6 + $0xc0] sm:$0xf] %v4312_v1  ;;  %235 = vst [vmem:[%s8877_s6 + $0xc4] sm:$0xf] %v4312_v1  ;;  %v4152_v52 = vsel %vm8978_vm9, %v3851_v47, %v4439_v51  ;;  %v3871_v29 = vshrl.u32 %v4519_v50, 16  ;;  %v3874_v59 = vshll.u32 %v4519_v50, 16  ;;  %v3517_v51 = vpop.f32.mrf.mxu1 }
 0x281   : > { %236 = vst [vmem:[%s8877_s6 + $0xc8] sm:$0x1] %v4312_v1  ;;  %4435 = vst [vmem:[%s8877_s6 + $0x18] sm:$0xf] %v4145_v62  ;;  %v3818_v1 = vrot.slane %v3814_v26, 4  ;;  %v9814_v26 = vld [vmem:[#allocation10_spill] sm:$0xff]  ;;  %v2837_v6 = vadd.f32 %v2734_v4, %v1779_v33  ;;  %v4517_v8 = vpack.c.bf16 %v3685_v37, %v3685_v37 }
 0x282   : > { %4430 = vst [vmem:[%s8877_s6 + $0xc] sm:$0xf] %v4136_v61  ;;  %4436 = vst [vmem:[%s8877_s6 + $0x1c] sm:$0xf] %v3843_v34  ;;  %v1790_v27 = vadd.f32 %v9815_v41, %v9814_v26  ;;  %v3873_v23 = vrot.slane %v3871_v29, 7  ;;  %v9816_v2 = vld [vmem:[#allocation7_spill] sm:$0xff] }
 0x283   : > { %4438 = vst [vmem:[%s8877_s6 + $0x20] sm:$0x1] %v4149_v44  ;;  %v3826_v54 = vsel %vm8986_vm10, %v3818_v1, %v3825_v17  ;;  %4433 = vst [vmem:[%s8877_s6 + $0x14] sm:$0x1] %v4142_v15  ;;  %v4447_v62 = vld [vmem:[%s8877_s6 + $0x38] sm:$0x1]  ;;  %v3617_v34 = vadd.f32 %v3514_v36, %v2837_v6 }
 0x284   : > { %4431 = vst [vmem:[%s8877_s6 + $0x10] sm:$0xf] %v3826_v54  ;;  %4445 = vst [vmem:[%s8877_s6 + $0x30] sm:$0xf] %v4159_v3  ;;  %v2840_v0 = vadd.f32 %v4693_v40, %v1790_v27  ;;  %v9817_v1 = vld [vmem:[#allocation8_spill] sm:$0xff]  ;;  %v3869_v9 = vrot.slane %v3865_v45, 4  ;;  %v3876_v19 = vor.u32 %v3874_v59, %v3873_v23 }
 0x285   : > { %4440 = vst [vmem:[%s8877_s6 + $0x24] sm:$0xf] %v4152_v52  ;;  %v1782_v42 = vadd.f32 %v9817_v1, %v9816_v2  ;;  %v3878_v61 = vrot.slane %v3873_v23, 4  ;;  %v3854_v22 = vshrl.u32 %v4517_v8, 16  ;;  %v3857_v25 = vshll.u32 %v4517_v8, 16 }
 0x286   : > { %v3877_v44 = vsel %vm8986_vm10, %v3869_v9, %v3876_v19  ;;  %v3690_v14 = vmax.f32 %v3658_v49, 0.0  ;;  %v3656_v43 = vadd.f32 %v8867_v55, %v3617_v34  ;;  %v3620_v12 = vadd.f32 %v4727_v30, %v2840_v0  ;;  %v4442_v18 = vld [vmem:[%s8877_s6 + $0x2c] sm:$0x1]  ;;  %v4454_v40 = vld [vmem:[%s8877_s6 + $0x48] sm:$0xf] }
 0x287   : > { %v4163_v17 = vsel %vm8994_vm11, %v3878_v61, %v4447_v62  ;;  %v2838_v4 = vadd.f32 %v2737_v11, %v1782_v42  ;;  %4446 = vst [vmem:[%s8877_s6 + $0x34] sm:$0xf] %v3877_v44  ;;  %v3856_v45 = vrot.slane %v3854_v22, 7  ;;  %v3852_v24 = vrot.slane %v9011_v13, 4  ;;  %v4449_v46 = vld [vmem:[%s8877_s6 + $0x3c] sm:$0xf]  ;;  %v4696_v62 = vpop.f32.mrf.mxu0 }
 0x288   : > { %4448 = vst [vmem:[%s8877_s6 + $0x38] sm:$0x1] %v4163_v17  ;;  %v4522_v54 = vpack.c.bf16 %v3690_v14, %v3690_v14  ;;  %v3688_v15 = vmax.f32 %v3656_v43, 0.0  ;;  %v3659_v7 = vadd.f32 %v8867_v55, %v3620_v12  ;;  %v4457_v1 = vld [vmem:[%s8877_s6 + $0x50] sm:$0x1] }
 0x289   : > { %v3859_v56 = vor.u32 %v3857_v25, %v3856_v45  ;;  %v3861_v20 = vrot.slane %v3856_v45, 4  ;;  %v3618_v3 = vadd.f32 %v3517_v51, %v2838_v4  ;;  %v4452_v49 = vld [vmem:[%s8877_s6 + $0x44] sm:$0x1]  ;;  %v2750_v34 = vpop.f32.mrf.mxu0  ;;  %v9818_v4 = vld [vmem:[#allocation16_spill] sm:$0xff]  ;;  %v9819_v45 = vld [vmem:[#allocation18_spill] sm:$0xff] }
 0x28a   : > { %v3897_v63 = vshrl.u32 %v4522_v54, 16  ;;  %v4520_v13 = vpack.c.bf16 %v3688_v15, %v3688_v15  ;;  %v3691_v58 = vmax.f32 %v3659_v7, 0.0  ;;  %v3900_v60 = vshll.u32 %v4522_v54, 16  ;;  %v9822_v15 = vld [vmem:[#allocation22_spill] sm:$0xff]  ;;  %v9823_v51 = vld [vmem:[#allocation3_spill] sm:$0xff] }
 0x28b   : > { %v3860_v47 = vsel %vm8986_vm10, %v3852_v24, %v3859_v56  ;;  %v4156_v50 = vsel %vm8994_vm11, %v3861_v20, %v4442_v18  ;;  %v3657_v33 = vadd.f32 %v8867_v55, %v3618_v3  ;;  %v1803_v14 = vadd.f32 %v9819_v45, %v9818_v4  ;;  %v4697_v24 = vpop.f32.mrf.mxu0  ;;  %v9820_v18 = vld [vmem:[#allocation6_spill] sm:$0xff]  ;;  %v9821_v56 = vld [vmem:[#allocation17_spill] sm:$0xff] }
 0x28c   : > { %4441 = vst [vmem:[%s8877_s6 + $0x28] sm:$0xf] %v3860_v47  ;;  %4443 = vst [vmem:[%s8877_s6 + $0x2c] sm:$0x1] %v4156_v50  ;;  %v3899_v16 = vrot.slane %v3897_v63, 7  ;;  %v3880_v52 = vshrl.u32 %v4520_v13, 16  ;;  %v4523_v29 = vpack.c.bf16 %v3691_v58, %v3691_v58  ;;  %v1795_v20 = vadd.f32 %v9821_v56, %v9820_v18 }
 0x28d   : > { %v3689_v26 = vmax.f32 %v3657_v33, 0.0  ;;  %v3883_v37 = vshll.u32 %v4520_v13, 16  ;;  %v2843_v54 = vadd.f32 %v4696_v62, %v1803_v14  ;;  %v1806_v7 = vadd.f32 %v9823_v51, %v9822_v15  ;;  %v2753_v50 = vpop.f32.mrf.mxu0  ;;  %v9824_v63 = vld [vmem:[#allocation26_spill] sm:$0xff]  ;;  %v9825_v13 = vld [vmem:[#allocation4_spill] sm:$0xff] }
 0x28e   : > { %v3902_v41 = vor.u32 %v3900_v60, %v3899_v16  ;;  %v3882_v27 = vrot.slane %v3880_v52, 7  ;;  %v3905_v6 = vshrl.u32 %v4523_v29, 16  ;;  %v3908_v0 = vshll.u32 %v4523_v29, 16 }
 0x28f   : > { %v4521_v23 = vpack.c.bf16 %v3689_v26, %v3689_v26  ;;  %v3903_v2 = vrot.slane %v3899_v16, 4  ;;  %v2841_v3 = vadd.f32 %v2750_v34, %v1795_v20  ;;  %v1798_v58 = vadd.f32 %v9825_v13, %v9824_v63 }
 0x290   : > { %v4173_v59 = vsel %vm8978_vm9, %v3902_v41, %v4454_v40  ;;  %v3885_v8 = vor.u32 %v3883_v37, %v3882_v27  ;;  %v3907_v35 = vrot.slane %v3905_v6, 7  ;;  %v3886_v22 = vrot.slane %v3882_v27, 4 }
 0x291   : > { %4455 = vst [vmem:[%s8877_s6 + $0x48] sm:$0xf] %v4173_v59  ;;  %v3888_v11 = vshrl.u32 %v4521_v23, 16  ;;  %v3891_v42 = vshll.u32 %v4521_v23, 16  ;;  %v4730_v47 = vpop.f32.mrf.mxu1  ;;  %v2844_v16 = vadd.f32 %v4697_v24, %v1806_v7  ;;  %v2842_v29 = vadd.f32 %v2753_v50, %v1798_v58  ;;  %v9826_v58 = vld [vmem:[#allocation27_spill] sm:$0xff] }
 0x292   : > { %v4166_v9 = vsel %vm8978_vm9, %v3885_v8, %v4449_v46  ;;  %v3910_v19 = vor.u32 %v3908_v0, %v3907_v35  ;;  %v3912_v61 = vrot.slane %v3907_v35, 4  ;;  %v3623_v33 = vadd.f32 %v4730_v47, %v2843_v54 }
 0x293   : > { %v3890_v36 = vrot.slane %v3888_v11, 7  ;;  %4450 = vst [vmem:[%s8877_s6 + $0x3c] sm:$0xf] %v4166_v9  ;;  %v3530_v60 = vpop.f32.mrf.mxu1 }
 0x294   : > { %v3911_v44 = vsel %vm8986_vm10, %v3903_v2, %v3910_v19  ;;  %v4177_v17 = vsel %vm8994_vm11, %v3912_v61, %v4457_v1  ;;  %v3662_v40 = vadd.f32 %v8867_v55, %v3623_v33  ;;  %v3621_v52 = vadd.f32 %v3530_v60, %v2841_v3  ;;  %v4464_v19 = vld [vmem:[%s8877_s6 + $0x60] sm:$0xf]  ;;  %v4462_v3 = vld [vmem:[%s8877_s6 + $0x5c] sm:$0x1]  ;;  %v9827_v33 = vld [vmem:[#allocation28_spill] sm:$0xff] }
 0x295   : > { %v3893_v25 = vor.u32 %v3891_v42, %v3890_v36  ;;  %v3895_v30 = vrot.slane %v3890_v36, 4  ;;  %4456 = vst [vmem:[%s8877_s6 + $0x4c] sm:$0xf] %v3911_v44  ;;  %4458 = vst [vmem:[%s8877_s6 + $0x50] sm:$0x1] %v4177_v17  ;;  %v4731_v26 = vpop.f32.mrf.mxu1 }
 0x296   : > { %v3694_v41 = vmax.f32 %v3662_v40, 0.0  ;;  %v3660_v27 = vadd.f32 %v8867_v55, %v3621_v52  ;;  %v3624_v37 = vadd.f32 %v4731_v26, %v2844_v16  ;;  %v4459_v44 = vld [vmem:[%s8877_s6 + $0x54] sm:$0xf]  ;;  %v1819_v16 = vadd.f32 %v9827_v33, %v9826_v58  ;;  %v9829_v26 = vld [vmem:[#allocation32_spill] sm:$0xff] }
 0x297   : > { %v3894_v43 = vsel %vm8986_vm10, %v3886_v22, %v3893_v25  ;;  %v4170_v12 = vsel %vm8994_vm11, %v3895_v30, %v4452_v49  ;;  %v3533_v6 = vpop.f32.mrf.mxu1 }
 0x298   : > { %4451 = vst [vmem:[%s8877_s6 + $0x40] sm:$0xf] %v3894_v43  ;;  %4453 = vst [vmem:[%s8877_s6 + $0x44] sm:$0x1] %v4170_v12  ;;  %v4526_v23 = vpack.c.bf16 %v3694_v41, %v3694_v41  ;;  %v3692_v59 = vmax.f32 %v3660_v27, 0.0  ;;  %v3663_v46 = vadd.f32 %v8867_v55, %v3624_v37  ;;  %v3622_v62 = vadd.f32 %v3533_v6, %v2842_v29  ;;  %v9828_v29 = vld [vmem:[#allocation31_spill] sm:$0xff] }
 0x299   : > { %v4467_v43 = vld [vmem:[%s8877_s6 + $0x68] sm:$0x1]  ;;  %v1811_v41 = vadd.f32 %v9829_v26, %v9828_v29  ;;  %v9830_v37 = vld [vmem:[#allocation29_spill] sm:$0xff]  ;;  %v9831_v6 = vld [vmem:[#allocation35_spill] sm:$0xff] }
 0x29a   : > { %v3931_v8 = vshrl.u32 %v4526_v23, 16  ;;  %v4524_v35 = vpack.c.bf16 %v3692_v59, %v3692_v59  ;;  %v3695_v0 = vmax.f32 %v3663_v46, 0.0  ;;  %v3661_v11 = vadd.f32 %v8867_v55, %v3622_v62 }
 0x29b   : > { %v3934_v1 = vshll.u32 %v4526_v23, 16  ;;  %v1822_v23 = vadd.f32 %v9831_v6, %v9830_v37 }
 0x29c   : > { %v3933_v2 = vrot.slane %v3931_v8, 7  ;;  %v3914_v42 = vshrl.u32 %v4524_v35, 16  ;;  %v4527_v9 = vpack.c.bf16 %v3695_v0, %v3695_v0  ;;  %v3693_v61 = vmax.f32 %v3661_v11, 0.0  ;;  %v9832_v8 = vld [vmem:[#allocation33_spill] sm:$0xff] }
 0x29d   : > { %v3917_v49 = vshll.u32 %v4524_v35, 16  ;;  %v9833_v35 = vld [vmem:[#allocation30_spill] sm:$0xff] }
 0x29e   : > { %v3936_v36 = vor.u32 %v3934_v1, %v3933_v2  ;;  %v3916_v22 = vrot.slane %v3914_v42, 7  ;;  %v3939_v34 = vshrl.u32 %v4527_v9, 16  ;;  %v4525_v17 = vpack.c.bf16 %v3693_v61, %v3693_v61  ;;  %v4700_v14 = vpop.f32.mrf.mxu0 }
 0x29f   : > { %v3942_v45 = vshll.u32 %v4527_v9, 16  ;;  %v3937_v24 = vrot.slane %v3933_v2, 4  ;;  %v2847_v27 = vadd.f32 %v4700_v14, %v1819_v16  ;;  %v1814_v0 = vadd.f32 %v9833_v35, %v9832_v8 }
 0x2a0   : > { %v4187_v25 = vsel %vm8978_vm9, %v3936_v36, %v4464_v19  ;;  %v3919_v30 = vor.u32 %v3917_v49, %v3916_v22  ;;  %v3941_v4 = vrot.slane %v3939_v34, 7  ;;  %v3922_v12 = vshrl.u32 %v4525_v17, 16  ;;  %v2766_v47 = vpop.f32.mrf.mxu0 }
 0x2a1   : > { %4465 = vst [vmem:[%s8877_s6 + $0x60] sm:$0xf] %v4187_v25  ;;  %v3925_v15 = vshll.u32 %v4525_v17, 16  ;;  %v3920_v50 = vrot.slane %v3916_v22, 4  ;;  %v2845_v59 = vadd.f32 %v2766_v47, %v1811_v41  ;;  %v4469_v47 = vld [vmem:[%s8877_s6 + $0x6c] sm:$0xf] }
 0x2a2   : > { %v4180_v18 = vsel %vm8978_vm9, %v3919_v30, %v4459_v44  ;;  %v3944_v56 = vor.u32 %v3942_v45, %v3941_v4  ;;  %v3946_v20 = vrot.slane %v3941_v4, 4  ;;  %v3924_v54 = vrot.slane %v3922_v12, 7  ;;  %v4701_v52 = vpop.f32.mrf.mxu0 }
 0x2a3   : > { %4460 = vst [vmem:[%s8877_s6 + $0x54] sm:$0xf] %v4180_v18  ;;  %v2848_v2 = vadd.f32 %v4701_v52, %v1822_v23 }
 0x2a4   : > { %v3945_v51 = vsel %vm8986_vm10, %v3937_v24, %v3944_v56  ;;  %v4191_v7 = vsel %vm8994_vm11, %v3946_v20, %v4467_v43  ;;  %v3927_v63 = vor.u32 %v3925_v15, %v3924_v54  ;;  %v3929_v13 = vrot.slane %v3924_v54, 4  ;;  %v2769_v62 = vpop.f32.mrf.mxu0  ;;  %v4474_v20 = vld [vmem:[%s8877_s6 + $0x78] sm:$0xf] }
 0x2a5   : > { %4466 = vst [vmem:[%s8877_s6 + $0x64] sm:$0xf] %v3945_v51  ;;  %4468 = vst [vmem:[%s8877_s6 + $0x68] sm:$0x1] %v4191_v7  ;;  %v2846_v19 = vadd.f32 %v2769_v62, %v1814_v0  ;;  %v9834_v0 = vld [vmem:[#allocation36_spill] sm:$0xff] }
 0x2a6   : > { %v3928_v60 = vsel %vm8986_vm10, %v3920_v50, %v3927_v63  ;;  %v4184_v40 = vsel %vm8994_vm11, %v3929_v13, %v4462_v3 }
 0x2a7   : > { %4461 = vst [vmem:[%s8877_s6 + $0x58] sm:$0xf] %v3928_v60  ;;  %4463 = vst [vmem:[%s8877_s6 + $0x5c] sm:$0x1] %v4184_v40  ;;  %v4477_v60 = vld [vmem:[%s8877_s6 + $0x80] sm:$0x1] }
 0x2ae   : > { %v4734_v46 = vpop.f32.mrf.mxu1 }
 0x2af   : > { %v3627_v11 = vadd.f32 %v4734_v46, %v2847_v27 }
 0x2b0   : > { %v3546_v1 = vpop.f32.mrf.mxu1 }
 0x2b1   : > { %v3666_v42 = vadd.f32 %v8867_v55, %v3627_v11  ;;  %v3625_v9 = vadd.f32 %v3546_v1, %v2845_v59  ;;  %v4472_v59 = vld [vmem:[%s8877_s6 + $0x74] sm:$0x1]  ;;  %v9835_v11 = vld [vmem:[#allocation38_spill] sm:$0xff] }
 0x2b2   : > { %v4735_v61 = vpop.f32.mrf.mxu1 }
 0x2b3   : > { %v3698_v36 = vmax.f32 %v3666_v42, 0.0  ;;  %v3664_v22 = vadd.f32 %v8867_v55, %v3625_v9  ;;  %v3628_v49 = vadd.f32 %v4735_v61, %v2848_v2  ;;  %v1835_v2 = vadd.f32 %v9835_v11, %v9834_v0  ;;  %v9837_v61 = vld [vmem:[#allocation39_spill] sm:$0xff] }
 0x2b4   : > { %v3549_v34 = vpop.f32.mrf.mxu1 }
 0x2b5   : > { %v4530_v44 = vpack.c.bf16 %v3698_v36, %v3698_v36  ;;  %v3696_v17 = vmax.f32 %v3664_v22, 0.0  ;;  %v3667_v25 = vadd.f32 %v8867_v55, %v3628_v49  ;;  %v3626_v30 = vadd.f32 %v3549_v34, %v2846_v19  ;;  %v9836_v19 = vld [vmem:[#allocation37_spill] sm:$0xff]  ;;  %v9838_v49 = vld [vmem:[#allocation34_spill] sm:$0xff] }
 0x2b6   : > { %v1827_v36 = vadd.f32 %v9837_v61, %v9836_v19  ;;  %v9839_v34 = vld [vmem:[#allocation42_spill] sm:$0xff] }
 0x2b7   : > { %v3965_v4 = vshrl.u32 %v4530_v44, 16  ;;  %v4528_v45 = vpack.c.bf16 %v3696_v17, %v3696_v17  ;;  %v3699_v14 = vmax.f32 %v3667_v25, 0.0  ;;  %v3665_v43 = vadd.f32 %v8867_v55, %v3626_v30 }
 0x2b8   : > { %v3968_v24 = vshll.u32 %v4530_v44, 16  ;;  %v1838_v44 = vadd.f32 %v9839_v34, %v9838_v49 }
 0x2b9   : > { %v3967_v12 = vrot.slane %v3965_v4, 7  ;;  %v3948_v18 = vshrl.u32 %v4528_v45, 16  ;;  %v4531_v56 = vpack.c.bf16 %v3699_v14, %v3699_v14  ;;  %v3697_v54 = vmax.f32 %v3665_v43, 0.0  ;;  %v9840_v4 = vld [vmem:[#allocation41_spill] sm:$0xff] }
 0x2ba   : > { %v3951_v7 = vshll.u32 %v4528_v45, 16  ;;  %v9841_v45 = vld [vmem:[#allocation40_spill] sm:$0xff] }
 0x2bb   : > { %v3970_v15 = vor.u32 %v3968_v24, %v3967_v12  ;;  %v3950_v51 = vrot.slane %v3948_v18, 7  ;;  %v3973_v3 = vshrl.u32 %v4531_v56, 16  ;;  %v4529_v50 = vpack.c.bf16 %v3697_v54, %v3697_v54  ;;  %v4704_v16 = vpop.f32.mrf.mxu0 }
 0x2bc   : > { %v3976_v33 = vshll.u32 %v4531_v56, 16  ;;  %v3971_v52 = vrot.slane %v3967_v12, 4  ;;  %v2851_v22 = vadd.f32 %v4704_v16, %v1835_v2  ;;  %v1830_v14 = vadd.f32 %v9841_v45, %v9840_v4  ;;  %v4487_v2 = vld [vmem:[%s8877_s6 + $0x98] sm:$0x1] }
 0x2bd   : > { %v4201_v63 = vsel %vm8978_vm9, %v3970_v15, %v4474_v20  ;;  %v3953_v13 = vor.u32 %v3951_v7, %v3950_v51  ;;  %v3975_v58 = vrot.slane %v3973_v3, 7  ;;  %v3956_v40 = vshrl.u32 %v4529_v50, 16  ;;  %v2782_v46 = vpop.f32.mrf.mxu0 }
 0x2be   : > { %4475 = vst [vmem:[%s8877_s6 + $0x78] sm:$0xf] %v4201_v63  ;;  %v3959_v37 = vshll.u32 %v4529_v50, 16  ;;  %v3954_v62 = vrot.slane %v3950_v51, 4  ;;  %v2849_v17 = vadd.f32 %v2782_v46, %v1827_v36  ;;  %v4479_v46 = vld [vmem:[%s8877_s6 + $0x84] sm:$0xf] }
 0x2bf   : > { %v4194_v29 = vsel %vm8978_vm9, %v3953_v13, %v4469_v47  ;;  %v3978_v26 = vor.u32 %v3976_v33, %v3975_v58  ;;  %v3980_v41 = vrot.slane %v3975_v58, 4  ;;  %v3958_v27 = vrot.slane %v3956_v40, 7  ;;  %v4705_v9 = vpop.f32.mrf.mxu0 }
 0x2c0   : > { %4470 = vst [vmem:[%s8877_s6 + $0x6c] sm:$0xf] %v4194_v29  ;;  %v2852_v12 = vadd.f32 %v4705_v9, %v1838_v44  ;;  %v4482_v44 = vld [vmem:[%s8877_s6 + $0x8c] sm:$0x1] }
 0x2c1   : > { %v3979_v6 = vsel %vm8986_vm10, %v3971_v52, %v3978_v26  ;;  %v4205_v23 = vsel %vm8994_vm11, %v3980_v41, %v4477_v60  ;;  %v3961_v8 = vor.u32 %v3959_v37, %v3958_v27  ;;  %v3963_v35 = vrot.slane %v3958_v27, 4  ;;  %v2785_v30 = vpop.f32.mrf.mxu0  ;;  %v4484_v41 = vld [vmem:[%s8877_s6 + $0x90] sm:$0xf] }
 0x2c2   : > { %4476 = vst [vmem:[%s8877_s6 + $0x7c] sm:$0xf] %v3979_v6  ;;  %4478 = vst [vmem:[%s8877_s6 + $0x80] sm:$0x1] %v4205_v23  ;;  %v2850_v20 = vadd.f32 %v2785_v30, %v1830_v14 }
 0x2c3   : > { %v3962_v1 = vsel %vm8986_vm10, %v3954_v62, %v3961_v8  ;;  %v4198_v42 = vsel %vm8994_vm11, %v3963_v35, %v4472_v59 }
 0x2c4   : > { %4471 = vst [vmem:[%s8877_s6 + $0x70] sm:$0xf] %v3962_v1  ;;  %4473 = vst [vmem:[%s8877_s6 + $0x74] sm:$0x1] %v4198_v42 }
 0x2cb   : > { %v4738_v25 = vpop.f32.mrf.mxu1 }
 0x2cc   : > { %v3631_v43 = vadd.f32 %v4738_v25, %v2851_v22 }
 0x2cd   : > { %v3562_v24 = vpop.f32.mrf.mxu1 }
 0x2ce   : > { %v3670_v18 = vadd.f32 %v8867_v55, %v3631_v43  ;;  %v3629_v56 = vadd.f32 %v3562_v24, %v2849_v17 }
 0x2cf   : > { %v4739_v54 = vpop.f32.mrf.mxu1 }
 0x2d0   : > { %v3702_v15 = vmax.f32 %v3670_v18, 0.0  ;;  %v3668_v51 = vadd.f32 %v8867_v55, %v3629_v56  ;;  %v3632_v7 = vadd.f32 %v4739_v54, %v2852_v12 }
 0x2d1   : > { %v3565_v3 = vpop.f32.mrf.mxu1  ;;  %v4708_v14 = vpop.f32.mrf.mxu0 }
 0x2d2   : > { %v4534_v47 = vpack.c.bf16 %v3702_v15, %v3702_v15  ;;  %v3700_v50 = vmax.f32 %v3668_v51, 0.0  ;;  %v3671_v63 = vadd.f32 %v8867_v55, %v3632_v7  ;;  %v3630_v13 = vadd.f32 %v3565_v3, %v2850_v20 }
 0x2d3   : > { %v2798_v43 = vpop.f32.mrf.mxu0  ;;  %v2855_v24 = vadd.f32 %v4708_v14, %v8801_v32 }
 0x2d4   : > { %v3999_v58 = vshrl.u32 %v4534_v47, 16  ;;  %v4532_v33 = vpack.c.bf16 %v3700_v50, %v3700_v50  ;;  %v3703_v16 = vmax.f32 %v3671_v63, 0.0  ;;  %v3669_v60 = vadd.f32 %v8867_v55, %v3630_v13 }
 0x2d5   : > { %v4002_v52 = vshll.u32 %v4534_v47, 16  ;;  %v4709_v12 = vpop.f32.mrf.mxu0  ;;  %v2853_v18 = vadd.f32 %v2798_v43, %v8805_v5 }
 0x2d6   : > { %v4001_v40 = vrot.slane %v3999_v58, 7  ;;  %v3982_v29 = vshrl.u32 %v4532_v33, 16  ;;  %v4535_v26 = vpack.c.bf16 %v3703_v16, %v3703_v16  ;;  %v3701_v27 = vmax.f32 %v3669_v60, 0.0 }
 0x2d7   : > { %v3985_v23 = vshll.u32 %v4532_v33, 16  ;;  %v2801_v20 = vpop.f32.mrf.mxu0  ;;  %v2856_v15 = vadd.f32 %v4709_v12, %v8809_v39 }
 0x2d8   : > { %v4004_v37 = vor.u32 %v4002_v52, %v4001_v40  ;;  %v3984_v6 = vrot.slane %v3982_v29, 7  ;;  %v4007_v59 = vshrl.u32 %v4535_v26, 16  ;;  %v4533_v62 = vpack.c.bf16 %v3701_v27, %v3701_v27 }
 0x2d9   : > { %v4010_v11 = vshll.u32 %v4535_v26, 16  ;;  %v4005_v42 = vrot.slane %v4001_v40, 4  ;;  %v2854_v47 = vadd.f32 %v2801_v20, %v8822_v10 }
 0x2da   : > { %v4215_v8 = vsel %vm8978_vm9, %v4004_v37, %v4484_v41  ;;  %v3987_v35 = vor.u32 %v3985_v23, %v3984_v6  ;;  %v4009_v0 = vrot.slane %v4007_v59, 7  ;;  %v3990_v1 = vshrl.u32 %v4533_v62, 16  ;;  %v4494_v37 = vld [vmem:[%s8877_s6 + $0xa8] sm:$0xf] }
 0x2db   : > { %4485 = vst [vmem:[%s8877_s6 + $0x90] sm:$0xf] %v4215_v8  ;;  %v3993_v22 = vshll.u32 %v4533_v62, 16  ;;  %v3988_v17 = vrot.slane %v3984_v6, 4  ;;  %v4489_v8 = vld [vmem:[%s8877_s6 + $0x9c] sm:$0xf] }
 0x2dc   : > { %v4208_v9 = vsel %vm8978_vm9, %v3987_v35, %v4479_v46  ;;  %v4012_v19 = vor.u32 %v4010_v11, %v4009_v0  ;;  %v4014_v61 = vrot.slane %v4009_v0, 4  ;;  %v3992_v36 = vrot.slane %v3990_v1, 7  ;;  %v4497_v1 = vld [vmem:[%s8877_s6 + $0xb0] sm:$0x1] }
 0x2dd   : > { %4480 = vst [vmem:[%s8877_s6 + $0x84] sm:$0xf] %v4208_v9 }
 0x2de   : > { %v4013_v49 = vsel %vm8986_vm10, %v4005_v42, %v4012_v19  ;;  %v4219_v34 = vsel %vm8994_vm11, %v4014_v61, %v4487_v2  ;;  %v3995_v25 = vor.u32 %v3993_v22, %v3992_v36  ;;  %v3997_v30 = vrot.slane %v3992_v36, 4 }
 0x2df   : > { %4486 = vst [vmem:[%s8877_s6 + $0x94] sm:$0xf] %v4013_v49  ;;  %4488 = vst [vmem:[%s8877_s6 + $0x98] sm:$0x1] %v4219_v34 }
 0x2e0   : > { %v3996_v4 = vsel %vm8986_vm10, %v3988_v17, %v3995_v25  ;;  %v4212_v45 = vsel %vm8994_vm11, %v3997_v30, %v4482_v44  ;;  %v4492_v17 = vld [vmem:[%s8877_s6 + $0xa4] sm:$0x1] }
 0x2e1   : > { %4481 = vst [vmem:[%s8877_s6 + $0x88] sm:$0xf] %v3996_v4  ;;  %4483 = vst [vmem:[%s8877_s6 + $0x8c] sm:$0x1] %v4212_v45 }
 0x2f9   : > { %v4742_v56 = vpop.f32.mrf.mxu1 }
 0x2fa   : > { %v3635_v54 = vadd.f32 %v4742_v56, %v2855_v24 }
 0x2fb   : > { %v3578_v51 = vpop.f32.mrf.mxu1 }
 0x2fc   : > { %v3674_v7 = vadd.f32 %v8867_v55, %v3635_v54  ;;  %v3633_v3 = vadd.f32 %v3578_v51, %v2853_v18 }
 0x2fd   : > { %v4743_v50 = vpop.f32.mrf.mxu1 }
 0x2fe   : > { %v3706_v63 = vmax.f32 %v3674_v7, 0.0  ;;  %v3672_v13 = vadd.f32 %v8867_v55, %v3633_v3  ;;  %v3636_v58 = vadd.f32 %v4743_v50, %v2856_v15  ;;  %v4782_v3 = vld [vmem:[%s9243_s2] ss:$0 sm:$0xff] }
 0x2ff   : > { %v3581_v32 = vpop.f32.mrf.mxu1 }
 0x300   : > { %v4538_v33 = vpack.c.bf16 %v3706_v63, %v3706_v63  ;;  %v3704_v5 = vmax.f32 %v3672_v13, 0.0  ;;  %v3675_v16 = vadd.f32 %v8867_v55, %v3636_v58  ;;  %v3634_v60 = vadd.f32 %v3581_v32, %v2854_v47 }
 0x302   : > { %v4033_v39 = vshrl.u32 %v4538_v33, 16  ;;  %v4536_v40 = vpack.c.bf16 %v3704_v5, %v3704_v5  ;;  %v3707_v52 = vmax.f32 %v3675_v16, 0.0  ;;  %v3673_v29 = vadd.f32 %v8867_v55, %v3634_v60 }
 0x303   : > { %v4036_v10 = vshll.u32 %v4538_v33, 16 }
 0x304   : > { %v4035_v26 = vrot.slane %v4033_v39, 7  ;;  %v4016_v41 = vshrl.u32 %v4536_v40, 16  ;;  %v4539_v27 = vpack.c.bf16 %v3707_v52, %v3707_v52  ;;  %v3705_v6 = vmax.f32 %v3673_v29, 0.0 }
 0x305   : > { %v4019_v46 = vshll.u32 %v4536_v40, 16 }
 0x306   : > { %v4038_v23 = vor.u32 %v4036_v10, %v4035_v26  ;;  %v4018_v59 = vrot.slane %v4016_v41, 7  ;;  %v4041_v62 = vshrl.u32 %v4539_v27, 16  ;;  %v4537_v35 = vpack.c.bf16 %v3705_v6, %v3705_v6  ;;  %v4504_v41 = vld [vmem:[%s8877_s6 + $0xc0] sm:$0xf] }
 0x307   : > { %v4044_v2 = vshll.u32 %v4539_v27, 16  ;;  %v4039_v9 = vrot.slane %v4035_v26, 4  ;;  %v4712_v43 = vpop.f32.mrf.mxu0 }
 0x308   : > { %v4229_v0 = vsel %vm8978_vm9, %v4038_v23, %v4494_v37  ;;  %v4021_v55 = vor.u32 %v4019_v46, %v4018_v59  ;;  %v4043_v11 = vrot.slane %v4041_v62, 7  ;;  %v4024_v42 = vshrl.u32 %v4537_v35, 16  ;;  %v4499_v46 = vld [vmem:[%s8877_s6 + $0xb4] sm:$0xf] }
 0x309   : > { %4495 = vst [vmem:[%s8877_s6 + $0xa8] sm:$0xf] %v4229_v0  ;;  %v4027_v49 = vshll.u32 %v4537_v35, 16  ;;  %v4022_v25 = vrot.slane %v4018_v59, 4  ;;  %v2814_v12 = vpop.f32.mrf.mxu0  ;;  %v2859_v18 = vadd.f32 %v4712_v43, %v8826_v31 }
 0x30a   : > { %v4222_v19 = vsel %vm8978_vm9, %v4021_v55, %v4489_v8  ;;  %v4046_v61 = vor.u32 %v4044_v2, %v4043_v11  ;;  %v4048_v36 = vrot.slane %v4043_v11, 4  ;;  %v4026_v22 = vrot.slane %v4024_v42, 7  ;;  %v4507_v11 = vld [vmem:[%s8877_s6 + $0xc8] sm:$0x1] }
 0x30b   : > { %4490 = vst [vmem:[%s8877_s6 + $0x9c] sm:$0xf] %v4222_v19  ;;  %v4713_v24 = vpop.f32.mrf.mxu0  ;;  %v2857_v56 = vadd.f32 %v2814_v12, %v8832_v48 }
 0x30c   : > { %v4047_v34 = vsel %vm8986_vm10, %v4039_v9, %v4046_v61  ;;  %v4233_v44 = vsel %vm8994_vm11, %v4048_v36, %v4497_v1  ;;  %v4029_v30 = vor.u32 %v4027_v49, %v4026_v22  ;;  %v4031_v4 = vrot.slane %v4026_v22, 4 }
 0x30d   : > { %4496 = vst [vmem:[%s8877_s6 + $0xac] sm:$0xf] %v4047_v34  ;;  %4498 = vst [vmem:[%s8877_s6 + $0xb0] sm:$0x1] %v4233_v44  ;;  %v2817_v54 = vpop.f32.mrf.mxu0  ;;  %v2860_v51 = vadd.f32 %v4713_v24, %v8836_v21  ;;  %v4502_v34 = vld [vmem:[%s8877_s6 + $0xbc] sm:$0x1] }
 0x30e   : > { %v4030_v45 = vsel %vm8986_vm10, %v4022_v25, %v4029_v30  ;;  %v4226_v14 = vsel %vm8994_vm11, %v4031_v4, %v4492_v17  ;;  %v2858_v63 = vadd.f32 %v2817_v54, %v8839_v28 }
 0x30f   : > { %4491 = vst [vmem:[%s8877_s6 + $0xa0] sm:$0xf] %v4030_v45  ;;  %4493 = vst [vmem:[%s8877_s6 + $0xa4] sm:$0x1] %v4226_v14 }
 0x32c   : > { %v4746_v20 = vpop.f32.mrf.mxu1 }
 0x32d   : > { %v3639_v15 = vadd.f32 %v4746_v20, %v2859_v18 }
 0x32e   : > { %v3594_v7 = vpop.f32.mrf.mxu1 }
 0x32f   : > { %v3678_v47 = vadd.f32 %v4782_v3, %v3639_v15  ;;  %v3637_v50 = vadd.f32 %v3594_v7, %v2857_v56 }
 0x330   : > { %v4747_v13 = vpop.f32.mrf.mxu1 }
 0x331   : > { %v3710_v58 = vmax.f32 %v3678_v47, 0.0  ;;  %v3676_v31 = vadd.f32 %v4782_v3, %v3637_v50  ;;  %v3640_v32 = vadd.f32 %v4747_v13, %v2860_v51 }
 0x332   : > { %v3597_v48 = vpop.f32.mrf.mxu1 }
 0x333   : > { %v4542_v33 = vpack.c.bf16 %v3710_v58, %v3710_v58  ;;  %v3708_v5 = vmax.f32 %v3676_v31, 0.0  ;;  %v3679_v16 = vadd.f32 %v4782_v3, %v3640_v32  ;;  %v3638_v21 = vadd.f32 %v3597_v48, %v2858_v63 }
 0x335   : > { %v4067_v60 = vshrl.u32 %v4542_v33, 16  ;;  %v4540_v39 = vpack.c.bf16 %v3708_v5, %v3708_v5  ;;  %v3711_v40 = vmax.f32 %v3679_v16, 0.0  ;;  %v3677_v52 = vadd.f32 %v4782_v3, %v3638_v21 }
 0x336   : > { %v4070_v26 = vshll.u32 %v4542_v33, 16 }
 0x337   : > { %v4069_v29 = vrot.slane %v4067_v60, 7  ;;  %v4050_v28 = vshrl.u32 %v4540_v39, 16  ;;  %v4543_v10 = vpack.c.bf16 %v3711_v40, %v3711_v40  ;;  %v3709_v27 = vmax.f32 %v3677_v52, 0.0 }
 0x338   : > { %v4053_v23 = vshll.u32 %v4540_v39, 16 }
 0x339   : > { %v4072_v37 = vor.u32 %v4070_v26, %v4069_v29  ;;  %v4052_v6 = vrot.slane %v4050_v28, 7  ;;  %v4075_v59 = vshrl.u32 %v4543_v10, 16  ;;  %v4541_v62 = vpack.c.bf16 %v3709_v27, %v3709_v27 }
 0x33a   : > { %v4078_v55 = vshll.u32 %v4543_v10, 16  ;;  %v4073_v1 = vrot.slane %v4069_v29, 4 }
 0x33b   : > { %v4243_v8 = vsel %vm8978_vm9, %v4072_v37, %v4504_v41  ;;  %v4055_v35 = vor.u32 %v4053_v23, %v4052_v6  ;;  %v4077_v0 = vrot.slane %v4075_v59, 7  ;;  %v4058_v2 = vshrl.u32 %v4541_v62, 16 }
 0x33c   : > { %4505 = vst [vmem:[%s8877_s6 + $0xc0] sm:$0xf] %v4243_v8  ;;  %v4061_v36 = vshll.u32 %v4541_v62, 16  ;;  %v4056_v44 = vrot.slane %v4052_v6, 4 }
 0x33d   : > { %v4236_v42 = vsel %vm8978_vm9, %v4055_v35, %v4499_v46  ;;  %v4080_v9 = vor.u32 %v4078_v55, %v4077_v0  ;;  %v4082_v19 = vrot.slane %v4077_v0, 4  ;;  %v4060_v61 = vrot.slane %v4058_v2, 7 }
 0x33e   : > { %4500 = vst [vmem:[%s8877_s6 + $0xb4] sm:$0xf] %v4236_v42 }
 0x33f   : > { %v4081_v22 = vsel %vm8986_vm10, %v4073_v1, %v4080_v9  ;;  %v4247_v49 = vsel %vm8994_vm11, %v4082_v19, %v4507_v11  ;;  %v4063_v17 = vor.u32 %v4061_v36, %v4060_v61  ;;  %v4065_v53 = vrot.slane %v4060_v61, 4 }
 0x340   : > { %4506 = vst [vmem:[%s8877_s6 + $0xc4] sm:$0xf] %v4081_v22  ;;  %4508 = vst [vmem:[%s8877_s6 + $0xc8] sm:$0x1] %v4247_v49 }
 0x341   : > { %v4064_v25 = vsel %vm8986_vm10, %v4056_v44, %v4063_v17  ;;  %v4240_v30 = vsel %vm8994_vm11, %v4065_v53, %v4502_v34 }
 0x342   : > { %4501 = vst [vmem:[%s8877_s6 + $0xb8] sm:$0xf] %v4064_v25  ;;  %4503 = vst [vmem:[%s8877_s6 + $0xbc] sm:$0x1] %v4240_v30 }
 0x343 PF: > { %s13_s12 = sadd.s32 1, %s4789_s12  }
 0x344   : > { %p10_p4 = scmp.ge.s32.totalorder %s13_s12, 4  }
 0x346   :  { %12 = sbr.rel (!%p10_p4) target bundleno = 1 (0x1), region = 68 }

</bundles_post_ra>
